<compile_context>
chip_gen: v7x
topology: tpu7x:2x2x1
jax: 0.10.0
libtpu: 0.0.40
codegen_flags: <defaults>
</compile_context>

<pallas_src>
import numpy as np
import jax
import jax.numpy as jnp
from jax.experimental import pallas as pl
from jax.experimental.pallas import tpu as pltpu

LANE = 128
EPS_DEN = 1e-30   # inert guard; the module forbids zero-in-degree nodes anyway


def _round_up(x, m):
    return ((x + m - 1) // m) * m


def nonlinear_gat_g(feat, w_heads, attn_l_heads, attn_r_heads, w_out,
                    attn_l_out, attn_r_out, edge, p, s_f, neg_slope=0.2):
    """Eval-mode forward of NonlinearGAT_G.

    feat:(N,nfeat) f32; w_heads:(nheads,nfeat,nhid) (fc weights, transposed);
    attn_l/r_heads:(nheads,nhid); w_out:(nheads*nhid,nclass) (transposed);
    attn_l/r_out:(nclass,); edge:(2,E) int32 with edge[0]=src, edge[1]=dst;
    p:(1,nheads) f32; s_f python float (static).  Returns (N,nclass) f32.
    """
    N, nfeat = feat.shape
    nheads, _, nhid = w_heads.shape
    nclass = w_out.shape[1]
    src, dst = edge[0], edge[1]
    E = int(src.shape[0])
    assert E % 8 == 0, "edge count must be a multiple of 8 (sublane granule)"

    n_pad = _round_up(N, LANE)
    f_pad = _round_up(nfeat, LANE)
    d_pad = _round_up(nhid + 1, LANE)      # keep >= 1 padding lane for el pack
    c_pad = _round_up(nclass + 1, LANE)
    h_pad = nheads * d_pad

    f32, bf16 = jnp.float32, jnp.bfloat16
    neg = float(neg_slope)

    # ---------- padded operand assembly (XLA glue, not the hot path) --------
    feat_p = jnp.zeros((n_pad, f_pad), f32).at[:N, :nfeat].set(feat)
    wcat = jnp.zeros((f_pad, h_pad), f32)
    a_eler = jnp.zeros((h_pad, 2 * nheads), f32)
    wout_p = jnp.zeros((h_pad, c_pad), f32)
    for i in range(nheads):
        c0 = i * d_pad
        wcat = wcat.at[:nfeat, c0:c0 + nhid].set(w_heads[i])
        a_eler = a_eler.at[c0:c0 + nhid, i].set(attn_l_heads[i])
        a_eler = a_eler.at[c0:c0 + nhid, nheads + i].set(attn_r_heads[i])
        wout_p = wout_p.at[c0:c0 + nhid, :nclass].set(
            w_out[i * nhid:(i + 1) * nhid])
    aout = jnp.zeros((c_pad, 2), f32)
    aout = aout.at[:nclass, 0].set(attn_l_out)
    aout = aout.at[:nclass, 1].set(attn_r_out)

    # one-hot gather/scatter operators in bf16 (0/1 exact); scatter operator
    # is pre-transposed here instead of transposing three times in the kernel.
    gsrc = jax.nn.one_hot(src, n_pad, dtype=bf16)          # (E, n_pad)
    gdst = jax.nn.one_hot(dst, n_pad, dtype=bf16)          # (E, n_pad)
    gdst_t = gdst.T                                        # (n_pad, E)

    # s_f is a static python float: fold sigmoid(p)+s_f into per-head scalars.
    pw = (jax.nn.sigmoid(p[0]) + float(s_f)).astype(f32)   # (nheads,)

    def kernel(feat_ref, wcat_ref, aeler_ref, gsrc_ref, gdst_ref, gdstt_ref,
               wout_ref, aout_ref, pw_ref, out_ref):
        gsrc_m = gsrc_ref[...]
        gdst_m = gdst_ref[...]
        gdstt_m = gdstt_ref[...]

        # ---- heads (GATConv_G), stacked along the lane axis ----
        h_all = jnp.dot(feat_ref[...], wcat_ref[...],
                        preferred_element_type=f32)                 # (n_pad,h_pad)
        eler = jnp.dot(h_all, aeler_ref[...],
                       preferred_element_type=f32)                  # (n_pad,2*nh)
        er_all = eler[:, nheads:2 * nheads]                         # (n_pad,nh)

        row_n = jax.lax.broadcasted_iota(jnp.int32, (n_pad, d_pad), 0)
        col_d = jax.lax.broadcasted_iota(jnp.int32, (n_pad, d_pad), 1)
        valid_nd = (row_n < N) & (col_d < nhid)
        pack_col = col_d == (d_pad - 1)

        mus, inv_pws, src_blocks = [], [], []
        for i in range(nheads):
            h_i = h_all[:, i * d_pad:(i + 1) * d_pad]
            el_i = eler[:, i:i + 1]
            pw_i = pw_ref[i]                                        # SMEM scalar
            inv_pws.append(1.0 / pw_i)
            mu_i = jnp.min(jnp.where(valid_nd, h_i, 1e30))          # = feat_src.min()
            mus.append(mu_i)
            base = jnp.where(valid_nd, h_i - mu_i + 1e-6, 1.0)      # > 0
            pre_f = jnp.where(valid_nd, jnp.exp(pw_i * jnp.log(base)), 0.0)
            # pack el into the last (padding) lane: one gsrc pass gathers both
            src_blocks.append(jnp.where(pack_col, el_i, pre_f))
        src_pack = jnp.concatenate(src_blocks, axis=1)              # (n_pad,h_pad)

        # fused gathers: ONE pass over gsrc / gdst for all heads
        src_g = jnp.dot(gsrc_m, src_pack.astype(bf16),
                        preferred_element_type=f32)                 # (E,h_pad)
        er_d = jnp.dot(gdst_m, er_all.astype(bf16),
                       preferred_element_type=f32)                  # (E,nh)

        el_s = jnp.concatenate(
            [src_g[:, (i + 1) * d_pad - 1:(i + 1) * d_pad] for i in range(nheads)],
            axis=1)                                                 # (E,nh)
        e = el_s + er_d
        e = jnp.where(e > 0, e, neg * e)                            # leaky_relu
        em = jnp.exp(e - jnp.max(e))            # global shift == per-group shift
        den_n = jnp.dot(gdstt_m, em.astype(bf16), preferred_element_type=f32)
        den_e = jnp.dot(gdst_m, den_n.astype(bf16), preferred_element_type=f32)
        att = em * pl.reciprocal(den_e + EPS_DEN, approx=True)      # (E,nh)

        ecol_d = jax.lax.broadcasted_iota(jnp.int32, (E, d_pad), 1)
        msg_valid = ecol_d < nhid
        msg_blocks = []
        for i in range(nheads):
            blk = jnp.where(msg_valid, src_g[:, i * d_pad:(i + 1) * d_pad], 0.0)
            msg_blocks.append(blk * att[:, i:i + 1])
        msg = jnp.concatenate(msg_blocks, axis=1)                   # (E,h_pad)
        agg = jnp.dot(gdstt_m, msg.astype(bf16),
                      preferred_element_type=f32)                   # (n_pad,h_pad)

        rst_blocks = []
        for i in range(nheads):
            agg_i = agg[:, i * d_pad:(i + 1) * d_pad]
            rst_i = jnp.exp(inv_pws[i] * jnp.log(agg_i + 1e-6)) + mus[i]
            rst_blocks.append(jnp.where(valid_nd, rst_i, 0.0))      # head bias = 0
        xcat = jnp.concatenate(rst_blocks, axis=1)                  # (n_pad,h_pad)

        # ---- output GATConv ----
        h2 = jnp.dot(xcat, wout_ref[...], preferred_element_type=f32)   # (n_pad,c_pad)
        eler2 = jnp.dot(h2, aout_ref[...], preferred_element_type=f32)  # (n_pad,2)
        el2 = eler2[:, 0:1]
        er2 = eler2[:, 1:2]

        col_c = jax.lax.broadcasted_iota(jnp.int32, (n_pad, c_pad), 1)
        pack2 = jnp.where(col_c == (c_pad - 1), el2, h2)            # el2 in pad lane
        src2 = jnp.dot(gsrc_m, pack2.astype(bf16), preferred_element_type=f32)
        er2_d = jnp.dot(gdst_m, er2.astype(bf16), preferred_element_type=f32)

        e2 = src2[:, c_pad - 1:c_pad] + er2_d
        e2 = jnp.where(e2 > 0, e2, neg * e2)
        em2 = jnp.exp(e2 - jnp.max(e2))
        den2_n = jnp.dot(gdstt_m, em2.astype(bf16), preferred_element_type=f32)
        den2_e = jnp.dot(gdst_m, den2_n.astype(bf16), preferred_element_type=f32)
        att2 = em2 * pl.reciprocal(den2_e + EPS_DEN, approx=True)   # (E,1)

        ecol_c = jax.lax.broadcasted_iota(jnp.int32, (E, c_pad), 1)
        msg2 = jnp.where(ecol_c < nclass, src2, 0.0) * att2
        out2 = jnp.dot(gdstt_m, msg2.astype(bf16),
                       preferred_element_type=f32)                  # (n_pad,c_pad)

        # out bias = 0; ELU + masked log_softmax over the real class lanes
        x = jnp.where(out2 > 0, out2, jnp.exp(out2) - 1.0)
        cls_valid = col_c < nclass
        xm = jnp.where(cls_valid, x, -1e30)
        mx = jnp.max(xm, axis=-1, keepdims=True)
        ex = jnp.where(cls_valid, jnp.exp(x - mx), 0.0)
        lse = jnp.log(jnp.sum(ex, axis=-1, keepdims=True)) + mx
        out_ref[...] = jnp.where(cls_valid, x - lse, 0.0)           # lane-dense store

    vmem = pl.BlockSpec(memory_space=pltpu.MemorySpace.VMEM)
    smem = pl.BlockSpec(memory_space=pltpu.MemorySpace.SMEM)
    # TODO(synk): for graphs beyond toy sizes the dense E x N one-hot operators
    # must be replaced by a tiled / scalar-prefetch gather (PrefetchScalarGridSpec
    # + pl.Element index maps) so traffic is O(E*D) and the work can be gridded
    # across both v7x TensorCores; a single-block call is right at N,E <= 128.
    out_p = pl.pallas_call(
        kernel,
        out_shape=jax.ShapeDtypeStruct((n_pad, c_pad), f32),
        in_specs=[vmem] * 8 + [smem],
        out_specs=vmem,
    )(feat_p, wcat, a_eler, gsrc, gdst, gdst_t, wout_p, aout, pw)
    return out_p[:N, :nclass]


def nonlinear_gat_g_ref(feat, w_heads, attn_l_heads, attn_r_heads, w_out,
                        attn_l_out, attn_r_out, edge, p, s_f, neg_slope=0.2):
    """Pure-JAX reference mirroring the PyTorch eval forward."""
    src, dst = edge[0], edge[1]
    N = feat.shape[0]
    nheads = w_heads.shape[0]
    heads = []
    for i in range(nheads):
        h = feat @ w_heads[i]
        el = (h * attn_l_heads[i]).sum(-1)
        er = (h * attn_r_heads[i]).sum(-1)
        e = el[src] + er[dst]
        e = jnp.where(e > 0, e, neg_slope * e)
        em = jnp.exp(e - e.max())
        den = jnp.zeros((N,), jnp.float32).at[dst].add(em)
        a = em / den[dst]
        pw = jax.nn.sigmoid(p[0, i]) + s_f
        mu = h.min()
        pre_f = jnp.power(h - mu + 1e-6, pw)
        agg = jnp.zeros_like(h).at[dst].add(pre_f[src] * a[:, None])
        heads.append(jnp.power(agg + 1e-6, 1.0 / pw) + mu)          # bias = 0
    x = jnp.concatenate(heads, axis=1)
    h2 = x @ w_out
    el2 = (h2 * attn_l_out).sum(-1)
    er2 = (h2 * attn_r_out).sum(-1)
    e2 = el2[src] + er2[dst]
    e2 = jnp.where(e2 > 0, e2, neg_slope * e2)
    em2 = jnp.exp(e2 - e2.max())
    den2 = jnp.zeros((N,), jnp.float32).at[dst].add(em2)
    a2 = em2 / den2[dst]
    out = jnp.zeros_like(h2).at[dst].add(h2[src] * a2[:, None])     # bias = 0
    return jax.nn.log_softmax(jax.nn.elu(out), axis=1)


if __name__ == "__main__":
    N, E = 64, 128
    NFEAT, NHID, NCLASS, NHEADS = 16, 32, 8, 2
    ALPHA, S_F = 0.2, 1.0

    key = jax.random.PRNGKey(0)
    ks = jax.random.split(key, 9)
    gain = np.sqrt(2.0)                       # calculate_gain('relu')
    w_std = gain * np.sqrt(2.0 / (NFEAT + NHID))
    a_std = gain * np.sqrt(2.0 / (1 + NHID))
    wo_std = gain * np.sqrt(2.0 / (NHEADS * NHID + NCLASS))
    ao_std = 0.5 * gain * np.sqrt(2.0 / (1 + NCLASS))   # tame out-layer logits

    w_heads = jax.random.normal(ks[0], (NHEADS, NFEAT, NHID), jnp.float32) * w_std
    attn_l_heads = jax.random.normal(ks[1], (NHEADS, NHID), jnp.float32) * a_std
    attn_r_heads = jax.random.normal(ks[2], (NHEADS, NHID), jnp.float32) * a_std
    w_out = jax.random.normal(ks[3], (NHEADS * NHID, NCLASS), jnp.float32) * wo_std
    attn_l_out = jax.random.normal(ks[4], (NCLASS,), jnp.float32) * ao_std
    attn_r_out = jax.random.normal(ks[5], (NCLASS,), jnp.float32) * ao_std

    feat = jax.random.normal(ks[6], (N, NFEAT), jnp.float32) * 0.5
    p = jax.random.normal(ks[7], (1, NHEADS), jnp.float32)

    # edge[0] = sources (gathered), edge[1] = destinations (aggregated).
    # Every node appears as a destination -> no zero-in-degree nodes.
    src = jax.random.randint(ks[8], (E,), 0, N, dtype=jnp.int32)
    dst = jnp.arange(E, dtype=jnp.int32) % N
    edge = jnp.stack([src, dst], axis=0)

    out = jax.block_until_ready(
        nonlinear_gat_g(feat, w_heads, attn_l_heads, attn_r_heads, w_out,
                        attn_l_out, attn_r_out, edge, p, S_F, ALPHA))
    ref = jax.block_until_ready(
        nonlinear_gat_g_ref(feat, w_heads, attn_l_heads, attn_r_heads, w_out,
                            attn_l_out, attn_r_out, edge, p, S_F, ALPHA))

    assert out.shape == (N, NCLASS)
    assert bool(jnp.all(jnp.isfinite(out)))
    # tolerance covers bf16 MXU passes through two stacked attention layers
    np.testing.assert_allclose(np.asarray(out), np.asarray(ref),
                               rtol=5e-2, atol=5e-2)
    print("KERNEL_OK")
</pallas_src>

<mosaic_0001>
module attributes {stable_mosaic.version = 11 : i64} {
  func.func @kernel(%arg0: memref<128x128xf32, #tpu.memory_space<vmem>>, %arg1: memref<128x256xf32, #tpu.memory_space<vmem>>, %arg2: memref<256x4xf32, #tpu.memory_space<vmem>>, %arg3: memref<128x128xbf16, #tpu.memory_space<vmem>>, %arg4: memref<128x128xbf16, #tpu.memory_space<vmem>>, %arg5: memref<128x128xbf16, #tpu.memory_space<vmem>>, %arg6: memref<256x128xf32, #tpu.memory_space<vmem>>, %arg7: memref<128x2xf32, #tpu.memory_space<vmem>>, %arg8: memref<2xf32, #tpu.memory_space<smem>>, %arg9: memref<128x128xf32, #tpu.memory_space<vmem>>) attributes {dimension_semantics = [], scalar_prefetch = 0 : i64, scratch_operands = 0 : i64, tpu.core_type = #tpu.core_type<tc>} {
    %c0 = arith.constant 0 : index
    %c0_0 = arith.constant 0 : index
    %0 = vector.load %arg3[%c0, %c0_0] : memref<128x128xbf16, #tpu.memory_space<vmem>>, vector<128x128xbf16>
    %c0_1 = arith.constant 0 : index
    %c0_2 = arith.constant 0 : index
    %1 = vector.load %arg4[%c0_1, %c0_2] : memref<128x128xbf16, #tpu.memory_space<vmem>>, vector<128x128xbf16>
    %c0_3 = arith.constant 0 : index
    %c0_4 = arith.constant 0 : index
    %2 = vector.load %arg5[%c0_3, %c0_4] : memref<128x128xbf16, #tpu.memory_space<vmem>>, vector<128x128xbf16>
    %c0_5 = arith.constant 0 : index
    %c0_6 = arith.constant 0 : index
    %3 = vector.load %arg0[%c0_5, %c0_6] : memref<128x128xf32, #tpu.memory_space<vmem>>, vector<128x128xf32>
    %c0_7 = arith.constant 0 : index
    %c0_8 = arith.constant 0 : index
    %4 = vector.load %arg1[%c0_7, %c0_8] : memref<128x256xf32, #tpu.memory_space<vmem>>, vector<128x256xf32>
    %cst = arith.constant dense<0.000000e+00> : vector<128x256xf32>
    %5 = tpu.matmul %3, %4, %cst {dimension_numbers = #tpu.dot_dimension_numbers<[1], [0], [0], [1], [0, 0, 1, 1], [], []>} : vector<128x128xf32>, vector<128x256xf32>, vector<128x256xf32> -> vector<128x256xf32>
    %c0_9 = arith.constant 0 : index
    %c0_10 = arith.constant 0 : index
    %6 = vector.load %arg2[%c0_9, %c0_10] : memref<256x4xf32, #tpu.memory_space<vmem>>, vector<256x4xf32>
    %cst_11 = arith.constant dense<0.000000e+00> : vector<128x4xf32>
    %7 = tpu.matmul %5, %6, %cst_11 {dimension_numbers = #tpu.dot_dimension_numbers<[1], [0], [0], [1], [0, 0, 1, 1], [], []>} : vector<128x256xf32>, vector<256x4xf32>, vector<128x4xf32> -> vector<128x4xf32>
    %8 = vector.extract_strided_slice %7 {offsets = [0, 2], sizes = [128, 2], strides = [1, 1]} : vector<128x4xf32> to vector<128x2xf32>
    %9 = tpu.iota {dimensions = array<i32: 0>} : vector<128x128xi32>
    %10 = tpu.iota {dimensions = array<i32: 1>} : vector<128x128xi32>
    %c64_i32 = arith.constant 64 : i32
    %11 = vector.broadcast %c64_i32 : i32 to vector<128x128xi32>
    %12 = arith.cmpi slt, %9, %11 : vector<128x128xi32>
    %c32_i32 = arith.constant 32 : i32
    %13 = vector.broadcast %c32_i32 : i32 to vector<128x128xi32>
    %14 = arith.cmpi slt, %10, %13 : vector<128x128xi32>
    %15 = arith.andi %12, %14 : vector<128x128xi1>
    %c127_i32 = arith.constant 127 : i32
    %16 = vector.broadcast %c127_i32 : i32 to vector<128x128xi32>
    %17 = arith.cmpi eq, %10, %16 : vector<128x128xi32>
    %18 = vector.extract_strided_slice %5 {offsets = [0, 0], sizes = [128, 128], strides = [1, 1]} : vector<128x256xf32> to vector<128x128xf32>
    %19 = vector.extract_strided_slice %7 {offsets = [0, 0], sizes = [128, 1], strides = [1, 1]} : vector<128x4xf32> to vector<128x1xf32>
    %c0_12 = arith.constant 0 : index
    %20 = memref.load %arg8[%c0_12] : memref<2xf32, #tpu.memory_space<smem>>
    %cst_13 = arith.constant 1.000000e+00 : f32
    %21 = arith.divf %cst_13, %20 : f32
    %cst_14 = arith.constant 1.000000e+30 : f32
    %22 = vector.broadcast %cst_14 : f32 to vector<128x128xf32>
    %23 = arith.select %15, %18, %22 : vector<128x128xi1>, vector<128x128xf32>
    %24 = vector.shape_cast %23 : vector<128x128xf32> to vector<1x128x128xf32>
    %cst_15 = arith.constant dense<0x7F800000> : vector<1xf32>
    %25 = vector.multi_reduction <minimumf>, %24, %cst_15 [1, 2] : vector<1x128x128xf32> to vector<1xf32>
    %26 = vector.shape_cast %25 : vector<1xf32> to vector<1x1x1xf32>
    %27 = vector.extract %26[0, 0, 0] : f32 from vector<1x1x1xf32>
    %28 = vector.broadcast %27 : f32 to vector<128x128xf32>
    %29 = arith.subf %18, %28 : vector<128x128xf32>
    %cst_16 = arith.constant 9.99999997E-7 : f32
    %30 = vector.broadcast %cst_16 : f32 to vector<128x128xf32>
    %31 = arith.addf %29, %30 : vector<128x128xf32>
    %cst_17 = arith.constant 1.000000e+00 : f32
    %32 = vector.broadcast %cst_17 : f32 to vector<128x128xf32>
    %33 = arith.select %15, %31, %32 : vector<128x128xi1>, vector<128x128xf32>
    %34 = math.log %33 : vector<128x128xf32>
    %35 = vector.broadcast %20 : f32 to vector<128x128xf32>
    %36 = arith.mulf %35, %34 : vector<128x128xf32>
    %37 = math.exp %36 : vector<128x128xf32>
    %cst_18 = arith.constant 0.000000e+00 : f32
    %38 = vector.broadcast %cst_18 : f32 to vector<128x128xf32>
    %39 = arith.select %15, %37, %38 : vector<128x128xi1>, vector<128x128xf32>
    %40 = vector.shape_cast %19 : vector<128x1xf32> to vector<128x1xf32>
    %41 = vector.broadcast %40 : vector<128x1xf32> to vector<128x128xf32>
    %42 = arith.select %17, %41, %39 : vector<128x128xi1>, vector<128x128xf32>
    %43 = vector.extract_strided_slice %5 {offsets = [0, 128], sizes = [128, 128], strides = [1, 1]} : vector<128x256xf32> to vector<128x128xf32>
    %44 = vector.extract_strided_slice %7 {offsets = [0, 1], sizes = [128, 1], strides = [1, 1]} : vector<128x4xf32> to vector<128x1xf32>
    %c1 = arith.constant 1 : index
    %45 = memref.load %arg8[%c1] : memref<2xf32, #tpu.memory_space<smem>>
    %cst_19 = arith.constant 1.000000e+00 : f32
    %46 = arith.divf %cst_19, %45 : f32
    %cst_20 = arith.constant 1.000000e+30 : f32
    %47 = vector.broadcast %cst_20 : f32 to vector<128x128xf32>
    %48 = arith.select %15, %43, %47 : vector<128x128xi1>, vector<128x128xf32>
    %49 = vector.shape_cast %48 : vector<128x128xf32> to vector<1x128x128xf32>
    %cst_21 = arith.constant dense<0x7F800000> : vector<1xf32>
    %50 = vector.multi_reduction <minimumf>, %49, %cst_21 [1, 2] : vector<1x128x128xf32> to vector<1xf32>
    %51 = vector.shape_cast %50 : vector<1xf32> to vector<1x1x1xf32>
    %52 = vector.extract %51[0, 0, 0] : f32 from vector<1x1x1xf32>
    %53 = vector.broadcast %52 : f32 to vector<128x128xf32>
    %54 = arith.subf %43, %53 : vector<128x128xf32>
    %cst_22 = arith.constant 9.99999997E-7 : f32
    %55 = vector.broadcast %cst_22 : f32 to vector<128x128xf32>
    %56 = arith.addf %54, %55 : vector<128x128xf32>
    %cst_23 = arith.constant 1.000000e+00 : f32
    %57 = vector.broadcast %cst_23 : f32 to vector<128x128xf32>
    %58 = arith.select %15, %56, %57 : vector<128x128xi1>, vector<128x128xf32>
    %59 = math.log %58 : vector<128x128xf32>
    %60 = vector.broadcast %45 : f32 to vector<128x128xf32>
    %61 = arith.mulf %60, %59 : vector<128x128xf32>
    %62 = math.exp %61 : vector<128x128xf32>
    %cst_24 = arith.constant 0.000000e+00 : f32
    %63 = vector.broadcast %cst_24 : f32 to vector<128x128xf32>
    %64 = arith.select %15, %62, %63 : vector<128x128xi1>, vector<128x128xf32>
    %65 = vector.shape_cast %44 : vector<128x1xf32> to vector<128x1xf32>
    %66 = vector.broadcast %65 : vector<128x1xf32> to vector<128x128xf32>
    %67 = arith.select %17, %66, %64 : vector<128x128xi1>, vector<128x128xf32>
    %68 = tpu.concatenate %42, %67 in 1 : vector<128x128xf32>, vector<128x128xf32> -> vector<128x256xf32>
    %69 = arith.truncf %68 : vector<128x256xf32> to vector<128x256xbf16>
    %cst_25 = arith.constant dense<0.000000e+00> : vector<128x256xf32>
    %70 = tpu.matmul %0, %69, %cst_25 {dimension_numbers = #tpu.dot_dimension_numbers<[1], [0], [0], [1], [0, 0, 1, 1], [], []>} : vector<128x128xbf16>, vector<128x256xbf16>, vector<128x256xf32> -> vector<128x256xf32>
    %71 = arith.truncf %8 : vector<128x2xf32> to vector<128x2xbf16>
    %cst_26 = arith.constant dense<0.000000e+00> : vector<128x2xf32>
    %72 = tpu.matmul %1, %71, %cst_26 {dimension_numbers = #tpu.dot_dimension_numbers<[1], [0], [0], [1], [0, 0, 1, 1], [], []>} : vector<128x128xbf16>, vector<128x2xbf16>, vector<128x2xf32> -> vector<128x2xf32>
    %73 = vector.extract_strided_slice %70 {offsets = [0, 127], sizes = [128, 1], strides = [1, 1]} : vector<128x256xf32> to vector<128x1xf32>
    %74 = vector.extract_strided_slice %70 {offsets = [0, 255], sizes = [128, 1], strides = [1, 1]} : vector<128x256xf32> to vector<128x1xf32>
    %75 = tpu.concatenate %73, %74 in 1 : vector<128x1xf32>, vector<128x1xf32> -> vector<128x2xf32>
    %76 = arith.addf %75, %72 : vector<128x2xf32>
    %cst_27 = arith.constant 0.000000e+00 : f32
    %77 = vector.broadcast %cst_27 : f32 to vector<128x2xf32>
    %78 = arith.cmpf ogt, %76, %77 : vector<128x2xf32>
    %cst_28 = arith.constant 2.000000e-01 : f32
    %79 = vector.broadcast %cst_28 : f32 to vector<128x2xf32>
    %80 = arith.mulf %79, %76 : vector<128x2xf32>
    %81 = arith.select %78, %76, %80 : vector<128x2xi1>, vector<128x2xf32>
    %82 = vector.shape_cast %81 : vector<128x2xf32> to vector<1x128x2xf32>
    %cst_29 = arith.constant dense<0xFF800000> : vector<1xf32>
    %83 = vector.multi_reduction <maximumf>, %82, %cst_29 [1, 2] : vector<1x128x2xf32> to vector<1xf32>
    %84 = vector.shape_cast %83 : vector<1xf32> to vector<1x1x1xf32>
    %85 = vector.extract %84[0, 0, 0] : f32 from vector<1x1x1xf32>
    %86 = vector.broadcast %85 : f32 to vector<128x2xf32>
    %87 = arith.subf %81, %86 : vector<128x2xf32>
    %88 = math.exp %87 : vector<128x2xf32>
    %89 = arith.truncf %88 : vector<128x2xf32> to vector<128x2xbf16>
    %cst_30 = arith.constant dense<0.000000e+00> : vector<128x2xf32>
    %90 = tpu.matmul %2, %89, %cst_30 {dimension_numbers = #tpu.dot_dimension_numbers<[1], [0], [0], [1], [0, 0, 1, 1], [], []>} : vector<128x128xbf16>, vector<128x2xbf16>, vector<128x2xf32> -> vector<128x2xf32>
    %91 = arith.truncf %90 : vector<128x2xf32> to vector<128x2xbf16>
    %cst_31 = arith.constant dense<0.000000e+00> : vector<128x2xf32>
    %92 = tpu.matmul %1, %91, %cst_31 {dimension_numbers = #tpu.dot_dimension_numbers<[1], [0], [0], [1], [0, 0, 1, 1], [], []>} : vector<128x128xbf16>, vector<128x2xbf16>, vector<128x2xf32> -> vector<128x2xf32>
    %cst_32 = arith.constant 1.000000e-30 : f32
    %93 = vector.broadcast %cst_32 : f32 to vector<128x2xf32>
    %94 = arith.addf %92, %93 : vector<128x2xf32>
    %95 = tpu.reciprocal %94 {approx = true} : vector<128x2xf32> -> vector<128x2xf32>
    %96 = arith.mulf %88, %95 : vector<128x2xf32>
    %97 = tpu.iota {dimensions = array<i32: 1>} : vector<128x128xi32>
    %c32_i32_33 = arith.constant 32 : i32
    %98 = vector.broadcast %c32_i32_33 : i32 to vector<128x128xi32>
    %99 = arith.cmpi slt, %97, %98 : vector<128x128xi32>
    %100 = vector.extract_strided_slice %70 {offsets = [0, 0], sizes = [128, 128], strides = [1, 1]} : vector<128x256xf32> to vector<128x128xf32>
    %cst_34 = arith.constant 0.000000e+00 : f32
    %101 = vector.broadcast %cst_34 : f32 to vector<128x128xf32>
    %102 = arith.select %99, %100, %101 : vector<128x128xi1>, vector<128x128xf32>
    %103 = vector.extract_strided_slice %96 {offsets = [0, 0], sizes = [128, 1], strides = [1, 1]} : vector<128x2xf32> to vector<128x1xf32>
    %104 = vector.broadcast %103 : vector<128x1xf32> to vector<128x128xf32>
    %105 = arith.mulf %102, %104 : vector<128x128xf32>
    %106 = vector.extract_strided_slice %70 {offsets = [0, 128], sizes = [128, 128], strides = [1, 1]} : vector<128x256xf32> to vector<128x128xf32>
    %cst_35 = arith.constant 0.000000e+00 : f32
    %107 = vector.broadcast %cst_35 : f32 to vector<128x128xf32>
    %108 = arith.select %99, %106, %107 : vector<128x128xi1>, vector<128x128xf32>
    %109 = vector.extract_strided_slice %96 {offsets = [0, 1], sizes = [128, 1], strides = [1, 1]} : vector<128x2xf32> to vector<128x1xf32>
    %110 = vector.broadcast %109 : vector<128x1xf32> to vector<128x128xf32>
    %111 = arith.mulf %108, %110 : vector<128x128xf32>
    %112 = tpu.concatenate %105, %111 in 1 : vector<128x128xf32>, vector<128x128xf32> -> vector<128x256xf32>
    %113 = arith.truncf %112 : vector<128x256xf32> to vector<128x256xbf16>
    %cst_36 = arith.constant dense<0.000000e+00> : vector<128x256xf32>
    %114 = tpu.matmul %2, %113, %cst_36 {dimension_numbers = #tpu.dot_dimension_numbers<[1], [0], [0], [1], [0, 0, 1, 1], [], []>} : vector<128x128xbf16>, vector<128x256xbf16>, vector<128x256xf32> -> vector<128x256xf32>
    %115 = vector.extract_strided_slice %114 {offsets = [0, 0], sizes = [128, 128], strides = [1, 1]} : vector<128x256xf32> to vector<128x128xf32>
    %cst_37 = arith.constant 9.99999997E-7 : f32
    %116 = vector.broadcast %cst_37 : f32 to vector<128x128xf32>
    %117 = arith.addf %115, %116 : vector<128x128xf32>
    %118 = math.log %117 : vector<128x128xf32>
    %119 = vector.broadcast %21 : f32 to vector<128x128xf32>
    %120 = arith.mulf %119, %118 : vector<128x128xf32>
    %121 = math.exp %120 : vector<128x128xf32>
    %122 = vector.broadcast %27 : f32 to vector<128x128xf32>
    %123 = arith.addf %121, %122 : vector<128x128xf32>
    %cst_38 = arith.constant 0.000000e+00 : f32
    %124 = vector.broadcast %cst_38 : f32 to vector<128x128xf32>
    %125 = arith.select %15, %123, %124 : vector<128x128xi1>, vector<128x128xf32>
    %126 = vector.extract_strided_slice %114 {offsets = [0, 128], sizes = [128, 128], strides = [1, 1]} : vector<128x256xf32> to vector<128x128xf32>
    %cst_39 = arith.constant 9.99999997E-7 : f32
    %127 = vector.broadcast %cst_39 : f32 to vector<128x128xf32>
    %128 = arith.addf %126, %127 : vector<128x128xf32>
    %129 = math.log %128 : vector<128x128xf32>
    %130 = vector.broadcast %46 : f32 to vector<128x128xf32>
    %131 = arith.mulf %130, %129 : vector<128x128xf32>
    %132 = math.exp %131 : vector<128x128xf32>
    %133 = vector.broadcast %52 : f32 to vector<128x128xf32>
    %134 = arith.addf %132, %133 : vector<128x128xf32>
    %cst_40 = arith.constant 0.000000e+00 : f32
    %135 = vector.broadcast %cst_40 : f32 to vector<128x128xf32>
    %136 = arith.select %15, %134, %135 : vector<128x128xi1>, vector<128x128xf32>
    %137 = tpu.concatenate %125, %136 in 1 : vector<128x128xf32>, vector<128x128xf32> -> vector<128x256xf32>
    %c0_41 = arith.constant 0 : index
    %c0_42 = arith.constant 0 : index
    %138 = vector.load %arg6[%c0_41, %c0_42] : memref<256x128xf32, #tpu.memory_space<vmem>>, vector<256x128xf32>
    %cst_43 = arith.constant dense<0.000000e+00> : vector<128x128xf32>
    %139 = tpu.matmul %137, %138, %cst_43 {dimension_numbers = #tpu.dot_dimension_numbers<[1], [0], [0], [1], [0, 0, 1, 1], [], []>} : vector<128x256xf32>, vector<256x128xf32>, vector<128x128xf32> -> vector<128x128xf32>
    %c0_44 = arith.constant 0 : index
    %c0_45 = arith.constant 0 : index
    %140 = vector.load %arg7[%c0_44, %c0_45] : memref<128x2xf32, #tpu.memory_space<vmem>>, vector<128x2xf32>
    %cst_46 = arith.constant dense<0.000000e+00> : vector<128x2xf32>
    %141 = tpu.matmul %139, %140, %cst_46 {dimension_numbers = #tpu.dot_dimension_numbers<[1], [0], [0], [1], [0, 0, 1, 1], [], []>} : vector<128x128xf32>, vector<128x2xf32>, vector<128x2xf32> -> vector<128x2xf32>
    %142 = vector.extract_strided_slice %141 {offsets = [0, 0], sizes = [128, 1], strides = [1, 1]} : vector<128x2xf32> to vector<128x1xf32>
    %143 = vector.extract_strided_slice %141 {offsets = [0, 1], sizes = [128, 1], strides = [1, 1]} : vector<128x2xf32> to vector<128x1xf32>
    %144 = tpu.iota {dimensions = array<i32: 1>} : vector<128x128xi32>
    %c127_i32_47 = arith.constant 127 : i32
    %145 = vector.broadcast %c127_i32_47 : i32 to vector<128x128xi32>
    %146 = arith.cmpi eq, %144, %145 : vector<128x128xi32>
    %147 = vector.shape_cast %142 : vector<128x1xf32> to vector<128x1xf32>
    %148 = vector.broadcast %147 : vector<128x1xf32> to vector<128x128xf32>
    %149 = arith.select %146, %148, %139 : vector<128x128xi1>, vector<128x128xf32>
    %150 = arith.truncf %149 : vector<128x128xf32> to vector<128x128xbf16>
    %cst_48 = arith.constant dense<0.000000e+00> : vector<128x128xf32>
    %151 = tpu.matmul %0, %150, %cst_48 {dimension_numbers = #tpu.dot_dimension_numbers<[1], [0], [0], [1], [0, 0, 1, 1], [], []>} : vector<128x128xbf16>, vector<128x128xbf16>, vector<128x128xf32> -> vector<128x128xf32>
    %152 = arith.truncf %143 : vector<128x1xf32> to vector<128x1xbf16>
    %cst_49 = arith.constant dense<0.000000e+00> : vector<128x1xf32>
    %153 = tpu.matmul %1, %152, %cst_49 {dimension_numbers = #tpu.dot_dimension_numbers<[1], [0], [0], [1], [0, 0, 1, 1], [], []>} : vector<128x128xbf16>, vector<128x1xbf16>, vector<128x1xf32> -> vector<128x1xf32>
    %154 = vector.extract_strided_slice %151 {offsets = [0, 127], sizes = [128, 1], strides = [1, 1]} : vector<128x128xf32> to vector<128x1xf32>
    %155 = arith.addf %154, %153 : vector<128x1xf32>
    %cst_50 = arith.constant 0.000000e+00 : f32
    %156 = vector.broadcast %cst_50 : f32 to vector<128x1xf32>
    %157 = arith.cmpf ogt, %155, %156 : vector<128x1xf32>
    %cst_51 = arith.constant 2.000000e-01 : f32
    %158 = vector.broadcast %cst_51 : f32 to vector<128x1xf32>
    %159 = arith.mulf %158, %155 : vector<128x1xf32>
    %160 = arith.select %157, %155, %159 : vector<128x1xi1>, vector<128x1xf32>
    %161 = vector.shape_cast %160 : vector<128x1xf32> to vector<1x128x1xf32>
    %cst_52 = arith.constant dense<0xFF800000> : vector<1xf32>
    %162 = vector.multi_reduction <maximumf>, %161, %cst_52 [1, 2] : vector<1x128x1xf32> to vector<1xf32>
    %163 = vector.shape_cast %162 : vector<1xf32> to vector<1x1x1xf32>
    %164 = vector.extract %163[0, 0, 0] : f32 from vector<1x1x1xf32>
    %165 = vector.broadcast %164 : f32 to vector<128x1xf32>
    %166 = arith.subf %160, %165 : vector<128x1xf32>
    %167 = math.exp %166 : vector<128x1xf32>
    %168 = arith.truncf %167 : vector<128x1xf32> to vector<128x1xbf16>
    %cst_53 = arith.constant dense<0.000000e+00> : vector<128x1xf32>
    %169 = tpu.matmul %2, %168, %cst_53 {dimension_numbers = #tpu.dot_dimension_numbers<[1], [0], [0], [1], [0, 0, 1, 1], [], []>} : vector<128x128xbf16>, vector<128x1xbf16>, vector<128x1xf32> -> vector<128x1xf32>
    %170 = arith.truncf %169 : vector<128x1xf32> to vector<128x1xbf16>
    %cst_54 = arith.constant dense<0.000000e+00> : vector<128x1xf32>
    %171 = tpu.matmul %1, %170, %cst_54 {dimension_numbers = #tpu.dot_dimension_numbers<[1], [0], [0], [1], [0, 0, 1, 1], [], []>} : vector<128x128xbf16>, vector<128x1xbf16>, vector<128x1xf32> -> vector<128x1xf32>
    %cst_55 = arith.constant 1.000000e-30 : f32
    %172 = vector.broadcast %cst_55 : f32 to vector<128x1xf32>
    %173 = arith.addf %171, %172 : vector<128x1xf32>
    %174 = tpu.reciprocal %173 {approx = true} : vector<128x1xf32> -> vector<128x1xf32>
    %175 = arith.mulf %167, %174 : vector<128x1xf32>
    %176 = tpu.iota {dimensions = array<i32: 1>} : vector<128x128xi32>
    %c8_i32 = arith.constant 8 : i32
    %177 = vector.broadcast %c8_i32 : i32 to vector<128x128xi32>
    %178 = arith.cmpi slt, %176, %177 : vector<128x128xi32>
    %cst_56 = arith.constant 0.000000e+00 : f32
    %179 = vector.broadcast %cst_56 : f32 to vector<128x128xf32>
    %180 = arith.select %178, %151, %179 : vector<128x128xi1>, vector<128x128xf32>
    %181 = vector.broadcast %175 : vector<128x1xf32> to vector<128x128xf32>
    %182 = arith.mulf %180, %181 : vector<128x128xf32>
    %183 = arith.truncf %182 : vector<128x128xf32> to vector<128x128xbf16>
    %cst_57 = arith.constant dense<0.000000e+00> : vector<128x128xf32>
    %184 = tpu.matmul %2, %183, %cst_57 {dimension_numbers = #tpu.dot_dimension_numbers<[1], [0], [0], [1], [0, 0, 1, 1], [], []>} : vector<128x128xbf16>, vector<128x128xbf16>, vector<128x128xf32> -> vector<128x128xf32>
    %cst_58 = arith.constant 0.000000e+00 : f32
    %185 = vector.broadcast %cst_58 : f32 to vector<128x128xf32>
    %186 = arith.cmpf ogt, %184, %185 : vector<128x128xf32>
    %187 = math.exp %184 : vector<128x128xf32>
    %cst_59 = arith.constant 1.000000e+00 : f32
    %188 = vector.broadcast %cst_59 : f32 to vector<128x128xf32>
    %189 = arith.subf %187, %188 : vector<128x128xf32>
    %190 = arith.select %186, %184, %189 : vector<128x128xi1>, vector<128x128xf32>
    %c8_i32_60 = arith.constant 8 : i32
    %191 = vector.broadcast %c8_i32_60 : i32 to vector<128x128xi32>
    %192 = arith.cmpi slt, %144, %191 : vector<128x128xi32>
    %cst_61 = arith.constant -1.000000e+30 : f32
    %193 = vector.broadcast %cst_61 : f32 to vector<128x128xf32>
    %194 = arith.select %192, %190, %193 : vector<128x128xi1>, vector<128x128xf32>
    %cst_62 = arith.constant dense<0xFF800000> : vector<128xf32>
    %195 = vector.multi_reduction <maximumf>, %194, %cst_62 [1] : vector<128x128xf32> to vector<128xf32>
    %196 = vector.shape_cast %195 : vector<128xf32> to vector<128x1xf32>
    %197 = vector.broadcast %196 : vector<128x1xf32> to vector<128x128xf32>
    %198 = arith.subf %190, %197 : vector<128x128xf32>
    %199 = math.exp %198 : vector<128x128xf32>
    %cst_63 = arith.constant 0.000000e+00 : f32
    %200 = vector.broadcast %cst_63 : f32 to vector<128x128xf32>
    %201 = arith.select %192, %199, %200 : vector<128x128xi1>, vector<128x128xf32>
    %cst_64 = arith.constant dense<0.000000e+00> : vector<128xf32>
    %202 = vector.multi_reduction <add>, %201, %cst_64 [1] : vector<128x128xf32> to vector<128xf32>
    %203 = vector.shape_cast %202 : vector<128xf32> to vector<128x1xf32>
    %204 = math.log %203 : vector<128x1xf32>
    %205 = arith.addf %204, %196 : vector<128x1xf32>
    %206 = vector.broadcast %205 : vector<128x1xf32> to vector<128x128xf32>
    %207 = arith.subf %190, %206 : vector<128x128xf32>
    %cst_65 = arith.constant 0.000000e+00 : f32
    %208 = vector.broadcast %cst_65 : f32 to vector<128x128xf32>
    %209 = arith.select %192, %207, %208 : vector<128x128xi1>, vector<128x128xf32>
    %c0_66 = arith.constant 0 : index
    %c0_67 = arith.constant 0 : index
    %210 = vector.load %arg9[%c0_66, %c0_67] : memref<128x128xf32, #tpu.memory_space<vmem>>, vector<128x128xf32>
    tpu.vector_store %arg9[%c0_66, %c0_67], %209 {strides = array<i32>} : memref<128x128xf32, #tpu.memory_space<vmem>>, vector<128x128xf32>,
    return
  }
}

</mosaic_0001>

<bundles_post_ra>
// kernel: tpu_custom_call.1
= control target key start
LH: loop header
LB: loop body
LE: loop exit
PB: predicated region body
PF: predicated region fallthrough
CT: control target
= control target key end

     0   :  { %14 = vsyncpa [#allocation3], 0  ;;  %s8243_s0 = inlined_call_operand.vmem [shape: f32[128,128], index: 0, kind: input, shape index: {}]   ;;  %s8244_s1 = inlined_call_operand.vmem [shape: f32[128,256], index: 1, kind: input, shape index: {}]   ;;  %s8245_s2 = inlined_call_operand.vmem [shape: f32[256,4], index: 2, kind: input, shape index: {}]   ;;  %s8246_s3 = inlined_call_operand.hbm [shape: bf16[128,128], index: 3, kind: input, shape index: {}]   ;;  %s8247_s4 = inlined_call_operand.hbm [shape: bf16[128,128], index: 4, kind: input, shape index: {}]   ;;  %s8248_s5 = inlined_call_operand.hbm [shape: bf16[128,128], index: 5, kind: input, shape index: {}]   ;;  %s8249_s6 = inlined_call_operand.hbm [shape: f32[256,128], index: 6, kind: input, shape index: {}]   ;;  %s8250_s7 = inlined_call_operand.vmem [shape: f32[128,2], index: 7, kind: input, shape index: {}]   ;;  %s8251_s8 = inlined_call_operand.vmem [shape: f32[2], index: 8, kind: input, shape index: {}]   ;;  %s8252_s9 = inlined_call_operand.hbm [shape: f32[128,128], index: 9, kind: output, shape index: {}]  }
   0x1   :  { %15 = vsyncpa [#allocation7], 0 }
   0x2   :  { %16 = vsyncpa [#allocation10], 0 }
   0x3   :  { %17 = vsyncpa [#allocation5], 0 }
   0x4   :  { %18 = vsyncpa [#allocation4], 0  ;;  %s6060_s30 = smov [#allocation6]   ;;  %s6061_s11 = smov [#allocation2]  }
   0x5   :  { %s42_s10 = sshll.u32 %s6060_s30, 4  ;;  %s30_s12 = sshll.u32 %s6061_s11, 4  ;;  %s43_s10 = int_to_ptr.vmem [resolvable:$true] %s42_s10  ;;  %s6128_s12 = int_to_ptr.vmem [resolvable:$true] %s30_s12 }
   0x6   :  { %s5928_s15 = scalar_lea.hbm %s8247_s4, 1024 }
   0x7   :  { %p5929_p0 = scmp.ne.s32.totalorder %s8247_s4, %s5928_s15  ;;  %p5932_p1 = scmp.lt.u32.totalorder %s5928_s15, %s8247_s4 }
   0x9   :  { %p5934_p2 = pnand %p5932_p1, %p5929_p0 }
   0xb   :  { %5937 = shalt.err (!%p5934_p2)
}
   0xc   :  { %s5938_s20 = scalar_lea.vmem %s43_s10, 1024  ;;  %p5943_p4 = scmp.lt.s32.totalorder %s43_s10, %s43_s10 }
   0xd   :  { %p5939_p3 = scmp.ne.s32.totalorder %s43_s10, %s5938_s20  ;;  %p5944_p5 = scmp.lt.s32.totalorder %s5938_s20, %s5938_s20 }
   0xf   :  { %p5945_p6 = por %p5944_p5, %p5943_p4 }
  0x11   :  { %p5946_p7 = pnand %p5945_p6, %p5939_p3 }
  0x13   :  { %5949 = shalt.err (!%p5946_p7)
}
  0x14   :  { %s6062_s21 = smov 64   ;;  %s6063_s22 = smov 4  }
  0x15   :  { %48 = dma.hbm_to_vmem [thread:$0]  %s8247_s4, 1024, %s43_s10, [#allocation7], %s6062_s21, %s6062_s21, %s6063_s22  }
  0x16   :  { %s5950_s27 = scalar_lea.hbm %s8246_s3, 1024 }
  0x17   :  { %p5951_p8 = scmp.ne.s32.totalorder %s8246_s3, %s5950_s27  ;;  %p5954_p9 = scmp.lt.u32.totalorder %s5950_s27, %s8246_s3 }
  0x19   :  { %p5956_p10 = pnand %p5954_p9, %p5951_p8 }
  0x1b   :  { %5959 = shalt.err (!%p5956_p10)
}
  0x1c   :  { %s5960_s13 = scalar_lea.vmem %s6128_s12, 1024  ;;  %p5965_p12 = scmp.lt.s32.totalorder %s6128_s12, %s6128_s12 }
  0x1d   :  { %p5961_p11 = scmp.ne.s32.totalorder %s6128_s12, %s5960_s13  ;;  %p5966_p13 = scmp.lt.s32.totalorder %s5960_s13, %s5960_s13 }
  0x1f   :  { %p5967_p0 = por %p5966_p13, %p5965_p12 }
  0x21   :  { %p5968_p1 = pnand %p5967_p0, %p5961_p11 }
  0x23   :  { %5971 = shalt.err (!%p5968_p1)
}
  0x24   :  { %36 = dma.hbm_to_vmem [thread:$0]  %s8246_s3, 1024, %s6128_s12, [#allocation3], %s6062_s21, %s6062_s21, %s6063_s22  }
  0x25   :  { %s6064_s14 = smov [#allocation8]   ;;  %s6065_s16 = smov [#allocation9]  }
  0x26   :  { %s54_s15 = sshll.u32 %s6064_s14, 4  ;;  %s66_s17 = sshll.u32 %s6065_s16, 4  ;;  %s55_s15 = int_to_ptr.vmem [resolvable:$true] %s54_s15  ;;  %s6165_s17 = int_to_ptr.vmem [resolvable:$true] %s66_s17 }
  0x27   :  { %s5972_s20 = scalar_lea.hbm %s8248_s5, 1024 }
  0x28   :  { %p5973_p2 = scmp.ne.s32.totalorder %s8248_s5, %s5972_s20  ;;  %p5976_p3 = scmp.lt.u32.totalorder %s5972_s20, %s8248_s5 }
  0x2a   :  { %p5978_p4 = pnand %p5976_p3, %p5973_p2 }
  0x2c   :  { %5981 = shalt.err (!%p5978_p4)
}
  0x2d   :  { %s5982_s3 = scalar_lea.vmem %s55_s15, 1024  ;;  %p5987_p6 = scmp.lt.s32.totalorder %s55_s15, %s55_s15 }
  0x2e   :  { %p5983_p5 = scmp.ne.s32.totalorder %s55_s15, %s5982_s3  ;;  %p5988_p7 = scmp.lt.s32.totalorder %s5982_s3, %s5982_s3 }
  0x30   :  { %p5989_p8 = por %p5988_p7, %p5987_p6 }
  0x32   :  { %p5990_p9 = pnand %p5989_p8, %p5983_p5 }
  0x34   :  { %5993 = shalt.err (!%p5990_p9)
}
  0x35   :  { %60 = dma.hbm_to_vmem [thread:$0]  %s8248_s5, 1024, %s55_s15, [#allocation7], %s6062_s21, %s6062_s21, %s6063_s22  }
  0x36   :  { %s5994_s30 = scalar_lea.hbm %s8249_s6, 4096 }
  0x37   :  { %p5995_p10 = scmp.ne.s32.totalorder %s8249_s6, %s5994_s30  ;;  %p5998_p11 = scmp.lt.u32.totalorder %s5994_s30, %s8249_s6 }
  0x39   :  { %p6000_p12 = pnand %p5998_p11, %p5995_p10 }
  0x3b   :  { %6003 = shalt.err (!%p6000_p12)
}
  0x3c   :  { %s6004_s14 = scalar_lea.vmem %s6165_s17, 4096  ;;  %p6009_p0 = scmp.lt.s32.totalorder %s6165_s17, %s6165_s17 }
  0x3d   :  { %p6005_p13 = scmp.ne.s32.totalorder %s6165_s17, %s6004_s14  ;;  %p6010_p1 = scmp.lt.s32.totalorder %s6004_s14, %s6004_s14 }
  0x3f   :  { %p6011_p2 = por %p6010_p1, %p6009_p0 }
  0x41   :  { %p6012_p3 = pnand %p6011_p2, %p6005_p13 }
  0x43   :  { %6015 = shalt.err (!%p6012_p3)
}
  0x44   :  { %s6066_s5 = smov 128   ;;  %s6067_s21 = smov 8  }
  0x45   :  { %72 = dma.hbm_to_vmem [thread:$0]  %s8249_s6, 4096, %s6165_s17, [#allocation10], %s6066_s5, %s6066_s5, %s6067_s21  }
  0x46   :  { %s81_s19 = sshll.u32 %s8251_s8, 4  ;;  %s82_s19 = int_to_ptr.vmem [resolvable:$true] %s81_s19 }
  0x47   :  { %s6016_s20 = scalar_lea.vmem %s82_s19, 16  ;;  %p6021_p5 = scmp.lt.s32.totalorder %s82_s19, %s82_s19 }
  0x48   :  { %p6017_p4 = scmp.ne.s32.totalorder %s82_s19, %s6016_s20  ;;  %p6022_p6 = scmp.lt.s32.totalorder %s6016_s20, %s6016_s20 }
  0x4a   :  { %p6023_p7 = por %p6022_p6, %p6021_p5 }
  0x4c   :  { %p6024_p8 = pnand %p6023_p7, %p6017_p4 }
  0x4e   :  { %6027 = shalt.err (!%p6024_p8)
}
  0x4f   :  { %s6068_s23 = smov [#allocation11]  }
  0x50   :  { %84 = dma.vmem_to_smem %s82_s19, 16, %s6068_s23, [#allocation5]  }
  0x51   :  { %6050 = dma.done.wait [#allocation3], 1024  }
  0x52   :  { %6051 = vsyncadd [#allocation3], 4294966272 }
  0x53   :  { %6052 = dma.done.wait [#allocation7], 2048  }
  0x54   :  { %6053 = vsyncadd [#allocation7], 4294965248 }
  0x55   :  { %6054 = dma.done.wait [#allocation10], 4096  }
  0x56   :  { %6055 = vsyncadd [#allocation10], 4294963200 }
  0x57   :  { %6056 = dma.done.wait [#allocation5], 16  }
  0x58   :  { %6057 = vsyncadd [#allocation5], 4294967280 }
  0x59   :  { %100 = sfence }
  0x5a   :  { %v167_v0 = vld [vmem:[%s8244_s1 + $0x8] sm:$0xff]  ;;  %v169_v1 = vld [vmem:[%s8244_s1 + $0x18] sm:$0xff]  ;;  %v166_v2 = vld [vmem:[%s8244_s1] sm:$0xff]  ;;  %v8253_v7 = vmov 0.0   ;;  %s6072_s13 = smov 126   ;;  %s6073_s15 = smov 1  }
  0x5b   :  { %v5194_v3 = vpack.c.bf16 %v169_v1, %v167_v0  ;;  %v168_v4 = vld [vmem:[%s8244_s1 + $0x10] sm:$0xff]  ;;  %v171_v5 = vld [vmem:[%s8244_s1 + $0x28] sm:$0xff]  ;;  %v173_v6 = vld [vmem:[%s8244_s1 + $0x38] sm:$0xff]  ;;  %262 = vmatprep.mubr.f32.mxu0 %v8253_v7  ;;  %s6074_s16 = smov 2   ;;  %vm1635_vm3 = vcmask 7168   ;;  %vm1716_vm6 = vcmask 15360  }
  0x5c   :  { %v5196_v8 = vpack.c.bf16 %v168_v4, %v166_v2  ;;  %v5198_v9 = vpack.c.bf16 %v173_v6, %v171_v5  ;;  %v170_v10 = vld [vmem:[%s8244_s1 + $0x20] sm:$0xff]  ;;  %v172_v11 = vld [vmem:[%s8244_s1 + $0x30] sm:$0xff]  ;;  %v175_v12 = vld [vmem:[%s8244_s1 + $0x48] sm:$0xff] }
  0x5d   :  { %5195 = vmatprep.subr.bf16.mxu0 %v5194_v3  ;;  %v177_v13 = vld [vmem:[%s8244_s1 + $0x58] sm:$0xff]  ;;  %v5200_v14 = vpack.c.bf16 %v172_v11, %v170_v10  ;;  %v174_v16 = vld [vmem:[%s8244_s1 + $0x40] sm:$0xff]  ;;  %v176_v17 = vld [vmem:[%s8244_s1 + $0x50] sm:$0xff] }
  0x5e   :  { %5197 = vmatpush1.bf16.msra.mxu0 %v5196_v8  ;;  %v5202_v15 = vpack.c.bf16 %v177_v13, %v175_v12  ;;  %v179_v18 = vld [vmem:[%s8244_s1 + $0x68] sm:$0xff]  ;;  %v181_v19 = vld [vmem:[%s8244_s1 + $0x78] sm:$0xff]  ;;  %v5204_v20 = vpack.c.bf16 %v176_v17, %v174_v16  ;;  %v178_v22 = vld [vmem:[%s8244_s1 + $0x60] sm:$0xff] }
  0x5f   :  { %5199 = vmatprep.subr.bf16.mxu0 %v5198_v9  ;;  %v5206_v21 = vpack.c.bf16 %v181_v19, %v179_v18  ;;  %v180_v23 = vld [vmem:[%s8244_s1 + $0x70] sm:$0xff]  ;;  %v183_v24 = vld [vmem:[%s8244_s1 + $0x88] sm:$0xff]  ;;  %v185_v25 = vld [vmem:[%s8244_s1 + $0x98] sm:$0xff] }
  0x60   :  { %v5208_v26 = vpack.c.bf16 %v180_v23, %v178_v22  ;;  %v5210_v27 = vpack.c.bf16 %v185_v25, %v183_v24  ;;  %v182_v28 = vld [vmem:[%s8244_s1 + $0x80] sm:$0xff]  ;;  %v184_v29 = vld [vmem:[%s8244_s1 + $0x90] sm:$0xff]  ;;  %v187_v30 = vld [vmem:[%s8244_s1 + $0xa8] sm:$0xff] }
  0x61   :  { %v189_v31 = vld [vmem:[%s8244_s1 + $0xb8] sm:$0xff]  ;;  %v186_v32 = vld [vmem:[%s8244_s1 + $0xa0] sm:$0xff]  ;;  %v188_v33 = vld [vmem:[%s8244_s1 + $0xb0] sm:$0xff]  ;;  %v5212_v34 = vpack.c.bf16 %v184_v29, %v182_v28 }
  0x62   :  { %5201 = vmatpush1.bf16.msra.mxu0 %v5200_v14  ;;  %v191_v35 = vld [vmem:[%s8244_s1 + $0xc8] sm:$0xff]  ;;  %v193_v36 = vld [vmem:[%s8244_s1 + $0xd8] sm:$0xff]  ;;  %v375_v37 = vld [vmem:[%s8245_s2 + $0x80] sm:$0xff]  ;;  %v5214_v40 = vpack.c.bf16 %v189_v31, %v187_v30  ;;  %v5216_v51 = vpack.c.bf16 %v188_v33, %v186_v32 }
  0x63   :  { %5203 = vmatprep.subr.bf16.mxu0 %v5202_v15  ;;  %v376_v38 = vld [vmem:[%s8245_s2 + $0x88] sm:$0xff]  ;;  %v359_v39 = vld [vmem:[%s8245_s2] sm:$0xff]  ;;  %v377_v43 = vld [vmem:[%s8245_s2 + $0x90] sm:$0xff]  ;;  %v5218_v55 = vpack.c.bf16 %v193_v36, %v191_v35 }
  0x64   :  { %v5226_v41 = vpack.c.bf16 %v376_v38, %v375_v37  ;;  %v360_v42 = vld [vmem:[%s8245_s2 + $0x8] sm:$0xff]  ;;  %v378_v44 = vld [vmem:[%s8245_s2 + $0x98] sm:$0xff]  ;;  %v361_v47 = vld [vmem:[%s8245_s2 + $0x10] sm:$0xff] }
  0x65   :  { %v5228_v45 = vpack.c.bf16 %v360_v42, %v359_v39  ;;  %v5230_v46 = vpack.c.bf16 %v378_v44, %v377_v43  ;;  %v362_v48 = vld [vmem:[%s8245_s2 + $0x18] sm:$0xff]  ;;  %v379_v49 = vld [vmem:[%s8245_s2 + $0xa0] sm:$0xff]  ;;  %v380_v50 = vld [vmem:[%s8245_s2 + $0xa8] sm:$0xff] }
  0x66   :  { %5205 = vmatpush1.bf16.msra.mxu0 %v5204_v20  ;;  %5227 = vmatprep.subr.bf16.mxu1 %v5226_v41  ;;  %v190_v52 = vld [vmem:[%s8244_s1 + $0xc0] sm:$0xff]  ;;  %v192_v53 = vld [vmem:[%s8244_s1 + $0xd0] sm:$0xff]  ;;  %v5232_v54 = vpack.c.bf16 %v362_v48, %v361_v47  ;;  %v195_v56 = vld [vmem:[%s8244_s1 + $0xe8] sm:$0xff]  ;;  %v5234_v57 = vpack.c.bf16 %v380_v50, %v379_v49 }
  0x67   :  { %5207 = vmatprep.subr.bf16.mxu0 %v5206_v21  ;;  %5229 = vmatpush3.bf16.msra.mxu1 %v5228_v45  ;;  %v363_v58 = vld [vmem:[%s8245_s2 + $0x20] sm:$0xff]  ;;  %v364_v59 = vld [vmem:[%s8245_s2 + $0x28] sm:$0xff]  ;;  %v197_v60 = vld [vmem:[%s8244_s1 + $0xf8] sm:$0xff]  ;;  %v5220_v63 = vpack.c.bf16 %v192_v53, %v190_v52 }
  0x68   :  { %5231 = vmatprep.subr.bf16.mxu1 %v5230_v46  ;;  %v381_v61 = vld [vmem:[%s8245_s2 + $0xb0] sm:$0xff]  ;;  %v382_v62 = vld [vmem:[%s8245_s2 + $0xb8] sm:$0xff]  ;;  %v194_v0 = vld [vmem:[%s8244_s1 + $0xe0] sm:$0xff]  ;;  %v5236_v2 = vpack.c.bf16 %v364_v59, %v363_v58  ;;  %v5222_v4 = vpack.c.bf16 %v197_v60, %v195_v56 }
  0x69   :  { %v196_v1 = vld [vmem:[%s8244_s1 + $0xf0] sm:$0xff]  ;;  %v5238_v5 = vpack.c.bf16 %v382_v62, %v381_v61  ;;  %v366_v6 = vld [vmem:[%s8245_s2 + $0x38] sm:$0xff]  ;;  %v383_v8 = vld [vmem:[%s8245_s2 + $0xc0] sm:$0xff] }
  0x6a   :  { %5209 = vmatpush1.bf16.msra.mxu0 %v5208_v26  ;;  %v365_v3 = vld [vmem:[%s8245_s2 + $0x30] sm:$0xff]  ;;  %v384_v9 = vld [vmem:[%s8245_s2 + $0xc8] sm:$0xff]  ;;  %v367_v10 = vld [vmem:[%s8245_s2 + $0x40] sm:$0xff]  ;;  %v5224_v12 = vpack.c.bf16 %v196_v1, %v194_v0 }
  0x6b   :  { %5211 = vmatprep.subr.bf16.mxu0 %v5210_v27  ;;  %5233 = vmatpush3.bf16.msra.mxu1 %v5232_v54  ;;  %v368_v11 = vld [vmem:[%s8245_s2 + $0x48] sm:$0xff]  ;;  %v5240_v13 = vpack.c.bf16 %v366_v6, %v365_v3  ;;  %v385_v14 = vld [vmem:[%s8245_s2 + $0xd0] sm:$0xff]  ;;  %v386_v15 = vld [vmem:[%s8245_s2 + $0xd8] sm:$0xff]  ;;  %v5242_v16 = vpack.c.bf16 %v384_v9, %v383_v8  ;;  %v553_v54 = vlaneseq }
  0x6c   :  { %5235 = vmatprep.subr.bf16.mxu1 %v5234_v57  ;;  %v150_v17 = vld [vmem:[%s8243_s0] sm:$0xff]  ;;  %v369_v18 = vld [vmem:[%s8245_s2 + $0x50] sm:$0xff]  ;;  %v370_v19 = vld [vmem:[%s8245_s2 + $0x58] sm:$0xff]  ;;  %v5244_v20 = vpack.c.bf16 %v368_v11, %v367_v10  ;;  %v5246_v23 = vpack.c.bf16 %v386_v15, %v385_v14 }
  0x6d   :  { %v387_v21 = vld [vmem:[%s8245_s2 + $0xe0] sm:$0xff]  ;;  %v388_v22 = vld [vmem:[%s8245_s2 + $0xe8] sm:$0xff]  ;;  %v5248_v27 = vpack.c.bf16 %v370_v19, %v369_v18  ;;  %v389_v28 = vld [vmem:[%s8245_s2 + $0xf0] sm:$0xff]  ;;  %v6477_v57 = vand.u32 127, %v553_v54 }
  0x6e   :  { %5213 = vmatpush1.bf16.msra.mxu0 %v5212_v34  ;;  %v151_v24 = vld [vmem:[%s8243_s0 + $0x8] sm:$0xff]  ;;  %v371_v25 = vld [vmem:[%s8245_s2 + $0x60] sm:$0xff]  ;;  %v390_v29 = vld [vmem:[%s8245_s2 + $0xf8] sm:$0xff]  ;;  %v5250_v30 = vpack.c.bf16 %v388_v22, %v387_v21 }
  0x6f   :  { %5215 = vmatprep.subr.bf16.mxu0 %v5214_v40  ;;  %5237 = vmatpush3.bf16.msra.mxu1 %v5236_v2  ;;  %v372_v26 = vld [vmem:[%s8245_s2 + $0x68] sm:$0xff]  ;;  %v152_v31 = vld [vmem:[%s8243_s0 + $0x10] sm:$0xff]  ;;  %v5254_v33 = vpack.c.bf16 %v390_v29, %v389_v28  ;;  %v153_v34 = vld [vmem:[%s8243_s0 + $0x18] sm:$0xff]  ;;  %vm571_vm0 = vcmp.lt.s32.totalorder %v6477_v57, 32  ;;  %vm588_vm1 = vcmp.eq.s32.totalorder %v6477_v57, 127 }
  0x70   :  { %5239 = vmatprep.subr.bf16.mxu1 %v5238_v5  ;;  %v5252_v32 = vpack.c.bf16 %v372_v26, %v371_v25  ;;  %v154_v35 = vld [vmem:[%s8243_s0 + $0x20] sm:$0xff]  ;;  %v155_v36 = vld [vmem:[%s8243_s0 + $0x28] sm:$0xff]  ;;  %v156_v37 = vld [vmem:[%s8243_s0 + $0x30] sm:$0xff] }
  0x71   :  { %v157_v38 = vld [vmem:[%s8243_s0 + $0x38] sm:$0xff]  ;;  %v158_v39 = vld [vmem:[%s8243_s0 + $0x40] sm:$0xff]  ;;  %v159_v40 = vld [vmem:[%s8243_s0 + $0x48] sm:$0xff] }
  0x72   :  { %5217 = vmatpush1.bf16.msra.mxu0 %v5216_v51  ;;  %v160_v41 = vld [vmem:[%s8243_s0 + $0x50] sm:$0xff]  ;;  %v161_v42 = vld [vmem:[%s8243_s0 + $0x58] sm:$0xff]  ;;  %v162_v43 = vld [vmem:[%s8243_s0 + $0x60] sm:$0xff] }
  0x73   :  { %5219 = vmatprep.subr.bf16.mxu0 %v5218_v55  ;;  %5241 = vmatpush3.bf16.msra.mxu1 %v5240_v13  ;;  %v163_v44 = vld [vmem:[%s8243_s0 + $0x68] sm:$0xff]  ;;  %v164_v45 = vld [vmem:[%s8243_s0 + $0x70] sm:$0xff]  ;;  %v165_v46 = vld [vmem:[%s8243_s0 + $0x78] sm:$0xff]  ;;  %s589_s0 = sld [smem:[#allocation11]] }
  0x74   :  { %5243 = vmatprep.subr.bf16.mxu1 %v5242_v16  ;;  %v373_v47 = vld [vmem:[%s8245_s2 + $0x70] sm:$0xff]  ;;  %v374_v48 = vld [vmem:[%s8245_s2 + $0x78] sm:$0xff]  ;;  %s4481_s2 = sld [smem:[#allocation11 + $0x1]]  ;;  %vm6778_vm2 = vmpackc.low %vm588_vm1, %vm588_vm1 }
  0x75   :  { %v5256_v49 = vpack.c.bf16 %v374_v48, %v373_v47 }
  0x76   :  { %5221 = vmatpush1.bf16.msra.mxu0 %v5220_v63 }
  0x77   :  { %5223 = vmatprep.subr.bf16.mxu0 %v5222_v4  ;;  %5245 = vmatpush3.bf16.msra.mxu1 %v5244_v20 }
  0x78   :  { %5247 = vmatprep.subr.bf16.mxu1 %v5246_v23 }
  0x7a   :  { %5225 = vmatpush1.bf16.msra.mxu0 %v5224_v12 }
  0x7b   :  { %5249 = vmatpush3.bf16.msra.mxu1 %v5248_v27 }
  0x7c   :  { %5251 = vmatprep.subr.bf16.mxu1 %v5250_v30 }
  0x7d   :  { %263 = vmatmul.mubr.f32.vlgmr.msra.gmra.mrb[0].mxu0 %v150_v17 }
  0x7e   :  { %268 = vmatprep.mubr.f32.mxu0 %v8253_v7 }
  0x7f   :  { %5253 = vmatpush3.bf16.msra.mxu1 %v5252_v32 }
  0x80   :  { %5255 = vmatprep.subr.bf16.mxu1 %v5254_v33 }
  0x81   :  { %269 = vmatmul.mubr.f32.gmra.mrb[2].mxu0 %v151_v24 }
  0x82   :  { %274 = vmatprep.mubr.f32.mxu0 %v8253_v7 }
  0x83   :  { %5257 = vmatpush3.bf16.msra.mxu1 %v5256_v49 }
  0x85   :  { %275 = vmatmul.mubr.f32.gmra.mrb[4].mxu0 %v152_v31 }
  0x86   :  { %280 = vmatprep.mubr.f32.mxu0 %v8253_v7 }
  0x89   :  { %281 = vmatmul.mubr.f32.gmra.mrb[6].mxu0 %v153_v34 }
  0x8a   :  { %286 = vmatprep.mubr.f32.mxu0 %v8253_v7 }
  0x8d   :  { %287 = vmatmul.mubr.f32.gmra.mrb[8].mxu0 %v154_v35 }
  0x8e   :  { %292 = vmatprep.mubr.f32.mxu0 %v8253_v7 }
  0x91   :  { %293 = vmatmul.mubr.f32.gmra.mrb[10].mxu0 %v155_v36 }
  0x92   :  { %298 = vmatprep.mubr.f32.mxu0 %v8253_v7 }
  0x95   :  { %299 = vmatmul.mubr.f32.gmra.mrb[12].mxu0 %v156_v37 }
  0x96   :  { %304 = vmatprep.mubr.f32.mxu0 %v8253_v7 }
  0x99   :  { %305 = vmatmul.mubr.f32.gmra.mrb[14].mxu0 %v157_v38 }
  0x9a   :  { %310 = vmatprep.mubr.f32.mxu0 %v8253_v7 }
  0x9d   :  { %311 = vmatmul.mubr.f32.gmra.mrb[16].mxu0 %v158_v39 }
  0x9e   :  { %316 = vmatprep.mubr.f32.mxu0 %v8253_v7 }
  0xa1   :  { %317 = vmatmul.mubr.f32.gmra.mrb[18].mxu0 %v159_v40 }
  0xa2   :  { %322 = vmatprep.mubr.f32.mxu0 %v8253_v7 }
  0xa5   :  { %323 = vmatmul.mubr.f32.gmra.mrb[20].mxu0 %v160_v41 }
  0xa6   :  { %328 = vmatprep.mubr.f32.mxu0 %v8253_v7 }
  0xa9   :  { %329 = vmatmul.mubr.f32.gmra.mrb[22].mxu0 %v161_v42 }
  0xaa   :  { %334 = vmatprep.mubr.f32.mxu0 %v8253_v7 }
  0xad   :  { %335 = vmatmul.mubr.f32.gmra.mrb[24].mxu0 %v162_v43 }
  0xae   :  { %340 = vmatprep.mubr.f32.mxu0 %v8253_v7 }
  0xb1   :  { %341 = vmatmul.mubr.f32.gmra.mrb[26].mxu0 %v163_v44 }
  0xb2   :  { %346 = vmatprep.mubr.f32.mxu0 %v8253_v7 }
  0xb5   :  { %347 = vmatmul.mubr.f32.gmra.mrb[28].mxu0 %v164_v45 }
  0xb6   :  { %352 = vmatprep.mubr.f32.mxu0 %v8253_v7 }
  0xb9   :  { %353 = vmatmul.mubr.f32.gmra.mrb[30].mxu0 %v165_v46 }
 0x150   :  { %v6461_v50 = vpop.f32.mrb[0].mxu0 }
 0x151   :  { %v6463_v51 = vpop.f32.mrb[1].mxu0  ;;  %v593_v61 = vsel %vm571_vm0, %v6461_v50, 1e+30 }
 0x152   :  { %455 = vmatprep.mubr.f32.mxu1 %v6463_v51  ;;  %v879_v0 = vsel %vm571_vm0, %v6463_v51, 1e+30 }
 0x153   :  { %456 = vmatmul.mubr.f32.vlgmr.msra.gmra.mrb[0].mxu1 %v6461_v50 }
 0x154   :  { %v6467_v52 = vpop.f32.mrb[2].mxu0 }
 0x155   :  { %v6469_v53 = vpop.f32.mrb[3].mxu0  ;;  %v594_v5 = vsel %vm571_vm0, %v6467_v52, 1e+30 }
 0x156   :  { %460 = vmatprep.mubr.f32.mxu1 %v6469_v53  ;;  %v880_v9 = vsel %vm571_vm0, %v6469_v53, 1e+30 }
 0x157   :  { %461 = vmatmul.mubr.f32.gmra.mrb[2].mxu1 %v6467_v52 }
 0x158   :  { %v6473_v55 = vpop.f32.mrb[4].mxu0 }
 0x159   :  { %v6475_v56 = vpop.f32.mrb[5].mxu0  ;;  %v595_v13 = vsel %vm571_vm0, %v6473_v55, 1e+30 }
 0x15a   :  { %465 = vmatprep.mubr.f32.mxu1 %v6475_v56  ;;  %v881_v16 = vsel %vm571_vm0, %v6475_v56, 1e+30 }
 0x15b   :  { %466 = vmatmul.mubr.f32.gmra.mrb[4].mxu1 %v6473_v55 }
 0x15c   :  { %v6481_v58 = vpop.f32.mrb[6].mxu0 }
 0x15d   :  { %v6483_v59 = vpop.f32.mrb[7].mxu0  ;;  %v596_v31 = vsel %vm571_vm0, %v6481_v58, 1e+30 }
 0x15e   :  { %470 = vmatprep.mubr.f32.mxu1 %v6483_v59  ;;  %v882_v35 = vsel %vm571_vm0, %v6483_v59, 1e+30 }
 0x15f   :  { %471 = vmatmul.mubr.f32.gmra.mrb[6].mxu1 %v6481_v58 }
 0x160   :  { %v6488_v60 = vpop.f32.mrb[8].mxu0 }
 0x161   :  { %v597_v62 = vsel %vm571_vm0, %v6488_v60, 1e+30  ;;  %v6496_v63 = vpop.f32.mrb[9].mxu0 }
 0x162   :  { %v609_v1 = vmin.f32 %v593_v61, %v597_v62  ;;  %v883_v2 = vsel %vm571_vm0, %v6496_v63, 1e+30  ;;  %475 = vmatprep.mubr.f32.mxu1 %v6496_v63 }
 0x163   :  { %v895_v3 = vmin.f32 %v879_v0, %v883_v2  ;;  %476 = vmatmul.mubr.f32.gmra.mrb[8].mxu1 %v6488_v60 }
 0x164   :  { %v6506_v4 = vpop.f32.mrb[10].mxu0  ;;  %v613_v12 = vmin.f32 %v609_v1, 1e+30 }
 0x165   :  { %v598_v6 = vsel %vm571_vm0, %v6506_v4, 1e+30  ;;  %v6514_v8 = vpop.f32.mrb[11].mxu0  ;;  %v899_v14 = vmin.f32 %v895_v3, 1e+30 }
 0x166   :  { %v610_v10 = vmin.f32 %v594_v5, %v598_v6  ;;  %v884_v11 = vsel %vm571_vm0, %v6514_v8, 1e+30  ;;  %480 = vmatprep.mubr.f32.mxu1 %v6514_v8  ;;  %v617_v24 = vmin.f32 %v613_v12, 1e+30 }
 0x167   :  { %v896_v15 = vmin.f32 %v880_v9, %v884_v11  ;;  %481 = vmatmul.mubr.f32.gmra.mrb[10].mxu1 %v6506_v4  ;;  %v903_v27 = vmin.f32 %v899_v14, 1e+30 }
 0x168   :  { %v6530_v17 = vpop.f32.mrb[12].mxu0  ;;  %v614_v18 = vmin.f32 %v610_v10, 1e+30 }
 0x169   :  { %v900_v19 = vmin.f32 %v896_v15, 1e+30  ;;  %v599_v20 = vsel %vm571_vm0, %v6530_v17, 1e+30  ;;  %v6535_v21 = vpop.f32.mrb[13].mxu0 }
 0x16a   :  { %v611_v22 = vmin.f32 %v595_v13, %v599_v20  ;;  %v885_v23 = vsel %vm571_vm0, %v6535_v21, 1e+30  ;;  %485 = vmatprep.mubr.f32.mxu1 %v6535_v21  ;;  %v618_v25 = vmin.f32 %v614_v18, 1e+30  ;;  %v6560_v13 = vstv %s589_s0 }
 0x16b   :  { %v897_v26 = vmin.f32 %v881_v16, %v885_v23  ;;  %486 = vmatmul.mubr.f32.gmra.mrb[12].mxu1 %v6530_v17  ;;  %v904_v28 = vmin.f32 %v900_v19, 1e+30  ;;  %5548 = vrcp.f32 %v6560_v13  ;;  %v8255_v20 = vmov 1  }
 0x16c   :  { %v6542_v29 = vpop.f32.mrb[14].mxu0  ;;  %v621_v30 = vmin.f32 %v617_v24, %v618_v25  ;;  %v615_v38 = vmin.f32 %v611_v22, 1e+30  ;;  %5368 = vset.pattern.permute.xlu1 %v8255_v20  ;;  %5380 = vset.pattern.permute.xlu0 %v8255_v20  ;;  %v8257_v22 = vmov 0   ;;  %v6566_v23 = vstv %s4481_s2 }
 0x16d   :  { %v600_v32 = vsel %vm571_vm0, %v6542_v29, 1e+30  ;;  %v6550_v33 = vpop.f32.mrb[15].mxu0  ;;  %v907_v34 = vmin.f32 %v903_v27, %v904_v28  ;;  %v901_v39 = vmin.f32 %v897_v26, 1e+30  ;;  %1241 = vmatprep.mubr.bf16.mxu0 %v8257_v22  ;;  %5550 = vrcp.f32 %v6566_v23 }
 0x16e   :  { %v612_v36 = vmin.f32 %v596_v31, %v600_v32  ;;  %v886_v37 = vsel %vm571_vm0, %v6550_v33, 1e+30  ;;  %490 = vmatprep.mubr.f32.mxu1 %v6550_v33  ;;  %v619_v45 = vmin.f32 %v615_v38, 1e+30 }
 0x16f   :  { %v898_v40 = vmin.f32 %v882_v35, %v886_v37  ;;  %491 = vmatmul.mubr.f32.gmra.mrb[14].mxu1 %v6542_v29  ;;  %v905_v47 = vmin.f32 %v901_v39, 1e+30 }
 0x170   :  { %v312_v41 = vpop.f32.mrb[16].mxu0  ;;  %v616_v42 = vmin.f32 %v612_v36, 1e+30 }
 0x171   :  { %v902_v43 = vmin.f32 %v898_v40, 1e+30  ;;  %v314_v44 = vpop.f32.mrb[17].mxu0 }
 0x172   :  { %495 = vmatprep.mubr.f32.mxu1 %v314_v44  ;;  %v620_v46 = vmin.f32 %v616_v42, 1e+30 }
 0x173   :  { %496 = vmatmul.mubr.f32.gmra.mrb[16].mxu1 %v312_v41  ;;  %v906_v48 = vmin.f32 %v902_v43, 1e+30 }
 0x174   :  { %v318_v49 = vpop.f32.mrb[18].mxu0  ;;  %v622_v54 = vmin.f32 %v619_v45, %v620_v46 }
 0x175   :  { %v320_v61 = vpop.f32.mrb[19].mxu0  ;;  %v908_v62 = vmin.f32 %v905_v47, %v906_v48  ;;  %v5549_v19 = vpop.eup %5548 }
 0x176   :  { %500 = vmatprep.mubr.f32.mxu1 %v320_v61  ;;  %v623_v0 = vmin.f32 %v621_v30, %v622_v54  ;;  %5338 = vpush %v5549_v19 }
 0x177   :  { %501 = vmatmul.mubr.f32.gmra.mrb[18].mxu1 %v318_v49  ;;  %v909_v1 = vmin.f32 %v907_v34, %v908_v62  ;;  %v5551_v36 = vpop.eup %5550 }
 0x178   :  { %624 = vmin.xlane.f32.xlu0 %v623_v0  ;;  %v324_v2 = vpop.f32.mrb[20].mxu0 }
 0x179   :  { %v326_v3 = vpop.f32.mrb[21].mxu0 }
 0x17a   :  { %505 = vmatprep.mubr.f32.mxu1 %v326_v3 }
 0x17b   :  { %506 = vmatmul.mubr.f32.gmra.mrb[20].mxu1 %v324_v2 }
 0x17c   :  { %910 = vmin.xlane.f32.xlu0 %v909_v1  ;;  %v330_v5 = vpop.f32.mrb[22].mxu0 }
 0x17d   :  { %v332_v6 = vpop.f32.mrb[23].mxu0 }
 0x17e   :  { %510 = vmatprep.mubr.f32.mxu1 %v332_v6 }
 0x17f   :  { %511 = vmatmul.mubr.f32.gmra.mrb[22].mxu1 %v330_v5 }
 0x180   :  { %v336_v9 = vpop.f32.mrb[24].mxu0 }
 0x181   :  { %v338_v10 = vpop.f32.mrb[25].mxu0 }
 0x182   :  { %515 = vmatprep.mubr.f32.mxu1 %v338_v10 }
 0x183   :  { %516 = vmatmul.mubr.f32.gmra.mrb[24].mxu1 %v336_v9 }
 0x184   :  { %v342_v11 = vpop.f32.mrb[26].mxu0 }
 0x185   :  { %v344_v12 = vpop.f32.mrb[27].mxu0 }
 0x186   :  { %520 = vmatprep.mubr.f32.mxu1 %v344_v12 }
 0x187   :  { %521 = vmatmul.mubr.f32.gmra.mrb[26].mxu1 %v342_v11 }
 0x188   :  { %v348_v14 = vpop.f32.mrb[28].mxu0 }
 0x189   :  { %v350_v15 = vpop.f32.mrb[29].mxu0 }
 0x18a   :  { %525 = vmatprep.mubr.f32.mxu1 %v350_v15 }
 0x18b   :  { %526 = vmatmul.mubr.f32.gmra.mrb[28].mxu1 %v348_v14 }
 0x18c   :  { %v354_v16 = vpop.f32.mrb[30].mxu0 }
 0x18d   :  { %v356_v18 = vpop.f32.mrb[31].mxu0 }
 0x18e   :  { %530 = vmatprep.mubr.f32.mxu1 %v356_v18 }
 0x18f   :  { %531 = vmatmul.mubr.f32.gmra.mrb[30].mxu1 %v354_v16 }
 0x1a7   :  { %s6615_s4 = spop %5338 }
 0x205   :  { %v625_v24 = vpop.xlane.xlu0 %624 }
 0x206   :  { %v626_v25 = vrot.slane %v625_v24, 4 }
 0x208   :  { %v627_v26 = vmin.f32 %v625_v24, %v626_v25 }
 0x209   :  { %v911_v27 = vpop.xlane.xlu0 %910 }
 0x20a   :  { %v912_v28 = vrot.slane %v911_v27, 4  ;;  %v628_v30 = vrot.slane %v627_v26, 2 }
 0x20c   :  { %v913_v31 = vmin.f32 %v911_v27, %v912_v28  ;;  %v629_v32 = vmin.f32 %v627_v26, %v628_v30 }
 0x20e   :  { %v630_v34 = vrot.slane %v629_v32, 1  ;;  %v914_v35 = vrot.slane %v913_v31, 2 }
 0x210   :  { %v631_v37 = vmin.f32 %v629_v32, %v630_v34  ;;  %v915_v38 = vmin.f32 %v913_v31, %v914_v35 }
 0x212   :  { %5340 = vpush %v631_v37  ;;  %v916_v39 = vrot.slane %v915_v38, 1 }
 0x213   :  { %5342 = vpush %v5551_v36 }
 0x214   :  { %v917_v40 = vmin.f32 %v915_v38, %v916_v39 }
 0x216   :  { %5344 = vpush %v917_v40 }
 0x226   :  { %v4594_v41 = vpop.f32.mrb[0].mxu1 }
 0x227   :  { %v4595_v42 = vpop.f32.mrb[1].mxu1 }
 0x228   :  { %v6569_v43 = vadd.f32 %v4595_v42, %v4594_v41 }
 0x22a   :  { %v4597_v44 = vpop.f32.mrb[2].mxu1 }
 0x22b   :  { %v4598_v45 = vpop.f32.mrb[3].mxu1 }
 0x22c   :  { %v6571_v46 = vadd.f32 %v4598_v45, %v4597_v44 }
 0x22e   :  { %v4600_v47 = vpop.f32.mrb[4].mxu1  ;;  %v5369_v48 = vpack.i.bf16 %v6571_v46, %v6569_v43  ;;  %v1322_v49 = vpack.c.bf16 %v6571_v46, %v6569_v43 }
 0x22f   :  { %v4601_v54 = vpop.f32.mrb[5].mxu1 }
 0x230   :  { %v6577_v61 = vadd.f32 %v4601_v54, %v4600_v47  ;;  %5370 = vperm.xlu1 %5368, %v5369_v48  }
 0x232   :  { %v4603_v62 = vpop.f32.mrb[6].mxu1 }
 0x233   :  { %v4604_v0 = vpop.f32.mrb[7].mxu1 }
 0x234   :  { %v6579_v1 = vadd.f32 %v4604_v0, %v4603_v62  ;;  %5374 = vset.pattern.permute.xlu1 %v8257_v22 }
 0x235   :  { %5376 = vperm.xlu1 %5374, %v5369_v48  }
 0x236   :  { %v4606_v2 = vpop.f32.mrb[8].mxu1  ;;  %v5381_v3 = vpack.i.bf16 %v6579_v1, %v6577_v61  ;;  %v1323_v5 = vpack.c.bf16 %v6579_v1, %v6577_v61 }
 0x237   :  { %v4607_v6 = vpop.f32.mrb[9].mxu1 }
 0x238   :  { %v6586_v9 = vadd.f32 %v4607_v6, %v4606_v2  ;;  %5382 = vperm.xlu0 %5380, %v5381_v3  }
 0x239   :  { %5387 = vperm.xlu1 %5374, %v5381_v3  }
 0x23a   :  { %v4609_v10 = vpop.f32.mrb[10].mxu1 }
 0x23b   :  { %v4610_v11 = vpop.f32.mrb[11].mxu1 }
 0x23c   :  { %v6588_v12 = vadd.f32 %v4610_v11, %v4609_v10 }
 0x23d   :  { %5391 = vset.pattern.permute.xlu1 %v8255_v20 }
 0x23e   :  { %v4612_v14 = vpop.f32.mrb[12].mxu1  ;;  %v5392_v15 = vpack.i.bf16 %v6588_v12, %v6586_v9  ;;  %v1324_v16 = vpack.c.bf16 %v6588_v12, %v6586_v9 }
 0x23f   :  { %v4613_v18 = vpop.f32.mrb[13].mxu1 }
 0x240   :  { %v6595_v19 = vadd.f32 %v4613_v18, %v4612_v14  ;;  %5393 = vperm.xlu1 %5391, %v5392_v15  }
 0x242   :  { %v4615_v24 = vpop.f32.mrb[14].mxu1 }
 0x243   :  { %v4616_v25 = vpop.f32.mrb[15].mxu1  ;;  %s5341_s10 = spop %5340 }
 0x244   :  { %v6597_v26 = vadd.f32 %v4616_v25, %v4615_v24  ;;  %5397 = vset.pattern.permute.xlu1 %v8257_v22  ;;  %s6620_s14 = spop %5342 }
 0x245   :  { %5399 = vperm.xlu1 %5397, %v5392_v15  }
 0x246   :  { %v4618_v27 = vpop.f32.mrb[16].mxu1  ;;  %v5404_v28 = vpack.i.bf16 %v6597_v26, %v6595_v19  ;;  %v1325_v30 = vpack.c.bf16 %v6597_v26, %v6595_v19 }
 0x247   :  { %v4619_v31 = vpop.f32.mrb[17].mxu1  ;;  %s5345_s22 = spop %5344 }
 0x248   :  { %v4620_v32 = vadd.f32 %v4619_v31, %v4618_v27  ;;  %v6623_v43 = vstv %s5345_s22 }
 0x249   :  { %5403 = vset.pattern.permute.xlu1 %v8255_v20  ;;  %8290 = vst [vmem:[#allocation18_spill] sm:$0xff] %v6623_v43  ;;  %v920_v46 = vsub.f32 %v6463_v51, %v6623_v43  ;;  %v923_v31 = vsub.f32 %v6483_v59, %v6623_v43 }
 0x24a   :  { %5405 = vperm.xlu1 %5403, %v5404_v28   ;;  %v4621_v34 = vpop.f32.mrb[18].mxu1 }
 0x24b   :  { %v4622_v35 = vpop.f32.mrb[19].mxu1  ;;  %v936_v61 = vadd.f32 1e-06, %v920_v46 }
 0x24c   :  { %v4623_v36 = vadd.f32 %v4622_v35, %v4621_v34  ;;  %v939_v35 = vadd.f32 1e-06, %v923_v31 }
 0x24d   :  { %v952_v27 = vsel %vm571_vm0, %v936_v61, 1.0 }
 0x24e   :  { %5409 = vset.pattern.permute.xlu1 %v8257_v22  ;;  %v4624_v37 = vpop.f32.mrb[20].mxu1  ;;  %v5416_v38 = vpack.i.bf16 %v4623_v36, %v4620_v32  ;;  %v1326_v39 = vpack.c.bf16 %v4623_v36, %v4620_v32  ;;  %5552 = vlog2.f32 %v952_v27 }
 0x24f   :  { %5411 = vperm.xlu1 %5409, %v5404_v28   ;;  %v4625_v40 = vpop.f32.mrb[21].mxu1  ;;  %v922_v28 = vsub.f32 %v6475_v56, %v6623_v43 }
 0x250   :  { %v4626_v41 = vadd.f32 %v4625_v40, %v4624_v37  ;;  %v925_v40 = vsub.f32 %v6514_v8, %v6623_v43 }
 0x251   :  { %v938_v34 = vadd.f32 1e-06, %v922_v28 }
 0x252   :  { %v4627_v42 = vpop.f32.mrb[22].mxu1 }
 0x253   :  { %5415 = vset.pattern.permute.xlu1 %v8255_v20  ;;  %v4628_v44 = vpop.f32.mrb[23].mxu1 }
 0x254   :  { %v4629_v45 = vadd.f32 %v4628_v44, %v4627_v42  ;;  %5417 = vperm.xlu1 %5415, %v5416_v38  }
 0x256   :  { %v4630_v47 = vpop.f32.mrb[24].mxu1  ;;  %v5428_v48 = vpack.i.bf16 %v4629_v45, %v4626_v41  ;;  %v1327_v54 = vpack.c.bf16 %v4629_v45, %v4626_v41 }
 0x257   :  { %v4631_v62 = vpop.f32.mrb[25].mxu1 }
 0x258   :  { %5421 = vset.pattern.permute.xlu1 %v8257_v22  ;;  %v4632_v0 = vadd.f32 %v4631_v62, %v4630_v47  ;;  %v5553_v42 = vpop.eup %5552  ;;  %v941_v47 = vadd.f32 1e-06, %v925_v40 }
 0x259   :  { %5423 = vperm.xlu1 %5421, %v5416_v38   ;;  %v924_v38 = vsub.f32 %v6496_v63, %v6623_v43 }
 0x25a   :  { %v4633_v2 = vpop.f32.mrb[26].mxu1 }
 0x25b   :  { %v4634_v3 = vpop.f32.mrb[27].mxu1  ;;  %v940_v45 = vadd.f32 1e-06, %v924_v38 }
 0x25c   :  { %v4635_v6 = vadd.f32 %v4634_v3, %v4633_v2  ;;  %v957_v3 = vsel %vm571_vm0, %v941_v47, 1.0 }
 0x25d   :  { %5427 = vset.pattern.permute.xlu1 %v8255_v20  ;;  %v956_v2 = vsel %vm571_vm0, %v940_v45, 1.0 }
 0x25e   :  { %5429 = vperm.xlu1 %5427, %v5428_v48   ;;  %v4636_v9 = vpop.f32.mrb[28].mxu1  ;;  %v5440_v10 = vpack.i.bf16 %v4635_v6, %v4632_v0  ;;  %v1328_v11 = vpack.c.bf16 %v4635_v6, %v4632_v0 }
 0x25f   :  { %v4637_v12 = vpop.f32.mrb[29].mxu1 }
 0x260   :  { %v4638_v14 = vadd.f32 %v4637_v12, %v4636_v9  ;;  %v926_v9 = vsub.f32 %v6535_v21, %v6623_v43 }
 0x262   :  { %5433 = vset.pattern.permute.xlu1 %v8257_v22  ;;  %v4639_v15 = vpop.f32.mrb[30].mxu1 }
 0x263   :  { %5435 = vperm.xlu1 %5433, %v5428_v48   ;;  %v4640_v18 = vpop.f32.mrb[31].mxu1 }
 0x264   :  { %v4641_v19 = vadd.f32 %v4640_v18, %v4639_v15 }
 0x266   :  { %v5451_v24 = vpack.i.bf16 %v4641_v19, %v4638_v14  ;;  %v1329_v25 = vpack.c.bf16 %v4641_v19, %v4638_v14 }
 0x267   :  { %5439 = vset.pattern.permute.xlu1 %v8255_v20 }
 0x268   :  { %5441 = vperm.xlu1 %5439, %v5440_v10   ;;  %5452 = vperm.xlu0 %5380, %v5451_v24  }
 0x26c   :  { %5445 = vset.pattern.permute.xlu1 %v8257_v22  ;;  %1386 = vrot.lane.b32.xlu0 %v1322_v49, %s6072_s13  ;;  %v921_v49 = vsub.f32 %v6469_v53, %v6623_v43 }
 0x26d   :  { %5447 = vperm.xlu1 %5445, %v5440_v10  }
 0x26e   :  { %v937_v1 = vadd.f32 1e-06, %v921_v49  ;;  %v942_v49 = vadd.f32 1e-06, %v926_v9 }
 0x270   :  { %1390 = vrot.lane.b32.xlu0 %v1324_v16, %s6072_s13  ;;  %v6629_v16 = vstv %s5341_s10  ;;  %v953_v53 = vsel %vm571_vm0, %v937_v1, 1.0  ;;  %v958_v31 = vsel %vm571_vm0, %v942_v49, 1.0 }
 0x271   :  { %5457 = vperm.xlu1 %5445, %v5451_v24   ;;  %8291 = vst [vmem:[#allocation19_spill] sm:$0xff] %v6629_v16  ;;  %v635_v26 = vsub.f32 %v6467_v52, %v6629_v16  ;;  %v636_v51 = vsub.f32 %v6473_v55, %v6629_v16  ;;  %v637_v52 = vsub.f32 %v6481_v58, %v6629_v16  ;;  %5554 = vlog2.f32 %v953_v53 }
 0x272   :  { %v638_v59 = vsub.f32 %v6488_v60, %v6629_v16  ;;  %v954_v58 = vsel %vm571_vm0, %v938_v34, 1.0  ;;  %v639_v44 = vsub.f32 %v6506_v4, %v6629_v16  ;;  %v640_v48 = vsub.f32 %v6530_v17, %v6629_v16 }
 0x273   :  { %v652_v32 = vadd.f32 1e-06, %v636_v51  ;;  %v653_v56 = vadd.f32 1e-06, %v637_v52  ;;  %v641_v24 = vsub.f32 %v6542_v29, %v6629_v16 }
 0x274   :  { %1394 = vrot.lane.b32.xlu0 %v1326_v39, %s6072_s13  ;;  %v955_v39 = vsel %vm571_vm0, %v939_v35, 1.0  ;;  %v654_v60 = vadd.f32 1e-06, %v638_v59  ;;  %v655_v0 = vadd.f32 1e-06, %v639_v44 }
 0x275   :  { %1388 = vrot.lane.b32.xlu1 %v1323_v5, %s6072_s13  ;;  %v634_v5 = vsub.f32 %v6461_v50, %v6629_v16  ;;  %v651_v50 = vadd.f32 1e-06, %v635_v26  ;;  %v668_v37 = vsel %vm571_vm0, %v652_v32, 1.0  ;;  %v669_v41 = vsel %vm571_vm0, %v653_v56, 1.0 }
 0x276   :  { %5461 = vset.pattern.permute.xlu1 %v8255_v20  ;;  %v670_v8 = vsel %vm571_vm0, %v654_v60, 1.0  ;;  %v656_v6 = vadd.f32 1e-06, %v640_v48  ;;  %v671_v15 = vsel %vm571_vm0, %v655_v0, 1.0  ;;  %v657_v28 = vadd.f32 1e-06, %v641_v24 }
 0x277   :  { %v667_v36 = vsel %vm571_vm0, %v651_v50, 1.0 }
 0x278   :  { %1398 = vrot.lane.b32.xlu0 %v1328_v11, %s6072_s13  ;;  %v927_v11 = vsub.f32 %v6550_v33, %v6623_v43  ;;  %v672_v46 = vsel %vm571_vm0, %v656_v6, 1.0  ;;  %v673_v56 = vsel %vm571_vm0, %v657_v28, 1.0 }
 0x279   :  { %1392 = vrot.lane.b32.xlu1 %v1325_v30, %s6072_s13  ;;  %v650_v30 = vadd.f32 1e-06, %v634_v5 }
 0x27a   :  { %v943_v5 = vadd.f32 1e-06, %v927_v11 }
 0x27b   :  { %v666_v55 = vsel %vm571_vm0, %v650_v30, 1.0  ;;  %v5555_v63 = vpop.eup %5554 }
 0x27c   :  { %5556 = vlog2.f32 %v666_v55  ;;  %v971_v62 = vmul.f32 0.6931472, %v5555_v63  ;;  %v959_v52 = vsel %vm571_vm0, %v943_v5, 1.0 }
 0x27d   :  { %1396 = vrot.lane.b32.xlu1 %v1327_v54, %s6072_s13  ;;  %5558 = vlog2.f32 %v667_v36  ;;  %v969_v54 = vmul.f32 0.6931472, %v5553_v42 }
 0x27e   :  { %5560 = vlog2.f32 %v668_v37  ;;  %v1002_v14 = vmul.f32 %v971_v62, %v6566_v23 }
 0x27f   :  { %5562 = vlog2.f32 %v954_v58  ;;  %v1001_v17 = vmul.f32 %v969_v54, %v6566_v23 }
 0x280   :  { %5564 = vlog2.f32 %v955_v39  ;;  %v1019_v26 = vmul.f32 1.442695, %v1002_v14  ;;  %v6704_v14 = vld [vmem:[#allocation6] sm:$0xff]  }
 0x281   :  { %1400 = vrot.lane.b32.xlu1 %v1329_v25, %s6072_s13  ;;  %5566 = vlog2.f32 %v669_v41  ;;  %v1017_v33 = vmul.f32 1.442695, %v1001_v17  ;;  %4898 = vmatprep.mubr.bf16.mxu1 %v6704_v14 }
 0x282   :  { %5568 = vlog2.f32 %v670_v8 }
 0x283   :  { %5570 = vlog2.f32 %v956_v2 }
 0x284   :  { %5572 = vlog2.f32 %v957_v3 }
 0x285   :  { %5574 = vlog2.f32 %v671_v15 }
 0x286   :  { %v5557_v4 = vpop.eup %5556  ;;  %5576 = vlog2.f32 %v672_v46 }
 0x287   :  { %v5559_v10 = vpop.eup %5558  ;;  %v683_v19 = vmul.f32 0.6931472, %v5557_v4  ;;  %5578 = vpow2.f32 %v1017_v33 }
 0x288   :  { %v5561_v12 = vpop.eup %5560  ;;  %v685_v25 = vmul.f32 0.6931472, %v5559_v10  ;;  %5580 = vpow2.f32 %v1019_v26 }
 0x289   :  { %v5563_v18 = vpop.eup %5562  ;;  %v687_v1 = vmul.f32 0.6931472, %v5561_v12  ;;  %v715_v51 = vmul.f32 %v683_v19, %v6560_v13  ;;  %5582 = vlog2.f32 %v958_v31 }
 0x28a   :  { %v5565_v21 = vpop.eup %5564  ;;  %v973_v27 = vmul.f32 0.6931472, %v5563_v18  ;;  %v716_v30 = vmul.f32 %v685_v25, %v6560_v13  ;;  %5584 = vlog2.f32 %v959_v52 }
 0x28b   :  { %v5567_v61 = vpop.eup %5566  ;;  %v975_v53 = vmul.f32 0.6931472, %v5565_v21  ;;  %v717_v50 = vmul.f32 %v687_v1, %v6560_v13  ;;  %v731_v35 = vmul.f32 1.442695, %v715_v51  ;;  %5586 = vlog2.f32 %v673_v56 }
 0x28c   :  { %v689_v29 = vmul.f32 0.6931472, %v5567_v61  ;;  %v5569_v32 = vpop.eup %5568  ;;  %v1003_v34 = vmul.f32 %v973_v27, %v6566_v23  ;;  %v733_v59 = vmul.f32 1.442695, %v716_v30 }
 0x28d   :  { %v5571_v55 = vpop.eup %5570  ;;  %v1004_v36 = vmul.f32 %v975_v53, %v6566_v23  ;;  %v735_v38 = vmul.f32 1.442695, %v717_v50  ;;  %v691_v39 = vmul.f32 0.6931472, %v5569_v32  ;;  %5588 = vpow2.f32 %v731_v35 }
 0x28e   :  { %v5573_v37 = vpop.eup %5572  ;;  %v718_v58 = vmul.f32 %v689_v29, %v6560_v13  ;;  %v1021_v40 = vmul.f32 1.442695, %v1003_v34  ;;  %v977_v41 = vmul.f32 0.6931472, %v5571_v55  ;;  %5590 = vpow2.f32 %v733_v59 }
 0x28f   :  { %v5575_v60 = vpop.eup %5574  ;;  %v1023_v42 = vmul.f32 1.442695, %v1004_v36  ;;  %v979_v44 = vmul.f32 0.6931472, %v5573_v37  ;;  %5592 = vpow2.f32 %v735_v38  ;;  %v719_v63 = vmul.f32 %v691_v39, %v6560_v13 }
 0x290   :  { %v737_v45 = vmul.f32 1.442695, %v718_v58  ;;  %v5577_v47 = vpop.eup %5576  ;;  %5594 = vpow2.f32 %v1021_v40  ;;  %v693_v48 = vmul.f32 0.6931472, %v5575_v60  ;;  %v1005_v54 = vmul.f32 %v977_v41, %v6566_v23 }
 0x291   :  { %v5579_v8 = vpop.eup %5578  ;;  %5596 = vpow2.f32 %v1023_v42  ;;  %v1006_v62 = vmul.f32 %v979_v44, %v6566_v23  ;;  %v739_v3 = vmul.f32 1.442695, %v719_v63  ;;  %v695_v24 = vmul.f32 0.6931472, %v5577_v47 }
 0x292   :  { %v5581_v0 = vpop.eup %5580  ;;  %5598 = vpow2.f32 %v737_v45  ;;  %v720_v9 = vmul.f32 %v693_v48, %v6560_v13  ;;  %v1025_v10 = vmul.f32 1.442695, %v1005_v54  ;;  %v1049_v18 = vsel %vm571_vm0, %v5579_v8, 0.0 }
 0x293   :  { %v5583_v2 = vpop.eup %5582  ;;  %v1027_v12 = vmul.f32 1.442695, %v1006_v62  ;;  %v1050_v19 = vsel %vm571_vm0, %v5581_v0, 0.0  ;;  %5600 = vpow2.f32 %v739_v3  ;;  %v721_v32 = vmul.f32 %v695_v24, %v6560_v13 }
 0x294   :  { %v5585_v4 = vpop.eup %5584  ;;  %v981_v21 = vmul.f32 0.6931472, %v5583_v2  ;;  %v741_v5 = vmul.f32 1.442695, %v720_v9  ;;  %5602 = vpow2.f32 %v1025_v10 }
 0x295   :  { %v5587_v15 = vpop.eup %5586  ;;  %v983_v61 = vmul.f32 0.6931472, %v5585_v4  ;;  %5604 = vpow2.f32 %v1027_v12 }
 0x296   :  { %v697_v30 = vmul.f32 0.6931472, %v5587_v15  ;;  %v1007_v29 = vmul.f32 %v981_v21, %v6566_v23  ;;  %5606 = vpow2.f32 %v741_v5 }
 0x297   :  { %v5589_v25 = vpop.eup %5588  ;;  %v1008_v34 = vmul.f32 %v983_v61, %v6566_v23 }
 0x298   :  { %v5591_v33 = vpop.eup %5590  ;;  %v763_v50 = vsel %vm571_vm0, %v5589_v25, 0.0  ;;  %v1029_v42 = vmul.f32 1.442695, %v1007_v29  ;;  %v722_v62 = vmul.f32 %v697_v30, %v6560_v13 }
 0x299   :  { %v5593_v26 = vpop.eup %5592  ;;  %v764_v52 = vsel %vm571_vm0, %v5591_v33, 0.0  ;;  %v1031_v47 = vmul.f32 1.442695, %v1008_v34 }
 0x29a   :  { %v5595_v51 = vpop.eup %5594  ;;  %v765_v37 = vsel %vm571_vm0, %v5593_v26, 0.0  ;;  %5608 = vpow2.f32 %v1029_v42  ;;  %v745_v10 = vmul.f32 1.442695, %v722_v62 }
 0x29b   :  { %v5597_v31 = vpop.eup %5596  ;;  %v1051_v40 = vsel %vm571_vm0, %v5595_v51, 0.0  ;;  %5610 = vpow2.f32 %v1031_v47 }
 0x29c   :  { %v5599_v55 = vpop.eup %5598  ;;  %v1052_v60 = vsel %vm571_vm0, %v5597_v31, 0.0 }
 0x29d   :  { %v766_v44 = vsel %vm571_vm0, %v5599_v55, 0.0  ;;  %v5601_v0 = vpop.eup %5600 }
 0x29e   :  { %v5603_v3 = vpop.eup %5602 }
 0x29f   :  { %v5605_v4 = vpop.eup %5604  ;;  %v1053_v15 = vsel %vm571_vm0, %v5603_v3, 0.0 }
 0x2a0   :  { %v5607_v12 = vpop.eup %5606  ;;  %v1054_v13 = vsel %vm571_vm0, %v5605_v4, 0.0 }
 0x2a1   :  { %v768_v61 = vsel %vm571_vm0, %v5607_v12, 0.0 }
 0x2a4   :  { %v5609_v33 = vpop.eup %5608 }
 0x2a5   :  { %v5611_v26 = vpop.eup %5610  ;;  %v1055_v30 = vsel %vm571_vm0, %v5609_v33, 0.0 }
 0x2a6   :  { %v1056_v29 = vsel %vm571_vm0, %v5611_v26, 0.0 }
 0x2af   :  { %v5371_v6 = vpop.permute.xlu1 %5370 }
 0x2b0   :  { %v5373_v17 = vunpack.i.h.bf16 %v5371_v6  ;;  %v5372_v11 = vunpack.i.l.bf16 %v5371_v6  ;;  %v743_v6 = vmul.f32 1.442695, %v721_v32 }
 0x2b2   :  { %v1129_v46 = vsel %vm588_vm1, %v5372_v11, %v1049_v18  ;;  %v1130_v49 = vsel %vm588_vm1, %v5373_v17, %v1050_v19  ;;  %5612 = vpow2.f32 %v743_v6 }
 0x2b3   :  { %v1146_v1 = vpack.c.bf16 %v1130_v49, %v1129_v46  ;;  %5614 = vpow2.f32 %v745_v10  ;;  %v767_v49 = vsel %vm571_vm0, %v5601_v0, 0.0 }
 0x2b4   :  { %v5377_v27 = vpop.permute.xlu1 %5376 }
 0x2b5   :  { %v5379_v53 = vunpack.i.h.bf16 %v5377_v27  ;;  %v5378_v28 = vunpack.i.l.bf16 %v5377_v27  ;;  %1209 = vmatprep.subr.bf16.mxu0 %v1146_v1 }
 0x2b7   :  { %v859_v35 = vsel %vm588_vm1, %v5378_v28, %v763_v50  ;;  %v860_v36 = vsel %vm588_vm1, %v5379_v53, %v764_v52  ;;  %v5383_v56 = vpop.permute.xlu0 %5382 }
 0x2b8   :  { %v5385_v59 = vunpack.i.h.bf16 %v5383_v56  ;;  %v5384_v58 = vunpack.i.l.bf16 %v5383_v56  ;;  %v5388_v38 = vpop.permute.xlu1 %5387  ;;  %v1145_v39 = vpack.c.bf16 %v860_v36, %v859_v35 }
 0x2b9   :  { %v5390_v23 = vunpack.i.h.bf16 %v5388_v38  ;;  %v5389_v41 = vunpack.i.l.bf16 %v5388_v38 }
 0x2ba   :  { %1210 = vmatpush1.bf16.msra.mxu0 %v1145_v39  ;;  %v1131_v45 = vsel %vm588_vm1, %v5384_v58, %v1051_v40  ;;  %v1132_v63 = vsel %vm588_vm1, %v5385_v59, %v1052_v60 }
 0x2bb   :  { %v861_v48 = vsel %vm588_vm1, %v5389_v41, %v765_v37  ;;  %v862_v54 = vsel %vm588_vm1, %v5390_v23, %v766_v44  ;;  %v1148_v8 = vpack.c.bf16 %v1132_v63, %v1131_v45 }
 0x2bc   :  { %v1147_v2 = vpack.c.bf16 %v862_v54, %v861_v48  ;;  %v5613_v31 = vpop.eup %5612 }
 0x2bd   :  { %1211 = vmatprep.subr.bf16.mxu0 %v1148_v8  ;;  %v5615_v32 = vpop.eup %5614  ;;  %v769_v56 = vsel %vm571_vm0, %v5613_v31, 0.0  ;;  %v5527_v31 = vld [vmem:[#allocation2 + $0x18] sm:$0xff]  }
 0x2be   :  { %1212 = vmatpush1.bf16.msra.mxu0 %v1147_v2  ;;  %v770_v37 = vsel %vm571_vm0, %v5615_v32, 0.0  ;;  %v5528_v32 = vld [vmem:[#allocation2 + $0x20] sm:$0xff]  }
 0x2bf   :  { %v5394_v9 = vpop.permute.xlu1 %5393 }
 0x2c0   :  { %v5396_v17 = vunpack.i.h.bf16 %v5394_v9  ;;  %v5395_v11 = vunpack.i.l.bf16 %v5394_v9 }
 0x2c2   :  { %v1133_v18 = vsel %vm588_vm1, %v5395_v11, %v1053_v15  ;;  %v1134_v19 = vsel %vm588_vm1, %v5396_v17, %v1054_v13 }
 0x2c3   :  { %v1150_v24 = vpack.c.bf16 %v1134_v19, %v1133_v18 }
 0x2c4   :  { %v5400_v21 = vpop.permute.xlu1 %5399 }
 0x2c5   :  { %v5402_v25 = vunpack.i.h.bf16 %v5400_v21  ;;  %v5401_v46 = vunpack.i.l.bf16 %v5400_v21  ;;  %1213 = vmatprep.subr.bf16.mxu0 %v1150_v24 }
 0x2c7   :  { %v863_v1 = vsel %vm588_vm1, %v5401_v46, %v767_v49  ;;  %v864_v5 = vsel %vm588_vm1, %v5402_v25, %v768_v61 }
 0x2c8   :  { %v1149_v27 = vpack.c.bf16 %v864_v5, %v863_v1  ;;  %v5524_v1 = vld [vmem:[#allocation2] sm:$0xff]  }
 0x2c9   :  { %v5406_v51 = vpop.permute.xlu1 %5405 }
 0x2ca   :  { %v5408_v53 = vunpack.i.h.bf16 %v5406_v51  ;;  %v5407_v28 = vunpack.i.l.bf16 %v5406_v51  ;;  %1214 = vmatpush1.bf16.msra.mxu0 %v1149_v27  ;;  %v5525_v27 = vld [vmem:[#allocation2 + $0x8] sm:$0xff]  }
 0x2cc   :  { %v1135_v50 = vsel %vm588_vm1, %v5407_v28, %v1055_v30  ;;  %v1136_v52 = vsel %vm588_vm1, %v5408_v53, %v1056_v29  ;;  %v5526_v28 = vld [vmem:[#allocation2 + $0x10] sm:$0xff]  }
 0x2cd   :  { %v1152_v34 = vpack.c.bf16 %v1136_v52, %v1135_v50  ;;  %v6801_v50 = vld [vmem:[#allocation6 + $0x8] sm:$0xff]   ;;  %v6803_v52 = vld [vmem:[#allocation6 + $0x10] sm:$0xff]  }
 0x2ce   :  { %v5412_v55 = vpop.permute.xlu1 %5411 }
 0x2cf   :  { %v5414_v35 = vunpack.i.h.bf16 %v5412_v55  ;;  %v5413_v36 = vunpack.i.l.bf16 %v5412_v55  ;;  %1215 = vmatprep.subr.bf16.mxu0 %v1152_v34  ;;  %v6808_v34 = vld [vmem:[#allocation6 + $0x18] sm:$0xff]   ;;  %v6810_v55 = vld [vmem:[#allocation6 + $0x20] sm:$0xff]  }
 0x2d1   :  { %v866_v59 = vsel %vm588_vm1, %v5414_v35, %v770_v37  ;;  %v865_v58 = vsel %vm588_vm1, %v5413_v36, %v769_v56  ;;  %v5529_v35 = vld [vmem:[#allocation2 + $0x28] sm:$0xff]   ;;  %v6817_v56 = vld [vmem:[#allocation6 + $0x30] sm:$0xff]  }
 0x2d2   :  { %v1151_v38 = vpack.c.bf16 %v866_v59, %v865_v58  ;;  %v6815_v36 = vld [vmem:[#allocation6 + $0x28] sm:$0xff]   ;;  %v5530_v37 = vld [vmem:[#allocation2 + $0x30] sm:$0xff]   ;;  %v6822_v59 = vld [vmem:[#allocation6 + $0x38] sm:$0xff]  }
 0x2d3   :  { %v5418_v39 = vpop.permute.xlu1 %5417  ;;  %v5531_v58 = vld [vmem:[#allocation2 + $0x38] sm:$0xff]  }
 0x2d4   :  { %v5420_v40 = vunpack.i.h.bf16 %v5418_v39  ;;  %v5419_v23 = vunpack.i.l.bf16 %v5418_v39  ;;  %1216 = vmatpush1.bf16.msra.mxu0 %v1151_v38 }
 0x2d6   :  { %v4491_v60 = vpack.c.bf16 %v5420_v40, %v5419_v23 }
 0x2d8   :  { %v5424_v42 = vpop.permute.xlu1 %5423  ;;  %4492 = vmatprep.subr.msk.bf16.mxu0 %vm6778_vm2, %v4491_v60 }
 0x2d9   :  { %v5426_v44 = vunpack.i.h.bf16 %v5424_v42  ;;  %v5425_v45 = vunpack.i.l.bf16 %v5424_v42 }
 0x2db   :  { %v4494_v63 = vpack.c.bf16 %v5426_v44, %v5425_v45 }
 0x2dd   :  { %4495 = vmatpush1.bf16.msk.msra.mxu0 %vm6778_vm2, %v4494_v63  ;;  %v5430_v47 = vpop.permute.xlu1 %5429 }
 0x2de   :  { %v5432_v48 = vunpack.i.h.bf16 %v5430_v47  ;;  %v5431_v54 = vunpack.i.l.bf16 %v5430_v47 }
 0x2e0   :  { %v4497_v8 = vpack.c.bf16 %v5432_v48, %v5431_v54 }
 0x2e2   :  { %v5436_v62 = vpop.permute.xlu1 %5435  ;;  %4498 = vmatprep.subr.msk.bf16.mxu0 %vm6778_vm2, %v4497_v8 }
 0x2e3   :  { %v5438_v0 = vunpack.i.h.bf16 %v5436_v62  ;;  %v5437_v2 = vunpack.i.l.bf16 %v5436_v62 }
 0x2e5   :  { %v4500_v3 = vpack.c.bf16 %v5438_v0, %v5437_v2 }
 0x2e7   :  { %4501 = vmatpush1.bf16.msk.msra.mxu0 %vm6778_vm2, %v4500_v3  ;;  %v5442_v4 = vpop.permute.xlu1 %5441  ;;  %v5453_v6 = vpop.permute.xlu0 %5452 }
 0x2e8   :  { %v5444_v9 = vunpack.i.h.bf16 %v5442_v4  ;;  %v5443_v10 = vunpack.i.l.bf16 %v5442_v4  ;;  %v5455_v12 = vunpack.i.h.bf16 %v5453_v6  ;;  %v5454_v15 = vunpack.i.l.bf16 %v5453_v6 }
 0x2ea   :  { %v4503_v17 = vpack.c.bf16 %v5444_v9, %v5443_v10  ;;  %v4509_v21 = vpack.c.bf16 %v5455_v12, %v5454_v15 }
 0x2eb   :  { %v1387_v11 = vpop.permute.xlu0 %1386 }
 0x2ec   :  { %v5448_v13 = vpop.permute.xlu1 %5447  ;;  %4504 = vmatprep.subr.msk.bf16.mxu0 %vm6778_vm2, %v4503_v17  ;;  %4882 = vmatprep.subr.bf16.mxu1 %v1387_v11 }
 0x2ed   :  { %v5450_v18 = vunpack.i.h.bf16 %v5448_v13  ;;  %v5449_v19 = vunpack.i.l.bf16 %v5448_v13  ;;  %4883 = vmatpush3.bf16.msra.mxu1 %v1387_v11 }
 0x2ef   :  { %v4506_v24 = vpack.c.bf16 %v5450_v18, %v5449_v19  ;;  %v1391_v5 = vpop.permute.xlu0 %1390 }
 0x2f0   :  { %v5458_v25 = vpop.permute.xlu1 %5457 }
 0x2f1   :  { %v5460_v46 = vunpack.i.h.bf16 %v5458_v25  ;;  %v5459_v49 = vunpack.i.l.bf16 %v5458_v25  ;;  %4507 = vmatpush1.bf16.msk.msra.mxu0 %vm6778_vm2, %v4506_v24 }
 0x2f2   :  { %4510 = vmatprep.subr.msk.bf16.mxu0 %vm6778_vm2, %v4509_v21 }
 0x2f3   :  { %v4512_v61 = vpack.c.bf16 %v5460_v46, %v5459_v49  ;;  %v1395_v51 = vpop.permute.xlu0 %1394 }
 0x2f4   :  { %v1389_v33 = vpop.permute.xlu1 %1388 }
 0x2f5   :  { %4513 = vmatpush1.bf16.msk.msra.mxu0 %vm6778_vm2, %v4512_v61  ;;  %4884 = vmatprep.subr.bf16.mxu1 %v1389_v33 }
 0x2f6   :  { %4885 = vmatpush3.bf16.msra.mxu1 %v1389_v33 }
 0x2f7   :  { %4886 = vmatprep.subr.bf16.mxu1 %v1391_v5  ;;  %v1399_v30 = vpop.permute.xlu0 %1398 }
 0x2f8   :  { %1242 = vmatmul.mubr.bf16.vlgmr.msra.gmra.mrb[32].mxu0 %v5524_v1  ;;  %v1393_v26 = vpop.permute.xlu1 %1392 }
 0x2f9   :  { %1251 = vmatprep.mubr.bf16.mxu0 %v8257_v22 }
 0x2fa   :  { %4887 = vmatpush3.bf16.msra.mxu1 %v1391_v5 }
 0x2fb   :  { %4888 = vmatprep.subr.bf16.mxu1 %v1393_v26 }
 0x2fc   :  { %v1397_v53 = vpop.permute.xlu1 %1396 }
 0x2fe   :  { %4889 = vmatpush3.bf16.msra.mxu1 %v1393_v26 }
 0x2ff   :  { %4890 = vmatprep.subr.bf16.mxu1 %v1395_v51 }
 0x300   :  { %1252 = vmatmul.mubr.bf16.gmra.mrb[36].mxu0 %v5525_v27  ;;  %v1401_v29 = vpop.permute.xlu1 %1400 }
 0x301   :  { %1261 = vmatprep.mubr.bf16.mxu0 %v8257_v22 }
 0x302   :  { %4891 = vmatpush3.bf16.msra.mxu1 %v1395_v51 }
 0x303   :  { %4892 = vmatprep.subr.bf16.mxu1 %v1397_v53 }
 0x306   :  { %4893 = vmatpush3.bf16.msra.mxu1 %v1397_v53 }
 0x307   :  { %4894 = vmatprep.subr.bf16.mxu1 %v1399_v30 }
 0x308   :  { %1262 = vmatmul.mubr.bf16.gmra.mrb[40].mxu0 %v5526_v28 }
 0x309   :  { %1271 = vmatprep.mubr.bf16.mxu0 %v8257_v22 }
 0x30a   :  { %4895 = vmatpush3.bf16.msra.mxu1 %v1399_v30 }
 0x30b   :  { %4896 = vmatprep.subr.bf16.mxu1 %v1401_v29 }
 0x30e   :  { %4897 = vmatpush3.bf16.msra.mxu1 %v1401_v29 }
 0x310   :  { %1272 = vmatmul.mubr.bf16.gmra.mrb[44].mxu0 %v5527_v31 }
 0x311   :  { %1281 = vmatprep.mubr.bf16.mxu0 %v8257_v22  ;;  %4899 = vmatmul.mubr.bf16.vlgmr.msra.gmra.mrb[32].mxu1 %v6801_v50 }
 0x312   :  { %4902 = vmatprep.mubr.bf16.mxu1 %v6803_v52 }
 0x318   :  { %1282 = vmatmul.mubr.bf16.gmra.mrb[48].mxu0 %v5528_v32 }
 0x319   :  { %1291 = vmatprep.mubr.bf16.mxu0 %v8257_v22  ;;  %4903 = vmatmul.mubr.bf16.gmra.mrb[36].mxu1 %v6808_v34 }
 0x31a   :  { %4906 = vmatprep.mubr.bf16.mxu1 %v6810_v55 }
 0x320   :  { %1292 = vmatmul.mubr.bf16.gmra.mrb[52].mxu0 %v5529_v35 }
 0x321   :  { %1301 = vmatprep.mubr.bf16.mxu0 %v8257_v22  ;;  %4907 = vmatmul.mubr.bf16.gmra.mrb[40].mxu1 %v6815_v36 }
 0x322   :  { %4910 = vmatprep.mubr.bf16.mxu1 %v6817_v56 }
 0x328   :  { %1302 = vmatmul.mubr.bf16.gmra.mrb[56].mxu0 %v5530_v37 }
 0x329   :  { %1311 = vmatprep.mubr.bf16.mxu0 %v8257_v22  ;;  %4911 = vmatmul.mubr.bf16.gmra.mrb[44].mxu1 %v6822_v59 }
 0x330   :  { %1312 = vmatmul.mubr.bf16.gmra.mrb[60].mxu0 %v5531_v58 }
 0x331   :  { %4962 = vmatprep.mubr.bf16.mxu0 %v6704_v14 }
 0x3cb   :  { %v6827_v38 = vpop.f32.mrb[32].mxu0 }
 0x3cc   :  { %1523 = vrot.lane.b32.xlu0 %v6827_v38, %s6073_s15  ;;  %v6831_v39 = vpop.f32.mrb[33].mxu0 }
 0x3cd   :  { %v6833_v40 = vpop.f32.mrb[34].mxu0 }
 0x3ce   :  { %1525 = vrot.lane.b32.xlu1 %v6833_v40, %s6073_s15  ;;  %v6837_v23 = vpop.f32.mrb[35].mxu0 }
 0x3d0   :  { %1587 = vrot.lane.b32.xlu0 %v6831_v39, %s6074_s16 }
 0x3d2   :  { %1589 = vrot.lane.b32.xlu1 %v6837_v23, %s6074_s16 }
 0x3d3   :  { %v6843_v14 = vpop.f32.mrb[36].mxu0 }
 0x3d4   :  { %1527 = vrot.lane.b32.xlu0 %v6843_v14, %s6073_s15  ;;  %v6847_v41 = vpop.f32.mrb[37].mxu0 }
 0x3d5   :  { %v6849_v60 = vpop.f32.mrb[38].mxu0 }
 0x3d6   :  { %1529 = vrot.lane.b32.xlu1 %v6849_v60, %s6073_s15  ;;  %v6853_v42 = vpop.f32.mrb[39].mxu0 }
 0x3d8   :  { %1591 = vrot.lane.b32.xlu0 %v6847_v41, %s6074_s16 }
 0x3da   :  { %1593 = vrot.lane.b32.xlu1 %v6853_v42, %s6074_s16 }
 0x3db   :  { %v6859_v44 = vpop.f32.mrb[40].mxu0 }
 0x3dc   :  { %8294 = vst [vmem:[#allocation20_spill] sm:$0xff] %v6859_v44  ;;  %1531 = vrot.lane.b32.xlu0 %v6859_v44, %s6073_s15  ;;  %v6863_v45 = vpop.f32.mrb[41].mxu0 }
 0x3dd   :  { %8295 = vst [vmem:[#allocation21_spill] sm:$0xff] %v6863_v45  ;;  %v6865_v63 = vpop.f32.mrb[42].mxu0 }
 0x3de   :  { %8296 = vst [vmem:[#allocation22_spill] sm:$0xff] %v6865_v63  ;;  %1533 = vrot.lane.b32.xlu1 %v6865_v63, %s6073_s15  ;;  %v6869_v47 = vpop.f32.mrb[43].mxu0 }
 0x3df   :  { %8297 = vst [vmem:[#allocation23_spill] sm:$0xff] %v6869_v47 }
 0x3e0   :  { %1595 = vrot.lane.b32.xlu0 %v6863_v45, %s6074_s16 }
 0x3e2   :  { %1597 = vrot.lane.b32.xlu1 %v6869_v47, %s6074_s16 }
 0x3e3   :  { %v6875_v48 = vpop.f32.mrb[44].mxu0 }
 0x3e4   :  { %1535 = vrot.lane.b32.xlu0 %v6875_v48, %s6073_s15  ;;  %v6879_v54 = vpop.f32.mrb[45].mxu0  ;;  %v6881_v8 = vpop.f32.mrb[32].mxu1 }
 0x3e5   :  { %8298 = vst [vmem:[#allocation24_spill] sm:$0xff] %v6879_v54  ;;  %v6883_v62 = vpop.f32.mrb[46].mxu0  ;;  %v6885_v0 = vpop.f32.mrb[33].mxu1 }
 0x3e6   :  { %1537 = vrot.lane.b32.xlu1 %v6883_v62, %s6073_s15  ;;  %v6889_v2 = vpop.f32.mrb[47].mxu0  ;;  %v6891_v3 = vpop.f32.mrb[34].mxu1 }
 0x3e7   :  { %8299 = vst [vmem:[#allocation25_spill] sm:$0xff] %v6889_v2  ;;  %v6893_v4 = vpop.f32.mrb[35].mxu1 }
 0x3e8   :  { %1599 = vrot.lane.b32.xlu0 %v6879_v54, %s6074_s16 }
 0x3ea   :  { %1601 = vrot.lane.b32.xlu1 %v6889_v2, %s6074_s16 }
 0x3eb   :  { %v6899_v6 = vpop.f32.mrb[48].mxu0 }
 0x3ec   :  { %8300 = vst [vmem:[#allocation26_spill] sm:$0xff] %v6899_v6  ;;  %1539 = vrot.lane.b32.xlu0 %v6899_v6, %s6073_s15  ;;  %v6903_v9 = vpop.f32.mrb[49].mxu0  ;;  %v6905_v10 = vpop.f32.mrb[36].mxu1 }
 0x3ed   :  { %8301 = vst [vmem:[#allocation27_spill] sm:$0xff] %v6903_v9  ;;  %v6907_v17 = vpop.f32.mrb[50].mxu0  ;;  %v6909_v11 = vpop.f32.mrb[37].mxu1 }
 0x3ee   :  { %8302 = vst [vmem:[#allocation28_spill] sm:$0xff] %v6907_v17  ;;  %1541 = vrot.lane.b32.xlu1 %v6907_v17, %s6073_s15  ;;  %v6913_v12 = vpop.f32.mrb[51].mxu0  ;;  %v6915_v15 = vpop.f32.mrb[38].mxu1 }
 0x3ef   :  { %8303 = vst [vmem:[#allocation29_spill] sm:$0xff] %v6913_v12  ;;  %v6917_v13 = vpop.f32.mrb[39].mxu1 }
 0x3f0   :  { %1603 = vrot.lane.b32.xlu0 %v6903_v9, %s6074_s16 }
 0x3f2   :  { %1605 = vrot.lane.b32.xlu1 %v6913_v12, %s6074_s16 }
 0x3f3   :  { %v6923_v18 = vpop.f32.mrb[52].mxu0 }
 0x3f4   :  { %8304 = vst [vmem:[#allocation30_spill] sm:$0xff] %v6923_v18  ;;  %1543 = vrot.lane.b32.xlu0 %v6923_v18, %s6073_s15  ;;  %v6927_v19 = vpop.f32.mrb[53].mxu0  ;;  %v6929_v24 = vpop.f32.mrb[40].mxu1 }
 0x3f5   :  { %8305 = vst [vmem:[#allocation31_spill] sm:$0xff] %v6927_v19  ;;  %v6931_v21 = vpop.f32.mrb[54].mxu0  ;;  %v6933_v25 = vpop.f32.mrb[41].mxu1 }
 0x3f6   :  { %8306 = vst [vmem:[#allocation32_spill] sm:$0xff] %v6931_v21  ;;  %1545 = vrot.lane.b32.xlu1 %v6931_v21, %s6073_s15  ;;  %v6937_v46 = vpop.f32.mrb[55].mxu0  ;;  %v6939_v49 = vpop.f32.mrb[42].mxu1 }
 0x3f7   :  { %8307 = vst [vmem:[#allocation33_spill] sm:$0xff] %v6937_v46  ;;  %v6941_v61 = vpop.f32.mrb[43].mxu1 }
 0x3f8   :  { %1607 = vrot.lane.b32.xlu0 %v6927_v19, %s6074_s16 }
 0x3fa   :  { %1609 = vrot.lane.b32.xlu1 %v6937_v46, %s6074_s16 }
 0x3fb   :  { %v6947_v33 = vpop.f32.mrb[56].mxu0 }
 0x3fc   :  { %8308 = vst [vmem:[#allocation34_spill] sm:$0xff] %v6947_v33  ;;  %1547 = vrot.lane.b32.xlu0 %v6947_v33, %s6073_s15  ;;  %v6951_v1 = vpop.f32.mrb[57].mxu0  ;;  %v6953_v5 = vpop.f32.mrb[44].mxu1 }
 0x3fd   :  { %8309 = vst [vmem:[#allocation35_spill] sm:$0xff] %v6951_v1  ;;  %v6955_v26 = vpop.f32.mrb[58].mxu0  ;;  %v6957_v27 = vpop.f32.mrb[45].mxu1 }
 0x3fe   :  { %8310 = vst [vmem:[#allocation36_spill] sm:$0xff] %v6955_v26  ;;  %1549 = vrot.lane.b32.xlu1 %v6955_v26, %s6073_s15  ;;  %v6961_v51 = vpop.f32.mrb[59].mxu0  ;;  %v6963_v53 = vpop.f32.mrb[46].mxu1 }
 0x3ff   :  { %8311 = vst [vmem:[#allocation37_spill] sm:$0xff] %v6961_v51  ;;  %v6965_v28 = vpop.f32.mrb[47].mxu1 }
 0x400   :  { %1611 = vrot.lane.b32.xlu0 %v6951_v1, %s6074_s16 }
 0x402   :  { %1613 = vrot.lane.b32.xlu1 %v6961_v51, %s6074_s16 }
 0x403   :  { %v6971_v30 = vpop.f32.mrb[60].mxu0 }
 0x404   :  { %8312 = vst [vmem:[#allocation38_spill] sm:$0xff] %v6971_v30  ;;  %1551 = vrot.lane.b32.xlu0 %v6971_v30, %s6073_s15  ;;  %v6975_v29 = vpop.f32.mrb[61].mxu0 }
 0x405   :  { %8313 = vst [vmem:[#allocation39_spill] sm:$0xff] %v6975_v29  ;;  %v6977_v31 = vpop.f32.mrb[62].mxu0 }
 0x406   :  { %8314 = vst [vmem:[#allocation40_spill] sm:$0xff] %v6977_v31  ;;  %1553 = vrot.lane.b32.xlu1 %v6977_v31, %s6073_s15  ;;  %v6981_v32 = vpop.f32.mrb[63].mxu0 }
 0x407   :  { %8315 = vst [vmem:[#allocation41_spill] sm:$0xff] %v6981_v32 }
 0x408   :  { %1615 = vrot.lane.b32.xlu0 %v6975_v29, %s6074_s16 }
 0x40a   :  { %1617 = vrot.lane.b32.xlu1 %v6981_v32, %s6074_s16 }
 0x43e   :  { %v1524_v35 = vpop.permute.xlu0 %1523 }
 0x440   :  { %v1526_v37 = vpop.permute.xlu1 %1525 }
 0x442   :  { %v1588_v58 = vpop.permute.xlu0 %1587 }
 0x443   :  { %v1636_v32 = vsel %vm1635_vm3, %v1524_v35, %v1588_v58 }
 0x444   :  { %v1590_v7 = vpop.permute.xlu1 %1589  ;;  %v1652_v21 = vadd.f32 %v1636_v32, %v6885_v0 }
 0x445   :  { %v1637_v9 = vsel %vm1635_vm3, %v1526_v37, %v1590_v7 }
 0x446   :  { %v1528_v20 = vpop.permute.xlu0 %1527  ;;  %v1653_v18 = vadd.f32 %v1637_v9, %v6893_v4  ;;  %v1684_v58 = vmul.f32 0.2, %v1652_v21  ;;  %vm1668_vm4 = vcmp.gt.f32.partialorder %v1652_v21, 0.0 }
 0x448   :  { %v1530_v22 = vpop.permute.xlu1 %1529  ;;  %v1685_v7 = vmul.f32 0.2, %v1653_v18  ;;  %vm1669_vm5 = vcmp.gt.f32.partialorder %v1653_v18, 0.0 }
 0x44a   :  { %v1592_v16 = vpop.permute.xlu0 %1591 }
 0x44b   :  { %v1638_v63 = vsel %vm1635_vm3, %v1528_v20, %v1592_v16 }
 0x44c   :  { %v1594_v43 = vpop.permute.xlu1 %1593  ;;  %v1654_v2 = vadd.f32 %v6881_v8, %v1638_v63  ;;  %v7000_v63 = vsel %vm1668_vm4, %v1652_v21, %v1684_v58  ;;  %v7002_v8 = vsel %vm1669_vm5, %v1653_v18, %v1685_v7 }
 0x44d   :  { %v1639_v47 = vsel %vm1635_vm3, %v1530_v22, %v1594_v43 }
 0x44e   :  { %v1532_v30 = vpop.permute.xlu0 %1531  ;;  %v1655_v0 = vadd.f32 %v6891_v3, %v1639_v47  ;;  %v1686_v22 = vmul.f32 0.2, %v1654_v2  ;;  %vm1670_vm7 = vcmp.gt.f32.partialorder %v1654_v2, 0.0 }
 0x450   :  { %v1534_v33 = vpop.permute.xlu1 %1533  ;;  %vm1671_vm8 = vcmp.gt.f32.partialorder %v1655_v0, 0.0 }
 0x452   :  { %v1596_v26 = vpop.permute.xlu0 %1595 }
 0x453   :  { %v1640_v45 = vsel %vm1635_vm3, %v1532_v30, %v1596_v26  ;;  %v1687_v26 = vmul.f32 0.2, %v1655_v0 }
 0x454   :  { %v1598_v31 = vpop.permute.xlu1 %1597  ;;  %v1656_v4 = vadd.f32 %v1640_v45, %v6909_v11 }
 0x455   :  { %v1641_v54 = vsel %vm1635_vm3, %v1534_v33, %v1598_v31 }
 0x456   :  { %v1536_v51 = vpop.permute.xlu0 %1535  ;;  %v1657_v20 = vadd.f32 %v1641_v54, %v6917_v13  ;;  %vm1672_vm9 = vcmp.gt.f32.partialorder %v1656_v4, 0.0  ;;  %v1688_v47 = vmul.f32 0.2, %v1656_v4  ;;  %v7008_v13 = vsel %vm1670_vm7, %v1654_v2, %v1686_v22 }
 0x457   :  { %v7031_v30 = vsel %vm1716_vm6, %v7008_v13, -inf }
 0x458   :  { %v1538_v1 = vpop.permute.xlu1 %1537  ;;  %v1689_v3 = vmul.f32 0.2, %v1657_v20  ;;  %vm1673_vm10 = vcmp.gt.f32.partialorder %v1657_v20, 0.0  ;;  %v7025_v2 = vsel %vm1672_vm9, %v1656_v4, %v1688_v47 }
 0x45a   :  { %v1600_v17 = vpop.permute.xlu0 %1599 }
 0x45b   :  { %v1642_v43 = vsel %vm1635_vm3, %v1536_v51, %v1600_v17 }
 0x45c   :  { %v1602_v6 = vpop.permute.xlu1 %1601  ;;  %v1658_v54 = vadd.f32 %v6905_v10, %v1642_v43 }
 0x45d   :  { %v1643_v33 = vsel %vm1635_vm3, %v1538_v1, %v1602_v6  ;;  %v7013_v6 = vsel %vm1716_vm6, %v7000_v63, -inf  ;;  %v7017_v1 = vsel %vm1716_vm6, %v7002_v8, -inf }
 0x45e   :  { %v1540_v29 = vpop.permute.xlu0 %1539  ;;  %v1659_v18 = vadd.f32 %v6915_v15, %v1643_v33  ;;  %vm1674_vm11 = vcmp.gt.f32.partialorder %v1658_v54, 0.0 }
 0x460   :  { %v1542_v12 = vpop.permute.xlu1 %1541  ;;  %v1691_v32 = vmul.f32 0.2, %v1659_v18  ;;  %vm1675_vm12 = vcmp.gt.f32.partialorder %v1659_v18, 0.0 }
 0x462   :  { %v1604_v46 = vpop.permute.xlu0 %1603  ;;  %v7049_v43 = vsel %vm1675_vm12, %v1659_v18, %v1691_v32 }
 0x463   :  { %v1644_v11 = vsel %vm1635_vm3, %v1540_v29, %v1604_v46  ;;  %v7033_v29 = vsel %vm1673_vm10, %v1657_v20, %v1689_v3  ;;  %v1727_v18 = vsel %vm1716_vm6, %v7049_v43, -inf }
 0x464   :  { %v1606_v19 = vpop.permute.xlu1 %1605  ;;  %v1660_v15 = vadd.f32 %v1644_v11, %v6933_v25 }
 0x465   :  { %v1645_v17 = vsel %vm1635_vm3, %v1542_v12, %v1606_v19  ;;  %v7022_v12 = vsel %vm1671_vm8, %v1655_v0, %v1687_v26 }
 0x466   :  { %v1544_v44 = vpop.permute.xlu0 %1543  ;;  %v1661_v19 = vadd.f32 %v1645_v17, %v6941_v61  ;;  %v1720_v25 = vsel %vm1716_vm6, %v7022_v12, -inf  ;;  %v1721_v61 = vsel %vm1716_vm6, %v7025_v2, -inf  ;;  %v1692_v0 = vmul.f32 0.2, %v1660_v15 }
 0x467   :  { %vm1676_vm13 = vcmp.gt.f32.partialorder %v1660_v15, 0.0 }
 0x468   :  { %v1546_v35 = vpop.permute.xlu1 %1545  ;;  %v1693_v4 = vmul.f32 0.2, %v1661_v19  ;;  %vm1677_vm14 = vcmp.gt.f32.partialorder %v1661_v19, 0.0 }
 0x46a   :  { %v1608_v9 = vpop.permute.xlu0 %1607  ;;  %v7056_v3 = vsel %vm1677_vm14, %v1661_v19, %v1693_v4 }
 0x46b   :  { %v1646_v10 = vsel %vm1635_vm3, %v1544_v44, %v1608_v9  ;;  %v1690_v44 = vmul.f32 0.2, %v1658_v54 }
 0x46c   :  { %v1610_v16 = vpop.permute.xlu1 %1609  ;;  %v1662_v37 = vadd.f32 %v6929_v24, %v1646_v10  ;;  %v1723_v24 = vsel %vm1716_vm6, %v7033_v29, -inf }
 0x46d   :  { %v1647_v46 = vsel %vm1635_vm3, %v1546_v35, %v1610_v16  ;;  %v1724_v17 = vmax.f32 %v7017_v1, %v1723_v24 }
 0x46e   :  { %v1548_v45 = vpop.permute.xlu0 %1547  ;;  %v1663_v35 = vadd.f32 %v6939_v49, %v1647_v46  ;;  %v7047_v49 = vsel %vm1674_vm11, %v1658_v54, %v1690_v44  ;;  %v1694_v16 = vmul.f32 0.2, %v1662_v37  ;;  %vm1678_vm15 = vcmp.gt.f32.partialorder %v1662_v37, 0.0 }
 0x46f   :  { %v1731_v44 = vsel %vm1716_vm6, %v7056_v3, -inf }
 0x470   :  { %v1550_v21 = vpop.permute.xlu1 %1549  ;;  %v1695_v33 = vmul.f32 0.2, %v1663_v35  ;;  %vm1679_vm2 = vcmp.gt.f32.partialorder %v1663_v35, 0.0 }
 0x472   :  { %v1612_v51 = vpop.permute.xlu0 %1611  ;;  %v7064_v10 = vsel %vm1679_vm2, %v1663_v35, %v1695_v33 }
 0x473   :  { %v1648_v31 = vsel %vm1635_vm3, %v1548_v45, %v1612_v51  ;;  %v1722_v45 = vmax.f32 %v7013_v6, %v1721_v61  ;;  %v7062_v6 = vsel %vm1678_vm15, %v1662_v37, %v1694_v16 }
 0x474   :  { %v1614_v58 = vpop.permute.xlu1 %1613  ;;  %v1664_v9 = vadd.f32 %v1648_v31, %v6957_v27  ;;  %v1725_v27 = vsel %vm1716_vm6, %v7047_v49, -inf }
 0x475   :  { %v1649_v7 = vsel %vm1635_vm3, %v1550_v21, %v1614_v58  ;;  %v1726_v51 = vmax.f32 %v7031_v30, %v1725_v27  ;;  %v1728_v58 = vmax.f32 %v1720_v25, %v1727_v18  ;;  %v1735_v30 = vsel %vm1716_vm6, %v7064_v10, -inf }
 0x476   :  { %v1665_v20 = vadd.f32 %v1649_v7, %v6965_v28  ;;  %v1552_v22 = vpop.permute.xlu0 %1551  ;;  %v7054_v28 = vsel %vm1676_vm13, %v1660_v15, %v1692_v0  ;;  %v1696_v54 = vmul.f32 0.2, %v1664_v9  ;;  %vm1680_vm5 = vcmp.gt.f32.partialorder %v1664_v9, 0.0 }
 0x477   :  { %v1729_v1 = vsel %vm1716_vm6, %v7054_v28, -inf  ;;  %v1732_v7 = vmax.f32 %v1724_v17, %v1731_v44  ;;  %v1736_v24 = vmax.f32 %v1728_v58, %v1735_v30  ;;  %v7094_v17 = vld [vmem:[#allocation8] sm:$0xff]  }
 0x478   :  { %v1697_v26 = vmul.f32 0.2, %v1665_v20  ;;  %v1554_v47 = vpop.permute.xlu1 %1553  ;;  %vm1681_vm4 = vcmp.gt.f32.partialorder %v1665_v20, 0.0  ;;  %v7075_v32 = vsel %vm1680_vm5, %v1664_v9, %v1696_v54  ;;  %v1730_v9 = vmax.f32 %v1722_v45, %v1729_v1  ;;  %4930 = vmatprep.mubr.bf16.mxu1 %v7094_v17 }
 0x47a   :  { %v1616_v11 = vpop.permute.xlu0 %1615  ;;  %v7066_v46 = vsel %vm1681_vm4, %v1665_v20, %v1697_v26  ;;  %v1737_v20 = vsel %vm1716_vm6, %v7075_v32, -inf }
 0x47b   :  { %v1650_v21 = vsel %vm1635_vm3, %v1552_v22, %v1616_v11  ;;  %v1739_v61 = vsel %vm1716_vm6, %v7066_v46, -inf  ;;  %v1738_v26 = vmax.f32 %v1730_v9, %v1737_v20 }
 0x47c   :  { %v1666_v15 = vadd.f32 %v6953_v5, %v1650_v21  ;;  %v1618_v19 = vpop.permute.xlu1 %1617  ;;  %v1733_v5 = vsel %vm1716_vm6, %v7062_v6, -inf  ;;  %v1740_v16 = vmax.f32 %v1732_v7, %v1739_v61 }
 0x47d   :  { %v1651_v31 = vsel %vm1635_vm3, %v1554_v47, %v1618_v19  ;;  %v1734_v22 = vmax.f32 %v1726_v51, %v1733_v5 }
 0x47e   :  { %vm1682_vm7 = vcmp.gt.f32.partialorder %v1666_v15, 0.0  ;;  %v1698_v37 = vmul.f32 0.2, %v1666_v15  ;;  %v1667_v35 = vadd.f32 %v6963_v53, %v1651_v31  ;;  %v1745_v54 = vmax.f32 %v1738_v26, %v1740_v16 }
 0x480   :  { %v7084_v0 = vsel %vm1682_vm7, %v1666_v15, %v1698_v37  ;;  %vm1683_vm3 = vcmp.gt.f32.partialorder %v1667_v35, 0.0  ;;  %v1699_v4 = vmul.f32 0.2, %v1667_v35 }
 0x481   :  { %v1741_v53 = vsel %vm1716_vm6, %v7084_v0, -inf }
 0x482   :  { %v7090_v25 = vsel %vm1683_vm3, %v1667_v35, %v1699_v4  ;;  %v1742_v47 = vmax.f32 %v1734_v22, %v1741_v53 }
 0x483   :  { %v1743_v33 = vsel %vm1716_vm6, %v7090_v25, -inf  ;;  %vm3495_vm6 = vcmask 1048568  }
 0x484   :  { %v1744_v27 = vmax.f32 %v1736_v24, %v1743_v33 }
 0x486   :  { %v1746_v11 = vmax.f32 %v1742_v47, %v1744_v27 }
 0x488   :  { %v1747_v45 = vmax.f32 %v1745_v54, %v1746_v11 }
 0x48a   :  { %1748 = vmax.xlane.f32.xlu0 %v1747_v45 }
 0x517   :  { %v1749_v18 = vpop.xlane.xlu0 %1748 }
 0x518   :  { %v1750_v21 = vrot.slane %v1749_v18, 4 }
 0x51a   :  { %v1751_v15 = vmax.f32 %v1749_v18, %v1750_v21 }
 0x51c   :  { %v1752_v19 = vrot.slane %v1751_v15, 2 }
 0x51e   :  { %v1753_v51 = vmax.f32 %v1751_v15, %v1752_v19 }
 0x520   :  { %v1754_v1 = vrot.slane %v1753_v51, 1 }
 0x522   :  { %v1755_v44 = vmax.f32 %v1753_v51, %v1754_v1 }
 0x524   :  { %5346 = vpush %v1755_v44 }
 0x555   :  { %s5347_s18 = spop %5346 }
 0x556   :  { %v1757_v31 = vstv %s5347_s18 }
 0x557   :  { %v1758_v37 = vsub.f32 %v7000_v63, %v1757_v31  ;;  %v1759_v35 = vsub.f32 %v7002_v8, %v1757_v31  ;;  %v1760_v58 = vsub.f32 %v7008_v13, %v1757_v31  ;;  %v1761_v5 = vsub.f32 %v7022_v12, %v1757_v31 }
 0x558   :  { %v1762_v30 = vsub.f32 %v7025_v2, %v1757_v31  ;;  %v1763_v61 = vsub.f32 %v7033_v29, %v1757_v31  ;;  %v1764_v22 = vsub.f32 %v7047_v49, %v1757_v31  ;;  %v1765_v8 = vsub.f32 %v7049_v43, %v1757_v31 }
 0x559   :  { %v1774_v7 = vmul.f32 1.442695, %v1758_v37  ;;  %v1776_v4 = vmul.f32 1.442695, %v1759_v35  ;;  %v1778_v9 = vmul.f32 1.442695, %v1760_v58  ;;  %v1766_v12 = vsub.f32 %v7054_v28, %v1757_v31 }
 0x55a   :  { %v1780_v20 = vmul.f32 1.442695, %v1761_v5  ;;  %v1782_v53 = vmul.f32 1.442695, %v1762_v30  ;;  %v1784_v63 = vmul.f32 1.442695, %v1763_v61  ;;  %v1767_v29 = vsub.f32 %v7056_v3, %v1757_v31 }
 0x55b   :  { %5616 = vpow2.f32 %v1774_v7  ;;  %v1786_v13 = vmul.f32 1.442695, %v1764_v22  ;;  %v1788_v2 = vmul.f32 1.442695, %v1765_v8  ;;  %v1790_v24 = vmul.f32 1.442695, %v1766_v12 }
 0x55c   :  { %5618 = vpow2.f32 %v1776_v4  ;;  %v1768_v16 = vsub.f32 %v7062_v6, %v1757_v31  ;;  %v1792_v49 = vmul.f32 1.442695, %v1767_v29  ;;  %v1769_v33 = vsub.f32 %v7064_v10, %v1757_v31  ;;  %v7161_v22 = vld [vmem:[#allocation8 + $0x8] sm:$0xff]   ;;  %v7167_v8 = vld [vmem:[#allocation8 + $0x18] sm:$0xff]  }
 0x55d   :  { %5620 = vpow2.f32 %v1778_v9  ;;  %v1770_v3 = vsub.f32 %v7075_v32, %v1757_v31  ;;  %v1771_v11 = vsub.f32 %v7066_v46, %v1757_v31  ;;  %v1772_v32 = vsub.f32 %v7084_v0, %v1757_v31  ;;  %v7173_v12 = vld [vmem:[#allocation8 + $0x28] sm:$0xff]   ;;  %v7179_v29 = vld [vmem:[#allocation8 + $0x38] sm:$0xff]  }
 0x55e   :  { %5622 = vpow2.f32 %v1780_v20  ;;  %v1794_v27 = vmul.f32 1.442695, %v1768_v16  ;;  %v1796_v6 = vmul.f32 1.442695, %v1769_v33  ;;  %v1773_v19 = vsub.f32 %v7090_v25, %v1757_v31 }
 0x55f   :  { %5624 = vpow2.f32 %v1782_v53  ;;  %v1798_v21 = vmul.f32 1.442695, %v1770_v3  ;;  %v1800_v15 = vmul.f32 1.442695, %v1771_v11  ;;  %v1802_v44 = vmul.f32 1.442695, %v1772_v32 }
 0x560   :  { %5626 = vpow2.f32 %v1784_v63  ;;  %v1804_v37 = vmul.f32 1.442695, %v1773_v19  ;;  %v7163_v63 = vld [vmem:[#allocation8 + $0x10] sm:$0xff]  }
 0x561   :  { %5628 = vpow2.f32 %v1786_v13  ;;  %v7169_v13 = vld [vmem:[#allocation8 + $0x20] sm:$0xff]  }
 0x562   :  { %5630 = vpow2.f32 %v1788_v2  ;;  %v7175_v2 = vld [vmem:[#allocation8 + $0x30] sm:$0xff]  }
 0x563   :  { %5632 = vpow2.f32 %v1790_v24  ;;  %v8316_v24 = vmov 0  }
 0x564   :  { %5634 = vpow2.f32 %v1792_v49 }
 0x565   :  { %v7109_v26 = vpop.eup %5616  ;;  %5636 = vpow2.f32 %v1794_v27 }
 0x566   :  { %v7111_v43 = vpop.eup %5618  ;;  %5638 = vpow2.f32 %v1796_v6 }
 0x567   :  { %v7113_v47 = vpop.eup %5620  ;;  %v1806_v28 = vpack.c.bf16 %v7111_v43, %v7109_v26  ;;  %5640 = vpow2.f32 %v1798_v21 }
 0x568   :  { %v7118_v54 = vpop.eup %5622  ;;  %5642 = vpow2.f32 %v1800_v15 }
 0x569   :  { %v7121_v10 = vpop.eup %5624  ;;  %4914 = vmatprep.subr.bf16.mxu1 %v1806_v28  ;;  %v1807_v45 = vpack.c.bf16 %v7118_v54, %v7113_v47  ;;  %5644 = vpow2.f32 %v1802_v44 }
 0x56a   :  { %v7125_v18 = vpop.eup %5626  ;;  %4915 = vmatpush3.bf16.msra.mxu1 %v1806_v28  ;;  %5646 = vpow2.f32 %v1804_v37 }
 0x56b   :  { %4916 = vmatprep.subr.bf16.mxu1 %v1807_v45  ;;  %v7129_v51 = vpop.eup %5628  ;;  %v1808_v46 = vpack.c.bf16 %v7125_v18, %v7121_v10 }
 0x56c   :  { %v7133_v1 = vpop.eup %5630 }
 0x56d   :  { %v7135_v35 = vpop.eup %5632  ;;  %v1809_v0 = vpack.c.bf16 %v7133_v1, %v7129_v51 }
 0x56e   :  { %4917 = vmatpush3.bf16.msra.mxu1 %v1807_v45  ;;  %v7139_v58 = vpop.eup %5634 }
 0x56f   :  { %4918 = vmatprep.subr.bf16.mxu1 %v1808_v46  ;;  %v7141_v25 = vpop.eup %5636  ;;  %v1810_v31 = vpack.c.bf16 %v7139_v58, %v7135_v35 }
 0x570   :  { %v7145_v5 = vpop.eup %5638 }
 0x571   :  { %v7147_v30 = vpop.eup %5640  ;;  %v1811_v61 = vpack.c.bf16 %v7145_v5, %v7141_v25 }
 0x572   :  { %4919 = vmatpush3.bf16.msra.mxu1 %v1808_v46  ;;  %v7151_v7 = vpop.eup %5642 }
 0x573   :  { %4920 = vmatprep.subr.bf16.mxu1 %v1809_v0  ;;  %v7153_v4 = vpop.eup %5644  ;;  %v1812_v9 = vpack.c.bf16 %v7151_v7, %v7147_v30 }
 0x574   :  { %v7157_v20 = vpop.eup %5646 }
 0x575   :  { %v1813_v53 = vpack.c.bf16 %v7157_v20, %v7153_v4 }
 0x576   :  { %4921 = vmatpush3.bf16.msra.mxu1 %v1809_v0 }
 0x577   :  { %4922 = vmatprep.subr.bf16.mxu1 %v1810_v31 }
 0x57a   :  { %4923 = vmatpush3.bf16.msra.mxu1 %v1810_v31 }
 0x57b   :  { %4924 = vmatprep.subr.bf16.mxu1 %v1811_v61 }
 0x57e   :  { %4925 = vmatpush3.bf16.msra.mxu1 %v1811_v61 }
 0x57f   :  { %4926 = vmatprep.subr.bf16.mxu1 %v1812_v9 }
 0x582   :  { %4927 = vmatpush3.bf16.msra.mxu1 %v1812_v9 }
 0x583   :  { %4928 = vmatprep.subr.bf16.mxu1 %v1813_v53 }
 0x586   :  { %4929 = vmatpush3.bf16.msra.mxu1 %v1813_v53 }
 0x589   :  { %4931 = vmatmul.mubr.bf16.vlgmr.msra.gmra.mrb[48].mxu1 %v7161_v22 }
 0x58a   :  { %4934 = vmatprep.mubr.bf16.mxu1 %v7163_v63 }
 0x591   :  { %4935 = vmatmul.mubr.bf16.gmra.mrb[52].mxu1 %v7167_v8 }
 0x592   :  { %4938 = vmatprep.mubr.bf16.mxu1 %v7169_v13 }
 0x599   :  { %4939 = vmatmul.mubr.bf16.gmra.mrb[56].mxu1 %v7173_v12 }
 0x59a   :  { %4942 = vmatprep.mubr.bf16.mxu1 %v7175_v2 }
 0x5a1   :  { %4943 = vmatmul.mubr.bf16.gmra.mrb[60].mxu1 %v7179_v29 }
 0x5a2   :  { %2352 = vmatprep.mubr.bf16.mxu1 %v8316_v24 }
 0x65c   :  { %v4932_v16 = vpop.f32.mrb[48].mxu1 }
 0x65d   :  { %v1896_v49 = vpop.f32.mrb[49].mxu1 }
 0x65e   :  { %v4933_v33 = vpop.f32.mrb[50].mxu1 }
 0x65f   :  { %v1960_v28 = vpack.c.bf16 %v4933_v33, %v4932_v16  ;;  %v1899_v27 = vpop.f32.mrb[51].mxu1 }
 0x660   :  { %v1959_v3 = vpack.c.bf16 %v1899_v27, %v1896_v49 }
 0x662   :  { %4946 = vmatprep.subr.bf16.mxu0 %v1959_v3 }
 0x663   :  { %4947 = vmatpush3.bf16.msra.mxu0 %v1959_v3 }
 0x664   :  { %v4936_v6 = vpop.f32.mrb[52].mxu1  ;;  %4948 = vmatprep.subr.bf16.mxu0 %v1960_v28 }
 0x665   :  { %v1912_v11 = vpop.f32.mrb[53].mxu1 }
 0x666   :  { %v4937_v45 = vpop.f32.mrb[54].mxu1 }
 0x667   :  { %v1962_v21 = vpack.c.bf16 %v4937_v45, %v4936_v6  ;;  %v1915_v32 = vpop.f32.mrb[55].mxu1  ;;  %4949 = vmatpush3.bf16.msra.mxu0 %v1960_v28 }
 0x668   :  { %v1961_v15 = vpack.c.bf16 %v1915_v32, %v1912_v11 }
 0x66a   :  { %4950 = vmatprep.subr.bf16.mxu0 %v1961_v15 }
 0x66b   :  { %4951 = vmatpush3.bf16.msra.mxu0 %v1961_v15 }
 0x66c   :  { %v4940_v19 = vpop.f32.mrb[56].mxu1  ;;  %4952 = vmatprep.subr.bf16.mxu0 %v1962_v21 }
 0x66d   :  { %v1928_v46 = vpop.f32.mrb[57].mxu1 }
 0x66e   :  { %v4941_v44 = vpop.f32.mrb[58].mxu1 }
 0x66f   :  { %v1964_v37 = vpack.c.bf16 %v4941_v44, %v4940_v19  ;;  %v1931_v0 = vpop.f32.mrb[59].mxu1  ;;  %4953 = vmatpush3.bf16.msra.mxu0 %v1962_v21 }
 0x670   :  { %v1963_v31 = vpack.c.bf16 %v1931_v0, %v1928_v46 }
 0x672   :  { %4954 = vmatprep.subr.bf16.mxu0 %v1963_v31 }
 0x673   :  { %4955 = vmatpush3.bf16.msra.mxu0 %v1963_v31 }
 0x674   :  { %v4944_v61 = vpop.f32.mrb[60].mxu1  ;;  %4956 = vmatprep.subr.bf16.mxu0 %v1964_v37 }
 0x675   :  { %v1944_v9 = vpop.f32.mrb[61].mxu1 }
 0x676   :  { %v4945_v53 = vpop.f32.mrb[62].mxu1 }
 0x677   :  { %v1966_v16 = vpack.c.bf16 %v4945_v53, %v4944_v61  ;;  %v1947_v49 = vpop.f32.mrb[63].mxu1  ;;  %4957 = vmatpush3.bf16.msra.mxu0 %v1964_v37 }
 0x678   :  { %v1965_v33 = vpack.c.bf16 %v1947_v49, %v1944_v9 }
 0x67a   :  { %4958 = vmatprep.subr.bf16.mxu0 %v1965_v33 }
 0x67b   :  { %4959 = vmatpush3.bf16.msra.mxu0 %v1965_v33  ;;  %v8317_v33 = vmov 1  }
 0x67c   :  { %4960 = vmatprep.subr.bf16.mxu0 %v1966_v16 }
 0x67f   :  { %4961 = vmatpush3.bf16.msra.mxu0 %v1966_v16 }
 0x682   :  { %4963 = vmatmul.mubr.bf16.vlgmr.msra.gmra.mrb[64].mxu0 %v6801_v50 }
 0x683   :  { %4966 = vmatprep.mubr.bf16.mxu0 %v6803_v52 }
 0x68a   :  { %4967 = vmatmul.mubr.bf16.gmra.mrb[68].mxu0 %v6808_v34 }
 0x68b   :  { %4970 = vmatprep.mubr.bf16.mxu0 %v6810_v55 }
 0x692   :  { %4971 = vmatmul.mubr.bf16.gmra.mrb[72].mxu0 %v6815_v36 }
 0x693   :  { %4974 = vmatprep.mubr.bf16.mxu0 %v6817_v56 }
 0x69a   :  { %4975 = vmatmul.mubr.bf16.gmra.mrb[76].mxu0 %v6822_v59 }
 0x755   :  { %v4964_v28 = vpop.f32.mrb[64].mxu0 }
 0x756   :  { %v2010_v27 = vadd.f32 1e-30, %v4964_v28  ;;  %v2001_v3 = vpop.f32.mrb[65].mxu0 }
 0x757   :  { %v4965_v6 = vpop.f32.mrb[66].mxu0  ;;  %v2002_v45 = vadd.f32 1e-30, %v2001_v3 }
 0x758   :  { %5648 = vrcp.f32 %v2010_v27  ;;  %v2004_v11 = vpop.f32.mrb[67].mxu0  ;;  %v2013_v15 = vadd.f32 1e-30, %v4965_v6 }
 0x759   :  { %5650 = vrcp.f32 %v2002_v45  ;;  %v2005_v3 = vadd.f32 1e-30, %v2004_v11 }
 0x75d   :  { %v4968_v50 = vpop.f32.mrb[68].mxu0 }
 0x75e   :  { %v2017_v21 = vpop.f32.mrb[69].mxu0 }
 0x75f   :  { %v2018_v52 = vadd.f32 1e-30, %v2017_v21  ;;  %v4969_v32 = vpop.f32.mrb[70].mxu0 }
 0x760   :  { %v2029_v34 = vadd.f32 1e-30, %v4969_v32  ;;  %v7190_v55 = vpop.f32.mrb[71].mxu0 }
 0x761   :  { %5652 = vrcp.f32 %v2018_v52 }
 0x762   :  { %v5649_v36 = vpop.eup %5648  ;;  %5654 = vrcp.f32 %v2029_v34  ;;  %v2026_v34 = vadd.f32 1e-30, %v4968_v50 }
 0x763   :  { %v2082_v56 = vmul.f32 %v5649_v36, %v7113_v47  ;;  %v5651_v0 = vpop.eup %5650 }
 0x764   :  { %v2080_v53 = vmul.f32 %v5651_v0, %v7109_v26  ;;  %v2021_v0 = vadd.f32 1e-30, %v7190_v55 }
 0x765   :  { %2233 = vperm.xlu1 %5461, %v2082_v56   ;;  %v4972_v59 = vpop.f32.mrb[72].mxu0 }
 0x766   :  { %v2042_v19 = vadd.f32 1e-30, %v4972_v59  ;;  %v2033_v46 = vpop.f32.mrb[73].mxu0 }
 0x767   :  { %v4973_v44 = vpop.f32.mrb[74].mxu0  ;;  %v2034_v31 = vadd.f32 1e-30, %v2033_v46 }
 0x768   :  { %v7193_v37 = vpop.f32.mrb[75].mxu0  ;;  %5656 = vrcp.f32 %v2042_v19  ;;  %v2045_v49 = vadd.f32 1e-30, %v4973_v44 }
 0x769   :  { %5462 = vset.pattern.permute.xlu1 %v8316_v24  ;;  %5658 = vrcp.f32 %v2013_v15  ;;  %v2037_v55 = vadd.f32 1e-30, %v7193_v37 }
 0x76a   :  { %2124 = vperm.xlu1 %5462, %v2082_v56   ;;  %5660 = vrcp.f32 %v2034_v31 }
 0x76b   :  { %v5653_v61 = vpop.eup %5652  ;;  %5662 = vrcp.f32 %v2045_v49  ;;  %v2211_v49 = vsel %vm571_vm0, %v6853_v42, 0.0  ;;  %v2208_v42 = vsel %vm571_vm0, %v6831_v39, 0.0 }
 0x76c   :  { %v7197_v9 = vmul.f32 %v5653_v61, %v7121_v10  ;;  %v5655_v16 = vpop.eup %5654  ;;  %5664 = vrcp.f32 %v2005_v3  ;;  %v2098_v3 = vsel %vm571_vm0, %v6843_v14, 0.0 }
 0x76d   :  { %v4976_v47 = vpop.f32.mrb[76].mxu0  ;;  %v2087_v45 = vmul.f32 %v5655_v16, %v7133_v1  ;;  %v2210_v16 = vsel %vm571_vm0, %v6847_v41, 0.0 }
 0x76e   :  { %5463 = vset.pattern.permute.xlu1 %v8317_v33  ;;  %v2049_v28 = vpop.f32.mrb[77].mxu0  ;;  %2241 = vperm.xlu0 %5380, %v7197_v9   ;;  %v2058_v26 = vadd.f32 1e-30, %v4976_v47 }
 0x76f   :  { %v4977_v27 = vpop.f32.mrb[78].mxu0  ;;  %2225 = vperm.xlu1 %5463, %v2080_v53   ;;  %v2050_v1 = vadd.f32 1e-30, %v2049_v28 }
 0x770   :  { %v7202_v6 = vpop.f32.mrb[79].mxu0  ;;  %5666 = vrcp.f32 %v2058_v26  ;;  %v2061_v59 = vadd.f32 1e-30, %v4977_v27 }
 0x771   :  { %5668 = vrcp.f32 %v2050_v1  ;;  %v2053_v61 = vadd.f32 1e-30, %v7202_v6  ;;  %v2099_v6 = vsel %vm571_vm0, %v6849_v60, 0.0  ;;  %v2096_v60 = vsel %vm571_vm0, %v6827_v38, 0.0 }
 0x772   :  { %5472 = vset.pattern.permute.xlu0 %v8316_v24  ;;  %v5657_v10 = vpop.eup %5656  ;;  %5670 = vrcp.f32 %v2026_v34  ;;  %v2097_v1 = vsel %vm571_vm0, %v6833_v40, 0.0  ;;  %v2103_v38 = vsel %vm571_vm0, %v6883_v62, 0.0 }
 0x773   :  { %2149 = vperm.xlu0 %5472, %v2087_v45   ;;  %5464 = vset.pattern.permute.xlu1 %v8316_v24  ;;  %v5659_v21 = vpop.eup %5658  ;;  %v2090_v52 = vmul.f32 %v5657_v10, %v7141_v25  ;;  %5672 = vrcp.f32 %v2061_v59 }
 0x774   :  { %2114 = vperm.xlu1 %5464, %v2080_v53   ;;  %v2083_v11 = vmul.f32 %v5659_v21, %v7118_v54  ;;  %v5661_v32 = vpop.eup %5660  ;;  %5674 = vrcp.f32 %v2021_v0  ;;  %v2209_v21 = vsel %vm571_vm0, %v6837_v23, 0.0 }
 0x775   :  { %v2088_v36 = vmul.f32 %v5661_v32, %v7135_v35  ;;  %v5663_v56 = vpop.eup %5662  ;;  %5676 = vrcp.f32 %v2037_v55  ;;  %v8320_v55 = vld [vmem:[#allocation21_spill] sm:$0xff] }
 0x776   :  { %v5665_v25 = vpop.eup %5664  ;;  %v2091_v54 = vmul.f32 %v5663_v56, %v7145_v5  ;;  %5678 = vrcp.f32 %v2053_v61  ;;  %v2212_v62 = vsel %vm571_vm0, %v8320_v55, 0.0 }
 0x777   :  { %5474 = vset.pattern.permute.xlu0 %v8317_v33  ;;  %v2081_v50 = vmul.f32 %v5665_v25, %v7111_v43 }
 0x778   :  { %2265 = vperm.xlu0 %5474, %v2090_v52   ;;  %5465 = vset.pattern.permute.xlu1 %v8317_v33 }
 0x779   :  { %2237 = vperm.xlu1 %5465, %v2083_v11  }
 0x77a   :  { %v5667_v15 = vpop.eup %5666 }
 0x77b   :  { %v2094_v35 = vmul.f32 %v5667_v15, %v7153_v4  ;;  %v5669_v19 = vpop.eup %5668 }
 0x77c   :  { %5476 = vset.pattern.permute.xlu0 %v8316_v24  ;;  %v5671_v46 = vpop.eup %5670  ;;  %v2092_v5 = vmul.f32 %v5669_v19, %v7147_v30 }
 0x77d   :  { %2154 = vperm.xlu0 %5476, %v2088_v36   ;;  %5466 = vset.pattern.permute.xlu1 %v8316_v24  ;;  %v5673_v44 = vpop.eup %5672  ;;  %v2086_v43 = vmul.f32 %v5671_v46, %v7129_v51 }
 0x77e   :  { %2129 = vperm.xlu1 %5466, %v2083_v11   ;;  %v2095_v4 = vmul.f32 %v5673_v44, %v7157_v20  ;;  %v5675_v30 = vpop.eup %5674 }
 0x77f   :  { %v2085_v51 = vmul.f32 %v5675_v30, %v7125_v18  ;;  %v5677_v20 = vpop.eup %5676 }
 0x780   :  { %v2089_v31 = vmul.f32 %v5677_v20, %v7139_v58  ;;  %v5679_v18 = vpop.eup %5678  ;;  %v8321_v20 = vld [vmem:[#allocation23_spill] sm:$0xff] }
 0x781   :  { %2169 = vperm.xlu0 %5476, %v2091_v54   ;;  %v2093_v37 = vmul.f32 %v5679_v18, %v7151_v7 }
 0x782   :  { %5467 = vset.pattern.permute.xlu1 %v8317_v33 }
 0x783   :  { %2229 = vperm.xlu1 %5467, %v2081_v50  }
 0x785   :  { %5478 = vset.pattern.permute.xlu0 %v8317_v33 }
 0x786   :  { %2281 = vperm.xlu0 %5478, %v2094_v35  }
 0x787   :  { %5468 = vset.pattern.permute.xlu1 %v8316_v24 }
 0x788   :  { %2119 = vperm.xlu1 %5468, %v2081_v50  }
 0x78a   :  { %5480 = vset.pattern.permute.xlu0 %v8316_v24 }
 0x78b   :  { %2174 = vperm.xlu0 %5480, %v2092_v5  }
 0x78c   :  { %5469 = vset.pattern.permute.xlu1 %v8317_v33 }
 0x78d   :  { %2249 = vperm.xlu1 %5469, %v2086_v43  }
 0x78f   :  { %2189 = vperm.xlu0 %5480, %v2095_v4  }
 0x791   :  { %5470 = vset.pattern.permute.xlu1 %v8316_v24 }
 0x792   :  { %2144 = vperm.xlu1 %5470, %v2086_v43   ;;  %v8319_v43 = vld [vmem:[#allocation25_spill] sm:$0xff] }
 0x793   :  { %v2215_v0 = vsel %vm571_vm0, %v8319_v43, 0.0 }
 0x796   :  { %2134 = vperm.xlu1 %5470, %v7197_v9  }
 0x79a   :  { %5471 = vset.pattern.permute.xlu1 %v8317_v33 }
 0x79b   :  { %2253 = vperm.xlu1 %5471, %v2087_v45  }
 0x79f   :  { %2245 = vperm.xlu1 %5471, %v2085_v51  }
 0x7a3   :  { %5473 = vset.pattern.permute.xlu1 %v8316_v24 }
 0x7a4   :  { %2139 = vperm.xlu1 %5473, %v2085_v51  }
 0x7a8   :  { %2164 = vperm.xlu1 %5473, %v2090_v52  }
 0x7ac   :  { %5475 = vset.pattern.permute.xlu1 %v8317_v33 }
 0x7ad   :  { %2257 = vperm.xlu1 %5475, %v2088_v36  }
 0x7b1   :  { %2269 = vperm.xlu1 %5475, %v2091_v54   ;;  %v2102_v54 = vsel %vm571_vm0, %v6875_v48, 0.0 }
 0x7b5   :  { %2261 = vperm.xlu1 %5475, %v2089_v31  }
 0x7b9   :  { %5477 = vset.pattern.permute.xlu1 %v8316_v24 }
 0x7ba   :  { %2159 = vperm.xlu1 %5477, %v2089_v31   ;;  %v2213_v31 = vsel %vm571_vm0, %v8321_v20, 0.0 }
 0x7be   :  { %5479 = vset.pattern.permute.xlu1 %v8317_v33 }
 0x7bf   :  { %2273 = vperm.xlu1 %5479, %v2092_v5   ;;  %v8318_v5 = vld [vmem:[#allocation24_spill] sm:$0xff] }
 0x7c0   :  { %v2214_v44 = vsel %vm571_vm0, %v8318_v5, 0.0  ;;  %v8331_v5 = vld [vmem:[#allocation28_spill] sm:$0xff] }
 0x7c3   :  { %2285 = vperm.xlu1 %5479, %v2095_v4  }
 0x7c7   :  { %2277 = vperm.xlu1 %5479, %v2093_v37  }
 0x7cb   :  { %5481 = vset.pattern.permute.xlu1 %v8316_v24 }
 0x7cc   :  { %2179 = vperm.xlu1 %5481, %v2093_v37  }
 0x7d0   :  { %2184 = vperm.xlu1 %5481, %v2094_v35  }
 0x7e4   :  { %v2234_v58 = vpop.permute.xlu1 %2233 }
 0x7e5   :  { %v2290_v28 = vmul.f32 %v2234_v58, %v2210_v16  ;;  %v8323_v16 = vld [vmem:[#allocation22_spill] sm:$0xff] }
 0x7e9   :  { %v2125_v9 = vpop.permute.xlu1 %2124 }
 0x7ea   :  { %v2194_v10 = vmul.f32 %v2125_v9, %v2098_v3 }
 0x7ed   :  { %v2242_v56 = vpop.permute.xlu0 %2241 }
 0x7ee   :  { %v2226_v47 = vpop.permute.xlu1 %2225  ;;  %v2292_v18 = vmul.f32 %v2242_v56, %v2212_v62  ;;  %v8333_v62 = vld [vmem:[#allocation39_spill] sm:$0xff] }
 0x7ef   :  { %v2288_v11 = vmul.f32 %v2226_v47, %v2208_v42  ;;  %v8322_v47 = vld [vmem:[#allocation20_spill] sm:$0xff]  ;;  %v2222_v20 = vsel %vm571_vm0, %v8333_v62, 0.0 }
 0x7f2   :  { %v2150_v25 = vpop.permute.xlu0 %2149 }
 0x7f3   :  { %v2115_v53 = vpop.permute.xlu1 %2114  ;;  %v2199_v15 = vmul.f32 %v2150_v25, %v2103_v38  ;;  %v8329_v25 = vld [vmem:[#allocation29_spill] sm:$0xff] }
 0x7f4   :  { %v2192_v36 = vmul.f32 %v2115_v53, %v2096_v60  ;;  %v2100_v53 = vsel %vm571_vm0, %v8322_v47, 0.0  ;;  %v8327_v60 = vld [vmem:[#allocation33_spill] sm:$0xff] }
 0x7f5   :  { %v8335_v47 = vld [vmem:[#allocation37_spill] sm:$0xff] }
 0x7f7   :  { %v2266_v46 = vpop.permute.xlu0 %2265 }
 0x7f8   :  { %v2238_v33 = vpop.permute.xlu1 %2237 }
 0x7f9   :  { %v2291_v7 = vmul.f32 %v2238_v33, %v2211_v49  ;;  %v2101_v49 = vsel %vm571_vm0, %v8323_v16, 0.0 }
 0x7fb   :  { %v2307_v27 = vpack.c.bf16 %v2291_v7, %v2290_v28 }
 0x7fc   :  { %v2155_v37 = vpop.permute.xlu0 %2154 }
 0x7fd   :  { %v2130_v45 = vpop.permute.xlu1 %2129 }
 0x7fe   :  { %v2195_v26 = vmul.f32 %v2130_v45, %v2099_v6  ;;  %v8324_v6 = vld [vmem:[#allocation30_spill] sm:$0xff] }
 0x7ff   :  { %v2106_v45 = vsel %vm571_vm0, %v8324_v6, 0.0  ;;  %v8337_v6 = vld [vmem:[#allocation34_spill] sm:$0xff] }
 0x800   :  { %v2306_v41 = vpack.c.bf16 %v2195_v26, %v2194_v10  ;;  %v8325_v10 = vld [vmem:[#allocation32_spill] sm:$0xff] }
 0x801   :  { %v2107_v26 = vsel %vm571_vm0, %v8325_v10, 0.0 }
 0x802   :  { %v2230_v52 = vpop.permute.xlu1 %2229 }
 0x803   :  { %v2289_v32 = vmul.f32 %v2230_v52, %v2209_v21 }
 0x805   :  { %v2305_v14 = vpack.c.bf16 %v2289_v32, %v2288_v11  ;;  %v8326_v32 = vld [vmem:[#allocation31_spill] sm:$0xff] }
 0x807   :  { %2320 = vmatprep.subr.bf16.mxu1 %v2305_v14  ;;  %v2120_v34 = vpop.permute.xlu1 %2119  ;;  %v2218_v14 = vsel %vm571_vm0, %v8326_v32, 0.0  ;;  %v8339_v32 = vld [vmem:[#allocation40_spill] sm:$0xff] }
 0x808   :  { %v2193_v39 = vmul.f32 %v2120_v34, %v2097_v1  ;;  %v2219_v1 = vsel %vm571_vm0, %v8327_v60, 0.0 }
 0x80a   :  { %v2304_v59 = vpack.c.bf16 %v2193_v39, %v2192_v36  ;;  %v2298_v36 = vmul.f32 %v2266_v46, %v2218_v14  ;;  %v2105_v46 = vsel %vm571_vm0, %v8331_v5, 0.0  ;;  %v2111_v14 = vsel %vm571_vm0, %v8339_v32, 0.0  ;;  %v2697_v5 = vld [vmem:[#allocation9 + $0x30] sm:$0xff] }
 0x80b   :  { %v2874_v32 = vld [vmem:[%s8250_s7 + $0x30] sm:$0xff] }
 0x80c   :  { %2321 = vmatpush1.bf16.msra.mxu1 %v2304_v59  ;;  %v2250_v23 = vpop.permute.xlu1 %2249  ;;  %v8328_v59 = vld [vmem:[#allocation27_spill] sm:$0xff] }
 0x80d   :  { %2322 = vmatprep.subr.bf16.mxu1 %v2307_v27  ;;  %v2294_v48 = vmul.f32 %v2250_v23, %v2214_v44  ;;  %v2170_v27 = vpop.permute.xlu0 %2169  ;;  %v2216_v23 = vsel %vm571_vm0, %v8328_v59, 0.0  ;;  %v2710_v59 = vld [vmem:[#allocation9 + $0x98] sm:$0xff] }
 0x80e   :  { %v2203_v42 = vmul.f32 %v2170_v27, %v2107_v26  ;;  %v8336_v27 = vld [vmem:[#allocation36_spill] sm:$0xff] }
 0x810   :  { %2323 = vmatpush1.bf16.msra.mxu1 %v2306_v41 }
 0x811   :  { %v2145_v40 = vpop.permute.xlu1 %2144 }
 0x812   :  { %v2198_v50 = vmul.f32 %v2145_v40, %v2102_v54  ;;  %v2217_v54 = vsel %vm571_vm0, %v8329_v25, 0.0  ;;  %v2694_v25 = vld [vmem:[#allocation9 + $0x18] sm:$0xff] }
 0x814   :  { %v2310_v35 = vpack.c.bf16 %v2199_v15, %v2198_v50 }
 0x815   :  { %v2135_v19 = vpop.permute.xlu1 %2134 }
 0x816   :  { %v2196_v28 = vmul.f32 %v2135_v19, %v2100_v53  ;;  %v2221_v53 = vsel %vm571_vm0, %v8335_v47, 0.0 }
 0x81a   :  { %v2254_v4 = vpop.permute.xlu1 %2253 }
 0x81b   :  { %v2295_v30 = vmul.f32 %v2254_v4, %v2215_v0 }
 0x81d   :  { %v2311_v51 = vpack.c.bf16 %v2295_v30, %v2294_v48  ;;  %v2282_v30 = vpop.permute.xlu0 %2281 }
 0x81e   :  { %v2246_v61 = vpop.permute.xlu1 %2245 }
 0x81f   :  { %v2293_v58 = vmul.f32 %v2246_v61, %v2213_v31  ;;  %v2302_v61 = vmul.f32 %v2282_v30, %v2222_v20  ;;  %v2700_v30 = vld [vmem:[#allocation9 + $0x48] sm:$0xff] }
 0x821   :  { %v2309_v9 = vpack.c.bf16 %v2293_v58, %v2292_v18 }
 0x823   :  { %2324 = vmatprep.subr.bf16.mxu1 %v2309_v9  ;;  %v2140_v33 = vpop.permute.xlu1 %2139 }
 0x824   :  { %v2197_v7 = vmul.f32 %v2140_v33, %v2101_v49  ;;  %v2175_v49 = vpop.permute.xlu0 %2174 }
 0x826   :  { %v2308_v3 = vpack.c.bf16 %v2197_v7, %v2196_v28 }
 0x827   :  { %v2165_v41 = vpop.permute.xlu1 %2164 }
 0x828   :  { %v2202_v21 = vmul.f32 %v2165_v41, %v2106_v45  ;;  %2325 = vmatpush1.bf16.msra.mxu1 %v2308_v3  ;;  %v2109_v3 = vsel %vm571_vm0, %v8336_v27, 0.0  ;;  %v2108_v45 = vsel %vm571_vm0, %v8337_v6, 0.0  ;;  %v2706_v27 = vld [vmem:[#allocation9 + $0x78] sm:$0xff]  ;;  %v2868_v6 = vld [vmem:[%s8250_s7] sm:$0xff] }
 0x829   :  { %2326 = vmatprep.subr.bf16.mxu1 %v2311_v51  ;;  %v8332_v51 = vld [vmem:[#allocation41_spill] sm:$0xff]  ;;  %v2204_v26 = vmul.f32 %v2175_v49, %v2108_v45  ;;  %v2869_v45 = vld [vmem:[%s8250_s7 + $0x8] sm:$0xff] }
 0x82a   :  { %v2314_v52 = vpack.c.bf16 %v2203_v42, %v2202_v21  ;;  %v2223_v55 = vsel %vm571_vm0, %v8332_v51, 0.0  ;;  %v2190_v42 = vpop.permute.xlu0 %2189  ;;  %v2717_v51 = vld [vmem:[#allocation9 + $0xd0] sm:$0xff]  ;;  %v2722_v49 = vld [vmem:[#allocation9 + $0xf8] sm:$0xff] }
 0x82c   :  { %2327 = vmatpush1.bf16.msra.mxu1 %v2310_v35  ;;  %v2258_v11 = vpop.permute.xlu1 %2257  ;;  %v8330_v35 = vld [vmem:[#allocation26_spill] sm:$0xff] }
 0x82d   :  { %v2296_v40 = vmul.f32 %v2258_v11, %v2216_v23  ;;  %v2104_v19 = vsel %vm571_vm0, %v8330_v35, 0.0 }
 0x82e   :  { %v2200_v43 = vmul.f32 %v2155_v37, %v2104_v19  ;;  %v8334_v37 = vld [vmem:[#allocation35_spill] sm:$0xff] }
 0x82f   :  { %v2220_v9 = vsel %vm571_vm0, %v8334_v37, 0.0  ;;  %v2720_v37 = vld [vmem:[#allocation9 + $0xe8] sm:$0xff] }
 0x830   :  { %v2270_v34 = vpop.permute.xlu1 %2269 }
 0x831   :  { %v2299_v39 = vmul.f32 %v2270_v34, %v2219_v1  ;;  %v2207_v1 = vmul.f32 %v2190_v42, %v2111_v14  ;;  %v2875_v14 = vld [vmem:[%s8250_s7 + $0x38] sm:$0xff] }
 0x833   :  { %v2315_v56 = vpack.c.bf16 %v2299_v39, %v2298_v36  ;;  %v2692_v39 = vld [vmem:[#allocation9 + $0x8] sm:$0xff] }
 0x834   :  { %v2262_v38 = vpop.permute.xlu1 %2261 }
 0x835   :  { %v2297_v15 = vmul.f32 %v2262_v38, %v2217_v54  ;;  %v2695_v38 = vld [vmem:[#allocation9 + $0x20] sm:$0xff] }
 0x837   :  { %v2313_v50 = vpack.c.bf16 %v2297_v15, %v2296_v40  ;;  %v2696_v40 = vld [vmem:[#allocation9 + $0x28] sm:$0xff]  ;;  %v2713_v15 = vld [vmem:[#allocation9 + $0xb0] sm:$0xff] }
 0x838   :  { %v5268_v35 = vpack.c.bf16 %v2696_v40, %v2695_v38 }
 0x839   :  { %2328 = vmatprep.subr.bf16.mxu1 %v2313_v50  ;;  %v2160_v44 = vpop.permute.xlu1 %2159  ;;  %v2714_v50 = vld [vmem:[#allocation9 + $0xb8] sm:$0xff] }
 0x83a   :  { %v2201_v0 = vmul.f32 %v2160_v44, %v2105_v46  ;;  %v5270_v19 = vpack.c.bf16 %v2714_v50, %v2713_v15  ;;  %v2698_v46 = vld [vmem:[#allocation9 + $0x38] sm:$0xff] }
 0x83b   :  { %v5272_v44 = vpack.c.bf16 %v2698_v46, %v2697_v5 }
 0x83c   :  { %v2312_v4 = vpack.c.bf16 %v2201_v0, %v2200_v43  ;;  %v2715_v43 = vld [vmem:[#allocation9 + $0xc0] sm:$0xff]  ;;  %v2716_v0 = vld [vmem:[#allocation9 + $0xc8] sm:$0xff] }
 0x83e   :  { %2329 = vmatpush1.bf16.msra.mxu1 %v2312_v4  ;;  %v2274_v48 = vpop.permute.xlu1 %2273  ;;  %v2699_v4 = vld [vmem:[#allocation9 + $0x40] sm:$0xff] }
 0x83f   :  { %2330 = vmatprep.subr.bf16.mxu1 %v2315_v56  ;;  %v2300_v33 = vmul.f32 %v2274_v48, %v2220_v9  ;;  %v2709_v56 = vld [vmem:[#allocation9 + $0x90] sm:$0xff]  ;;  %v5274_v48 = vpack.c.bf16 %v2716_v0, %v2715_v43  ;;  %v5276_v62 = vpack.c.bf16 %v2700_v30, %v2699_v4  ;;  %v2703_v9 = vld [vmem:[#allocation9 + $0x60] sm:$0xff]  ;;  %v7390_v4 = vstv %s6620_s14 }
 0x840   :  { %v5262_v23 = vpack.c.bf16 %v2710_v59, %v2709_v56 }
 0x842   :  { %2331 = vmatpush1.bf16.msra.mxu1 %v2314_v52  ;;  %v2286_v31 = vpop.permute.xlu1 %2285  ;;  %v8338_v52 = vld [vmem:[#allocation38_spill] sm:$0xff] }
 0x843   :  { %v2303_v18 = vmul.f32 %v2286_v31, %v2223_v55  ;;  %v2110_v11 = vsel %vm571_vm0, %v8338_v52, 0.0  ;;  %v2718_v55 = vld [vmem:[#allocation9 + $0xd8] sm:$0xff]  ;;  %v2701_v31 = vld [vmem:[#allocation9 + $0x50] sm:$0xff]  ;;  %v2873_v52 = vld [vmem:[%s8250_s7 + $0x28] sm:$0xff] }
 0x844   :  { %v5278_v20 = vpack.c.bf16 %v2718_v55, %v2717_v51 }
 0x845   :  { %v2319_v58 = vpack.c.bf16 %v2303_v18, %v2302_v61  ;;  %v2702_v61 = vld [vmem:[#allocation9 + $0x58] sm:$0xff] }
 0x846   :  { %v2278_v16 = vpop.permute.xlu1 %2277  ;;  %v5280_v18 = vpack.c.bf16 %v2702_v61, %v2701_v31 }
 0x847   :  { %v2301_v28 = vmul.f32 %v2278_v16, %v2221_v53  ;;  %v2704_v53 = vld [vmem:[#allocation9 + $0x68] sm:$0xff]  ;;  %v2721_v16 = vld [vmem:[#allocation9 + $0xf0] sm:$0xff] }
 0x849   :  { %v2317_v7 = vpack.c.bf16 %v2301_v28, %v2300_v33  ;;  %v5284_v33 = vpack.c.bf16 %v2704_v53, %v2703_v9  ;;  %v5286_v28 = vpack.c.bf16 %v2722_v49, %v2721_v16 }
 0x84b   :  { %2332 = vmatprep.subr.bf16.mxu1 %v2317_v7  ;;  %v2180_v10 = vpop.permute.xlu1 %2179  ;;  %v2705_v7 = vld [vmem:[#allocation9 + $0x70] sm:$0xff] }
 0x84c   :  { %v2205_v41 = vmul.f32 %v2180_v10, %v2109_v3  ;;  %v5288_v3 = vpack.c.bf16 %v2706_v27, %v2705_v7  ;;  %v2870_v10 = vld [vmem:[%s8250_s7 + $0x10] sm:$0xff] }
 0x84e   :  { %v2316_v21 = vpack.c.bf16 %v2205_v41, %v2204_v26  ;;  %v5290_v26 = vpack.c.bf16 %v2869_v45, %v2868_v6  ;;  %v2871_v41 = vld [vmem:[%s8250_s7 + $0x18] sm:$0xff] }
 0x84f   :  { %v2185_v60 = vpop.permute.xlu1 %2184  ;;  %v5294_v42 = vpack.c.bf16 %v2871_v41, %v2870_v10 }
 0x850   :  { %v2206_v34 = vmul.f32 %v2185_v60, %v2110_v11  ;;  %2333 = vmatpush1.bf16.msra.mxu1 %v2316_v21  ;;  %v2872_v21 = vld [vmem:[%s8250_s7 + $0x20] sm:$0xff]  ;;  %v5302_v60 = vpack.c.bf16 %v2875_v14, %v2874_v32 }
 0x851   :  { %2334 = vmatprep.subr.bf16.mxu1 %v2319_v58  ;;  %v2719_v58 = vld [vmem:[#allocation9 + $0xe0] sm:$0xff]  ;;  %v5298_v11 = vpack.c.bf16 %v2873_v52, %v2872_v21 }
 0x852   :  { %v2318_v36 = vpack.c.bf16 %v2207_v1, %v2206_v34  ;;  %v5282_v47 = vpack.c.bf16 %v2720_v37, %v2719_v58  ;;  %v2876_v1 = vld [vmem:[%s8250_s7 + $0x40] sm:$0xff]  ;;  %v2877_v34 = vld [vmem:[%s8250_s7 + $0x48] sm:$0xff] }
 0x854   :  { %2335 = vmatpush1.bf16.msra.mxu1 %v2318_v36  ;;  %v5306_v36 = vpack.c.bf16 %v2877_v34, %v2876_v1 }
 0x855   :  { %5291 = vmatprep.subr.bf16.mxu1 %v5290_v26 }
 0x857   :  { %2353 = vmatmul.mubr.bf16.vlgmr.msra.gmra.mrb[64].mxu1 %v7094_v17  ;;  %v2707_v17 = vld [vmem:[#allocation9 + $0x80] sm:$0xff] }
 0x858   :  { %2362 = vmatprep.mubr.bf16.mxu1 %v8316_v24  ;;  %5293 = vmatpush3.bf16.msra.mxu1 %v5290_v26 }
 0x859   :  { %5295 = vmatprep.subr.bf16.mxu1 %v5294_v42 }
 0x85c   :  { %5297 = vmatpush3.bf16.msra.mxu1 %v5294_v42 }
 0x85d   :  { %5299 = vmatprep.subr.bf16.mxu1 %v5298_v11 }
 0x85f   :  { %2363 = vmatmul.mubr.bf16.gmra.mrb[68].mxu1 %v7161_v22  ;;  %v2708_v22 = vld [vmem:[#allocation9 + $0x88] sm:$0xff] }
 0x860   :  { %2372 = vmatprep.mubr.bf16.mxu1 %v8316_v24  ;;  %5301 = vmatpush3.bf16.msra.mxu1 %v5298_v11 }
 0x861   :  { %5303 = vmatprep.subr.bf16.mxu1 %v5302_v60 }
 0x864   :  { %5305 = vmatpush3.bf16.msra.mxu1 %v5302_v60 }
 0x865   :  { %5307 = vmatprep.subr.bf16.mxu1 %v5306_v36 }
 0x867   :  { %2373 = vmatmul.mubr.bf16.gmra.mrb[72].mxu1 %v7163_v63  ;;  %v2691_v63 = vld [vmem:[#allocation9] sm:$0xff] }
 0x868   :  { %2382 = vmatprep.mubr.bf16.mxu1 %v8316_v24  ;;  %5309 = vmatpush3.bf16.msra.mxu1 %v5306_v36 }
 0x86f   :  { %2383 = vmatmul.mubr.bf16.gmra.mrb[76].mxu1 %v7167_v8  ;;  %v5258_v8 = vpack.c.bf16 %v2708_v22, %v2707_v17  ;;  %v2878_v17 = vld [vmem:[%s8250_s7 + $0x50] sm:$0xff]  ;;  %v2879_v22 = vld [vmem:[%s8250_s7 + $0x58] sm:$0xff] }
 0x870   :  { %2392 = vmatprep.mubr.bf16.mxu1 %v8316_v24 }
 0x871   :  { %5259 = vmatprep.subr.bf16.mxu0 %v5258_v8 }
 0x877   :  { %2393 = vmatmul.mubr.bf16.gmra.mrb[80].mxu1 %v7169_v13  ;;  %v5260_v13 = vpack.c.bf16 %v2692_v39, %v2691_v63  ;;  %v5310_v63 = vpack.c.bf16 %v2879_v22, %v2878_v17 }
 0x878   :  { %2402 = vmatprep.mubr.bf16.mxu1 %v8316_v24 }
 0x879   :  { %5261 = vmatpush3.bf16.msra.mxu0 %v5260_v13  ;;  %5311 = vmatprep.subr.bf16.mxu1 %v5310_v63 }
 0x87a   :  { %5263 = vmatprep.subr.bf16.mxu0 %v5262_v23  ;;  %5313 = vmatpush3.bf16.msra.mxu1 %v5310_v63 }
 0x87f   :  { %2403 = vmatmul.mubr.bf16.gmra.mrb[84].mxu1 %v7173_v12  ;;  %v2693_v12 = vld [vmem:[#allocation9 + $0x10] sm:$0xff] }
 0x880   :  { %2412 = vmatprep.mubr.bf16.mxu1 %v8316_v24  ;;  %v5264_v54 = vpack.c.bf16 %v2694_v25, %v2693_v12 }
 0x882   :  { %5265 = vmatpush3.bf16.msra.mxu0 %v5264_v54 }
 0x887   :  { %2413 = vmatmul.mubr.bf16.gmra.mrb[88].mxu1 %v7175_v2  ;;  %v2711_v2 = vld [vmem:[#allocation9 + $0xa0] sm:$0xff] }
 0x888   :  { %2422 = vmatprep.mubr.bf16.mxu1 %v8316_v24  ;;  %v2712_v24 = vld [vmem:[#allocation9 + $0xa8] sm:$0xff] }
 0x88f   :  { %2423 = vmatmul.mubr.bf16.gmra.mrb[92].mxu1 %v7179_v29  ;;  %v5266_v29 = vpack.c.bf16 %v2712_v24, %v2711_v2 }
 0x891   :  { %5267 = vmatprep.subr.bf16.mxu0 %v5266_v29 }
 0x892   :  { %5269 = vmatpush3.bf16.msra.mxu0 %v5268_v35 }
 0x893   :  { %5271 = vmatprep.subr.bf16.mxu0 %v5270_v19 }
 0x896   :  { %5273 = vmatpush3.bf16.msra.mxu0 %v5272_v44  ;;  %v7387_v44 = vstv %s6615_s4 }
 0x897   :  { %5275 = vmatprep.subr.bf16.mxu0 %v5274_v48 }
 0x89a   :  { %5277 = vmatpush3.bf16.msra.mxu0 %v5276_v62 }
 0x89b   :  { %5279 = vmatprep.subr.bf16.mxu0 %v5278_v20 }
 0x89e   :  { %5281 = vmatpush3.bf16.msra.mxu0 %v5280_v18 }
 0x89f   :  { %5283 = vmatprep.subr.bf16.mxu0 %v5282_v47 }
 0x8a2   :  { %5285 = vmatpush3.bf16.msra.mxu0 %v5284_v33 }
 0x8a3   :  { %5287 = vmatprep.subr.bf16.mxu0 %v5286_v28 }
 0x8a6   :  { %5289 = vmatpush3.bf16.msra.mxu0 %v5288_v3 }
 0x92a   :  { %v2354_v8 = vpop.f32.mrb[64].mxu1 }
 0x92b   :  { %v2433_v39 = vadd.f32 1e-06, %v2354_v8  ;;  %v2356_v56 = vpop.f32.mrb[65].mxu1 }
 0x92c   :  { %v2562_v59 = vadd.f32 1e-06, %v2356_v56  ;;  %v2358_v13 = vpop.f32.mrb[66].mxu1 }
 0x92d   :  { %5680 = vlog2.f32 %v2433_v39  ;;  %v2434_v23 = vadd.f32 1e-06, %v2358_v13  ;;  %v2360_v12 = vpop.f32.mrb[67].mxu1 }
 0x92e   :  { %5682 = vlog2.f32 %v2562_v59  ;;  %v2563_v25 = vadd.f32 1e-06, %v2360_v12 }
 0x92f   :  { %5684 = vlog2.f32 %v2434_v23 }
 0x930   :  { %5686 = vlog2.f32 %v2563_v25 }
 0x932   :  { %v2364_v54 = vpop.f32.mrb[68].mxu1 }
 0x933   :  { %v2435_v2 = vadd.f32 1e-06, %v2364_v54  ;;  %v2366_v24 = vpop.f32.mrb[69].mxu1 }
 0x934   :  { %v2564_v38 = vadd.f32 1e-06, %v2366_v24  ;;  %v2368_v29 = vpop.f32.mrb[70].mxu1 }
 0x935   :  { %5688 = vlog2.f32 %v2435_v2  ;;  %v2436_v40 = vadd.f32 1e-06, %v2368_v29  ;;  %v2370_v15 = vpop.f32.mrb[71].mxu1  ;;  %v8340_v2 = vld [vmem:[#allocation18_spill] sm:$0xff] }
 0x936   :  { %5690 = vlog2.f32 %v2564_v38  ;;  %v2565_v50 = vadd.f32 1e-06, %v2370_v15 }
 0x937   :  { %v5681_v35 = vpop.eup %5680  ;;  %5692 = vlog2.f32 %v2436_v40  ;;  %v8341_v40 = vld [vmem:[#allocation19_spill] sm:$0xff] }
 0x938   :  { %v5683_v19 = vpop.eup %5682  ;;  %v2450_v5 = vmul.f32 0.6931472, %v5681_v35  ;;  %5694 = vlog2.f32 %v2565_v50 }
 0x939   :  { %v5685_v46 = vpop.eup %5684  ;;  %v2579_v43 = vmul.f32 0.6931472, %v5683_v19 }
 0x93a   :  { %v5687_v0 = vpop.eup %5686  ;;  %v2482_v48 = vmul.f32 %v7387_v44, %v2450_v5  ;;  %v2452_v30 = vmul.f32 0.6931472, %v5685_v46  ;;  %v2374_v51 = vpop.f32.mrb[72].mxu1 }
 0x93b   :  { %v2611_v55 = vmul.f32 %v7390_v4, %v2579_v43  ;;  %v2581_v62 = vmul.f32 0.6931472, %v5687_v0  ;;  %v2437_v20 = vadd.f32 1e-06, %v2374_v51  ;;  %v2376_v31 = vpop.f32.mrb[73].mxu1 }
 0x93c   :  { %v2498_v61 = vmul.f32 1.442695, %v2482_v48  ;;  %v2483_v18 = vmul.f32 %v7387_v44, %v2452_v30  ;;  %v2378_v58 = vpop.f32.mrb[74].mxu1  ;;  %v2566_v16 = vadd.f32 1e-06, %v2376_v31 }
 0x93d   :  { %v2627_v37 = vmul.f32 1.442695, %v2611_v55  ;;  %v2612_v9 = vmul.f32 %v7390_v4, %v2581_v62  ;;  %5696 = vlog2.f32 %v2437_v20  ;;  %v2380_v47 = vpop.f32.mrb[75].mxu1  ;;  %v2438_v28 = vadd.f32 1e-06, %v2378_v58 }
 0x93e   :  { %5698 = vpow2.f32 %v2498_v61  ;;  %v2500_v53 = vmul.f32 1.442695, %v2483_v18  ;;  %v2567_v3 = vadd.f32 1e-06, %v2380_v47 }
 0x93f   :  { %v5689_v49 = vpop.eup %5688  ;;  %5700 = vpow2.f32 %v2627_v37  ;;  %v2629_v33 = vmul.f32 1.442695, %v2612_v9 }
 0x940   :  { %v5691_v7 = vpop.eup %5690  ;;  %5702 = vpow2.f32 %v2500_v53  ;;  %v2454_v27 = vmul.f32 0.6931472, %v5689_v49 }
 0x941   :  { %v5693_v6 = vpop.eup %5692  ;;  %5704 = vpow2.f32 %v2629_v33  ;;  %v2583_v45 = vmul.f32 0.6931472, %v5691_v7 }
 0x942   :  { %v5695_v10 = vpop.eup %5694  ;;  %v2484_v26 = vmul.f32 %v7387_v44, %v2454_v27  ;;  %v2456_v41 = vmul.f32 0.6931472, %v5693_v6  ;;  %5706 = vlog2.f32 %v2566_v16  ;;  %v2384_v42 = vpop.f32.mrb[76].mxu1 }
 0x943   :  { %v2613_v21 = vmul.f32 %v7390_v4, %v2583_v45  ;;  %v2585_v52 = vmul.f32 0.6931472, %v5695_v10  ;;  %5708 = vlog2.f32 %v2438_v28  ;;  %v2439_v11 = vadd.f32 1e-06, %v2384_v42  ;;  %v2386_v32 = vpop.f32.mrb[77].mxu1 }
 0x944   :  { %v2502_v14 = vmul.f32 1.442695, %v2484_v26  ;;  %v2485_v60 = vmul.f32 %v7387_v44, %v2456_v41  ;;  %5710 = vlog2.f32 %v2567_v3  ;;  %v2388_v1 = vpop.f32.mrb[78].mxu1  ;;  %v2568_v63 = vadd.f32 1e-06, %v2386_v32 }
 0x945   :  { %v2631_v34 = vmul.f32 1.442695, %v2613_v21  ;;  %v2614_v36 = vmul.f32 %v7390_v4, %v2585_v52  ;;  %5712 = vlog2.f32 %v2439_v11  ;;  %v2390_v17 = vpop.f32.mrb[79].mxu1  ;;  %v2440_v56 = vadd.f32 1e-06, %v2388_v1 }
 0x946   :  { %5714 = vpow2.f32 %v2502_v14  ;;  %v2504_v22 = vmul.f32 1.442695, %v2485_v60  ;;  %v2569_v23 = vadd.f32 1e-06, %v2390_v17 }
 0x947   :  { %v5697_v8 = vpop.eup %5696  ;;  %5716 = vpow2.f32 %v2631_v34  ;;  %v2633_v39 = vmul.f32 1.442695, %v2614_v36 }
 0x948   :  { %v5699_v59 = vpop.eup %5698  ;;  %5718 = vpow2.f32 %v2504_v22  ;;  %v2458_v13 = vmul.f32 0.6931472, %v5697_v8 }
 0x949   :  { %v5701_v12 = vpop.eup %5700  ;;  %5720 = vpow2.f32 %v2633_v39  ;;  %v2530_v15 = vadd.f32 %v5699_v59, %v8341_v40 }
 0x94a   :  { %v5703_v25 = vpop.eup %5702  ;;  %v2486_v54 = vmul.f32 %v7387_v44, %v2458_v13  ;;  %5722 = vlog2.f32 %v2568_v63  ;;  %v2659_v24 = vadd.f32 %v5701_v12, %v8340_v2  ;;  %v2394_v38 = vpop.f32.mrb[80].mxu1 }
 0x94b   :  { %v5705_v29 = vpop.eup %5704  ;;  %5724 = vlog2.f32 %v2440_v56  ;;  %v2396_v50 = vpop.f32.mrb[81].mxu1  ;;  %v2531_v31 = vadd.f32 %v5703_v25, %v8341_v40 }
 0x94c   :  { %v5707_v35 = vpop.eup %5706  ;;  %5726 = vlog2.f32 %v2569_v23  ;;  %4530 = vmatprep.mubr.msk.f32.mxu0 %vm571_vm0, %v2659_v24  ;;  %v2660_v19 = vadd.f32 %v5705_v29, %v8340_v2  ;;  %v2398_v5 = vpop.f32.mrb[82].mxu1  ;;  %v2506_v30 = vmul.f32 1.442695, %v2486_v54 }
 0x94d   :  { %v5709_v46 = vpop.eup %5708  ;;  %v2587_v43 = vmul.f32 0.6931472, %v5707_v35  ;;  %4531 = vmatmul.mubr.msk.f32.vlgmr.msra.gmra.mrb[80].mxu0 %vm571_vm0, %v2530_v15  ;;  %v2400_v0 = vpop.f32.mrb[83].mxu1 }
 0x94e   :  { %v5711_v48 = vpop.eup %5710  ;;  %v2460_v51 = vmul.f32 0.6931472, %v5709_v46  ;;  %4532 = vmatprep.mubr.msk.f32.mxu0 %vm571_vm0, %v2660_v19  ;;  %5728 = vpow2.f32 %v2506_v30 }
 0x94f   :  { %v5713_v55 = vpop.eup %5712  ;;  %v2615_v62 = vmul.f32 %v7390_v4, %v2587_v43  ;;  %v2589_v20 = vmul.f32 0.6931472, %v5711_v48 }
 0x950   :  { %v5715_v61 = vpop.eup %5714  ;;  %v2487_v18 = vmul.f32 %v7387_v44, %v2460_v51  ;;  %v2462_v58 = vmul.f32 0.6931472, %v5713_v55  ;;  %v8342_v51 = vmov 0.0   ;;  %v2881_v55 = vld [vmem:[%s8250_s7 + $0x68] sm:$0xff] }
 0x951   :  { %v5717_v37 = vpop.eup %5716  ;;  %v2635_v9 = vmul.f32 1.442695, %v2615_v62  ;;  %v2616_v47 = vmul.f32 %v7390_v4, %v2589_v20  ;;  %4533 = vmatmul.mubr.msk.f32.gmra.mrb[82].mxu0 %vm571_vm0, %v2531_v31  ;;  %v2532_v3 = vadd.f32 %v5715_v61, %v8341_v40  ;;  %v2882_v20 = vld [vmem:[%s8250_s7 + $0x70] sm:$0xff]  ;;  %v2883_v31 = vld [vmem:[%s8250_s7 + $0x78] sm:$0xff] }
 0x952   :  { %v5719_v53 = vpop.eup %5718  ;;  %v2508_v16 = vmul.f32 1.442695, %v2487_v18  ;;  %v2488_v49 = vmul.f32 %v7387_v44, %v2462_v58  ;;  %v2661_v33 = vadd.f32 %v5717_v37, %v8340_v2  ;;  %v2404_v28 = vpop.f32.mrb[84].mxu1  ;;  %v5318_v61 = vpack.c.bf16 %v2883_v31, %v2882_v20 }
 0x953   :  { %v5721_v7 = vpop.eup %5720  ;;  %5730 = vpow2.f32 %v2635_v9  ;;  %v2637_v27 = vmul.f32 1.442695, %v2616_v47  ;;  %v2406_v6 = vpop.f32.mrb[85].mxu1  ;;  %v2533_v1 = vadd.f32 %v5719_v53, %v8341_v40 }
 0x954   :  { %v5723_v45 = vpop.eup %5722  ;;  %4534 = vmatprep.mubr.msk.f32.mxu0 %vm571_vm0, %v2661_v33  ;;  %v2662_v10 = vadd.f32 %v5721_v7, %v8340_v2  ;;  %v2408_v26 = vpop.f32.mrb[86].mxu1  ;;  %v2510_v11 = vmul.f32 1.442695, %v2488_v49 }
 0x955   :  { %v5725_v41 = vpop.eup %5724  ;;  %5732 = vpow2.f32 %v2637_v27  ;;  %v2591_v42 = vmul.f32 0.6931472, %v5723_v45  ;;  %4535 = vmatmul.mubr.msk.f32.gmra.mrb[84].mxu0 %vm571_vm0, %v2532_v3  ;;  %v2410_v21 = vpop.f32.mrb[87].mxu1 }
 0x956   :  { %v5727_v52 = vpop.eup %5726  ;;  %5734 = vpow2.f32 %v2508_v16  ;;  %v2464_v32 = vmul.f32 0.6931472, %v5725_v41  ;;  %4536 = vmatprep.mubr.msk.f32.mxu0 %vm571_vm0, %v2662_v10 }
 0x957   :  { %v2617_v14 = vmul.f32 %v7390_v4, %v2591_v42  ;;  %v2593_v60 = vmul.f32 0.6931472, %v5727_v52  ;;  %5736 = vpow2.f32 %v2510_v11 }
 0x958   :  { %v2489_v34 = vmul.f32 %v7387_v44, %v2464_v32  ;;  %v5729_v56 = vpop.eup %5728 }
 0x959   :  { %v2639_v36 = vmul.f32 1.442695, %v2617_v14  ;;  %v2618_v17 = vmul.f32 %v7390_v4, %v2593_v60  ;;  %4537 = vmatmul.mubr.msk.f32.gmra.mrb[86].mxu0 %vm571_vm0, %v2533_v1  ;;  %v2534_v4 = vadd.f32 %v5729_v56, %v8341_v40 }
 0x95a   :  { %v2512_v22 = vmul.f32 1.442695, %v2489_v34  ;;  %v2414_v63 = vpop.f32.mrb[88].mxu1 }
 0x95b   :  { %5738 = vpow2.f32 %v2639_v36  ;;  %v2641_v8 = vmul.f32 1.442695, %v2618_v17  ;;  %v2416_v39 = vpop.f32.mrb[89].mxu1 }
 0x95c   :  { %v2418_v59 = vpop.f32.mrb[90].mxu1 }
 0x95d   :  { %v5731_v13 = vpop.eup %5730  ;;  %5740 = vpow2.f32 %v2641_v8  ;;  %v2420_v23 = vpop.f32.mrb[91].mxu1 }
 0x95e   :  { %5742 = vpow2.f32 %v2512_v22  ;;  %v2663_v44 = vadd.f32 %v5731_v13, %v8340_v2 }
 0x95f   :  { %v5733_v12 = vpop.eup %5732 }
 0x960   :  { %v5735_v25 = vpop.eup %5734  ;;  %4538 = vmatprep.mubr.msk.f32.mxu0 %vm571_vm0, %v2663_v44  ;;  %v2664_v54 = vadd.f32 %v5733_v12, %v8340_v2 }
 0x961   :  { %4539 = vmatmul.mubr.msk.f32.gmra.mrb[88].mxu0 %vm571_vm0, %v2534_v4  ;;  %v2535_v38 = vadd.f32 %v5735_v25, %v8341_v40  ;;  %v5737_v15 = vpop.eup %5736 }
 0x962   :  { %4540 = vmatprep.mubr.msk.f32.mxu0 %vm571_vm0, %v2664_v54  ;;  %v2424_v24 = vpop.f32.mrb[92].mxu1  ;;  %v2536_v43 = vadd.f32 %v5737_v15, %v8341_v40 }
 0x963   :  { %v2426_v29 = vpop.f32.mrb[93].mxu1 }
 0x964   :  { %v2428_v50 = vpop.f32.mrb[94].mxu1 }
 0x965   :  { %v5739_v35 = vpop.eup %5738  ;;  %4541 = vmatmul.mubr.msk.f32.gmra.mrb[90].mxu0 %vm571_vm0, %v2535_v38  ;;  %v2430_v19 = vpop.f32.mrb[95].mxu1 }
 0x966   :  { %v2665_v5 = vadd.f32 %v5739_v35, %v8340_v2  ;;  %v7532_v19 = vld [vmem:[#allocation6] sm:$0xff]  }
 0x967   :  { %v5741_v46 = vpop.eup %5740 }
 0x968   :  { %v5743_v0 = vpop.eup %5742  ;;  %4542 = vmatprep.mubr.msk.f32.mxu0 %vm571_vm0, %v2665_v5  ;;  %v2666_v48 = vadd.f32 %v5741_v46, %v8340_v2  ;;  %v5904_v2 = vld [vmem:[#allocation2] sm:$0xff]  }
 0x969   :  { %4543 = vmatmul.mubr.msk.f32.gmra.mrb[92].mxu0 %vm571_vm0, %v2536_v43  ;;  %v2537_v30 = vadd.f32 %v5743_v0, %v8341_v40  ;;  %v2880_v40 = vld [vmem:[%s8250_s7 + $0x60] sm:$0xff]  ;;  %s6075_s7 = smov 127  }
 0x96a   :  { %4544 = vmatprep.mubr.msk.f32.mxu0 %vm571_vm0, %v2666_v48  ;;  %v5314_v62 = vpack.c.bf16 %v2881_v55, %v2880_v40 }
 0x96c   :  { %5315 = vmatprep.subr.bf16.mxu1 %v5314_v62 }
 0x96d   :  { %4545 = vmatmul.mubr.msk.f32.gmra.mrb[94].mxu0 %vm571_vm0, %v2537_v30  ;;  %5317 = vmatpush3.bf16.msra.mxu1 %v5314_v62 }
 0x96e   :  { %2827 = vmatprep.mubr.f32.mxu0 %v8342_v51  ;;  %5319 = vmatprep.subr.bf16.mxu1 %v5318_v61 }
 0x971   :  { %2828 = vmatmul.mubr.f32.gmra.mrb[96].mxu0 %v8342_v51  ;;  %5321 = vmatpush3.bf16.msra.mxu1 %v5318_v61 }
 0x972   :  { %2832 = vmatprep.mubr.f32.mxu0 %v8342_v51 }
 0x975   :  { %2833 = vmatmul.mubr.f32.gmra.mrb[98].mxu0 %v8342_v51 }
 0x976   :  { %2837 = vmatprep.mubr.f32.mxu0 %v8342_v51 }
 0x979   :  { %2838 = vmatmul.mubr.f32.gmra.mrb[100].mxu0 %v8342_v51 }
 0x97a   :  { %2842 = vmatprep.mubr.f32.mxu0 %v8342_v51 }
 0x97d   :  { %2843 = vmatmul.mubr.f32.gmra.mrb[102].mxu0 %v8342_v51 }
 0x97e   :  { %2847 = vmatprep.mubr.f32.mxu0 %v8342_v51 }
 0x981   :  { %2848 = vmatmul.mubr.f32.gmra.mrb[104].mxu0 %v8342_v51 }
 0x982   :  { %2852 = vmatprep.mubr.f32.mxu0 %v8342_v51 }
 0x985   :  { %2853 = vmatmul.mubr.f32.gmra.mrb[106].mxu0 %v8342_v51 }
 0x986   :  { %2857 = vmatprep.mubr.f32.mxu0 %v8342_v51 }
 0x989   :  { %2858 = vmatmul.mubr.f32.gmra.mrb[108].mxu0 %v8342_v51 }
 0x98a   :  { %2862 = vmatprep.mubr.f32.mxu0 %v8342_v51 }
 0x98d   :  { %2863 = vmatmul.mubr.f32.gmra.mrb[110].mxu0 %v8342_v51 }
 0x98e   :  { %5050 = vmatprep.mubr.bf16.mxu0 %v5904_v2 }
 0xa20   :  { %v4722_v18 = vpop.f32.mrb[80].mxu0 }
 0xa21   :  { %v4723_v58 = vpop.f32.mrb[81].mxu0 }
 0xa22   :  { %v7484_v37 = vadd.f32 %v4723_v58, %v4722_v18 }
 0xa24   :  { %v4725_v9 = vpop.f32.mrb[82].mxu0  ;;  %5010 = vmatprep.mubr.f32.mxu1 %v7484_v37 }
 0xa25   :  { %v4726_v47 = vpop.f32.mrb[83].mxu0 }
 0xa26   :  { %v7487_v53 = vadd.f32 %v4726_v47, %v4725_v9 }
 0xa28   :  { %v4728_v16 = vpop.f32.mrb[84].mxu0  ;;  %5011 = vmatmul.mubr.f32.vlgmr.msra.gmra.mrb[96].mxu1 %v7487_v53 }
 0xa29   :  { %v4729_v49 = vpop.f32.mrb[85].mxu0 }
 0xa2a   :  { %v7490_v33 = vadd.f32 %v4729_v49, %v4728_v16 }
 0xa2c   :  { %v4731_v28 = vpop.f32.mrb[86].mxu0  ;;  %5013 = vmatprep.mubr.f32.mxu1 %v7490_v33 }
 0xa2d   :  { %v4732_v7 = vpop.f32.mrb[87].mxu0 }
 0xa2e   :  { %v7493_v27 = vadd.f32 %v4732_v7, %v4731_v28 }
 0xa30   :  { %5014 = vmatmul.mubr.f32.gmra.mrb[98].mxu1 %v7493_v27 }
 0xa34   :  { %v4734_v3 = vpop.f32.mrb[88].mxu0 }
 0xa35   :  { %v4735_v6 = vpop.f32.mrb[89].mxu0 }
 0xa36   :  { %v7496_v45 = vadd.f32 %v4735_v6, %v4734_v3 }
 0xa38   :  { %v4737_v10 = vpop.f32.mrb[90].mxu0  ;;  %5016 = vmatprep.mubr.f32.mxu1 %v7496_v45 }
 0xa39   :  { %v4738_v26 = vpop.f32.mrb[91].mxu0 }
 0xa3a   :  { %v7499_v41 = vadd.f32 %v4738_v26, %v4737_v10 }
 0xa3c   :  { %v4740_v42 = vpop.f32.mrb[92].mxu0  ;;  %5017 = vmatmul.mubr.f32.gmra.mrb[100].mxu1 %v7499_v41 }
 0xa3d   :  { %v4741_v21 = vpop.f32.mrb[93].mxu0 }
 0xa3e   :  { %v7502_v52 = vadd.f32 %v4741_v21, %v4740_v42 }
 0xa40   :  { %v4743_v11 = vpop.f32.mrb[94].mxu0  ;;  %5019 = vmatprep.mubr.f32.mxu1 %v7502_v52 }
 0xa41   :  { %v4744_v32 = vpop.f32.mrb[95].mxu0 }
 0xa42   :  { %v7505_v14 = vadd.f32 %v4744_v32, %v4743_v11 }
 0xa44   :  { %5020 = vmatmul.mubr.f32.gmra.mrb[102].mxu1 %v7505_v14  ;;  %v4746_v60 = vpop.f32.mrb[96].mxu0 }
 0xa45   :  { %v4747_v1 = vpop.f32.mrb[97].mxu0 }
 0xa46   :  { %v7508_v34 = vadd.f32 %v4747_v1, %v4746_v60 }
 0xa48   :  { %v4749_v36 = vpop.f32.mrb[98].mxu0  ;;  %5022 = vmatprep.mubr.f32.mxu1 %v7508_v34 }
 0xa49   :  { %v4750_v17 = vpop.f32.mrb[99].mxu0 }
 0xa4a   :  { %v7511_v22 = vadd.f32 %v4750_v17, %v4749_v36 }
 0xa4c   :  { %v4752_v63 = vpop.f32.mrb[100].mxu0  ;;  %5023 = vmatmul.mubr.f32.gmra.mrb[104].mxu1 %v7511_v22 }
 0xa4d   :  { %v4753_v8 = vpop.f32.mrb[101].mxu0 }
 0xa4e   :  { %v7514_v39 = vadd.f32 %v4753_v8, %v4752_v63 }
 0xa50   :  { %v4755_v56 = vpop.f32.mrb[102].mxu0  ;;  %5025 = vmatprep.mubr.f32.mxu1 %v7514_v39 }
 0xa51   :  { %v4756_v59 = vpop.f32.mrb[103].mxu0 }
 0xa52   :  { %v7517_v13 = vadd.f32 %v4756_v59, %v4755_v56 }
 0xa54   :  { %v4758_v23 = vpop.f32.mrb[104].mxu0  ;;  %5026 = vmatmul.mubr.f32.gmra.mrb[106].mxu1 %v7517_v13 }
 0xa55   :  { %v4759_v44 = vpop.f32.mrb[105].mxu0 }
 0xa56   :  { %v7520_v12 = vadd.f32 %v4759_v44, %v4758_v23 }
 0xa58   :  { %v4761_v4 = vpop.f32.mrb[106].mxu0  ;;  %5028 = vmatprep.mubr.f32.mxu1 %v7520_v12 }
 0xa59   :  { %v4762_v25 = vpop.f32.mrb[107].mxu0 }
 0xa5a   :  { %v7523_v54 = vadd.f32 %v4762_v25, %v4761_v4  ;;  %v7543_v4 = vld [vmem:[#allocation6 + $0x8] sm:$0xff]   ;;  %v7546_v25 = vld [vmem:[#allocation6 + $0x10] sm:$0xff]  }
 0xa5c   :  { %5029 = vmatmul.mubr.f32.gmra.mrb[108].mxu1 %v7523_v54  ;;  %v4764_v24 = vpop.f32.mrb[108].mxu0 }
 0xa5d   :  { %v4765_v38 = vpop.f32.mrb[109].mxu0 }
 0xa5e   :  { %v7526_v29 = vadd.f32 %v4765_v38, %v4764_v24 }
 0xa60   :  { %v4767_v15 = vpop.f32.mrb[110].mxu0  ;;  %5031 = vmatprep.mubr.f32.mxu1 %v7526_v29 }
 0xa61   :  { %v4768_v50 = vpop.f32.mrb[111].mxu0 }
 0xa62   :  { %v7529_v35 = vadd.f32 %v4768_v50, %v4767_v15 }
 0xa64   :  { %5032 = vmatmul.mubr.f32.gmra.mrb[110].mxu1 %v7529_v35 }
 0xa65   :  { %5082 = vmatprep.mubr.bf16.mxu1 %v7532_v19 }
 0xafb   :  { %v5012_v5 = vpop.f32.mrb[96].mxu1 }
 0xafc   :  { %v2950_v46 = vpop.f32.mrb[97].mxu1 }
 0xafd   :  { %v5482_v43 = vpack.i.bf16 %v5012_v5, %v2950_v46  ;;  %v3230_v0 = vpack.c.bf16 %v5012_v5, %v2950_v46 }
 0xaff   :  { %3246 = vrot.lane.b32.xlu1 %v3230_v0, %s6075_s7 }
 0xb03   :  { %v5015_v48 = vpop.f32.mrb[98].mxu1 }
 0xb04   :  { %v2960_v30 = vpop.f32.mrb[99].mxu1 }
 0xb05   :  { %v5487_v51 = vpack.i.bf16 %v5015_v48, %v2960_v30  ;;  %v3231_v2 = vpack.c.bf16 %v5015_v48, %v2960_v30  ;;  %v7558_v48 = vld [vmem:[#allocation6 + $0x20] sm:$0xff]  }
 0xb07   :  { %3248 = vrot.lane.b32.xlu1 %v3231_v2, %s6075_s7 }
 0xb0f   :  { %v5018_v40 = vpop.f32.mrb[100].mxu1 }
 0xb10   :  { %v2970_v55 = vpop.f32.mrb[101].mxu1 }
 0xb11   :  { %v5492_v62 = vpack.i.bf16 %v5018_v40, %v2970_v55  ;;  %v3232_v20 = vpack.c.bf16 %v5018_v40, %v2970_v55 }
 0xb13   :  { %3250 = vrot.lane.b32.xlu0 %v3232_v20, %s6075_s7 }
 0xb17   :  { %v5021_v31 = vpop.f32.mrb[102].mxu1 }
 0xb18   :  { %v2980_v61 = vpop.f32.mrb[103].mxu1 }
 0xb19   :  { %v5497_v18 = vpack.i.bf16 %v5021_v31, %v2980_v61  ;;  %v3233_v58 = vpack.c.bf16 %v5021_v31, %v2980_v61  ;;  %v7573_v61 = vld [vmem:[#allocation6 + $0x28] sm:$0xff]  }
 0xb1b   :  { %3252 = vrot.lane.b32.xlu1 %v3233_v58, %s6075_s7 }
 0xb1f   :  { %v5024_v9 = vpop.f32.mrb[104].mxu1 }
 0xb20   :  { %v2990_v47 = vpop.f32.mrb[105].mxu1 }
 0xb21   :  { %v5502_v16 = vpack.i.bf16 %v5024_v9, %v2990_v47  ;;  %v3234_v49 = vpack.c.bf16 %v5024_v9, %v2990_v47  ;;  %v7576_v47 = vld [vmem:[#allocation6 + $0x30] sm:$0xff]  }
 0xb23   :  { %3254 = vrot.lane.b32.xlu0 %v3234_v49, %s6075_s7 }
 0xb27   :  { %v5027_v28 = vpop.f32.mrb[106].mxu1 }
 0xb28   :  { %v3000_v7 = vpop.f32.mrb[107].mxu1 }
 0xb29   :  { %v5507_v3 = vpack.i.bf16 %v5027_v28, %v3000_v7  ;;  %v3235_v6 = vpack.c.bf16 %v5027_v28, %v3000_v7 }
 0xb2b   :  { %3256 = vrot.lane.b32.xlu1 %v3235_v6, %s6075_s7 }
 0xb2f   :  { %v5030_v10 = vpop.f32.mrb[108].mxu1 }
 0xb30   :  { %v3010_v26 = vpop.f32.mrb[109].mxu1 }
 0xb31   :  { %v5512_v42 = vpack.i.bf16 %v5030_v10, %v3010_v26  ;;  %v3236_v21 = vpack.c.bf16 %v5030_v10, %v3010_v26 }
 0xb33   :  { %3258 = vrot.lane.b32.xlu0 %v3236_v21, %s6075_s7 }
 0xb37   :  { %5483 = vperm.xlu0 %5480, %v5482_v43   ;;  %v5033_v11 = vpop.f32.mrb[110].mxu1  ;;  %v7555_v43 = vld [vmem:[#allocation6 + $0x18] sm:$0xff]  }
 0xb38   :  { %v3020_v32 = vpop.f32.mrb[111].mxu1 }
 0xb39   :  { %v5517_v60 = vpack.i.bf16 %v5033_v11, %v3020_v32  ;;  %v3237_v1 = vpack.c.bf16 %v5033_v11, %v3020_v32 }
 0xb3b   :  { %5493 = vperm.xlu0 %5480, %v5492_v62   ;;  %3260 = vrot.lane.b32.xlu1 %v3237_v1, %s6075_s7 }
 0xb3f   :  { %5503 = vperm.xlu0 %5480, %v5502_v16   ;;  %5488 = vperm.xlu1 %5481, %v5487_v51  }
 0xb43   :  { %5513 = vperm.xlu0 %5480, %v5512_v42   ;;  %5498 = vperm.xlu1 %5481, %v5497_v18  }
 0xb47   :  { %5508 = vperm.xlu1 %5481, %v5507_v3  }
 0xb4b   :  { %5518 = vperm.xlu1 %5481, %v5517_v60  }
 0xb71   :  { %v3247_v36 = vpop.permute.xlu1 %3246 }
 0xb72   :  { %5066 = vmatprep.subr.bf16.mxu1 %v3247_v36 }
 0xb73   :  { %5067 = vmatpush3.bf16.msra.mxu1 %v3247_v36 }
 0xb79   :  { %v3249_v17 = vpop.permute.xlu1 %3248 }
 0xb7a   :  { %5068 = vmatprep.subr.bf16.mxu1 %v3249_v17 }
 0xb7b   :  { %5069 = vmatpush3.bf16.msra.mxu1 %v3249_v17 }
 0xb85   :  { %v3251_v63 = vpop.permute.xlu0 %3250 }
 0xb86   :  { %5070 = vmatprep.subr.bf16.mxu1 %v3251_v63 }
 0xb87   :  { %5071 = vmatpush3.bf16.msra.mxu1 %v3251_v63 }
 0xb8d   :  { %v3253_v8 = vpop.permute.xlu1 %3252 }
 0xb8e   :  { %5072 = vmatprep.subr.bf16.mxu1 %v3253_v8 }
 0xb8f   :  { %5073 = vmatpush3.bf16.msra.mxu1 %v3253_v8 }
 0xb95   :  { %v3255_v56 = vpop.permute.xlu0 %3254 }
 0xb96   :  { %5074 = vmatprep.subr.bf16.mxu1 %v3255_v56 }
 0xb97   :  { %5075 = vmatpush3.bf16.msra.mxu1 %v3255_v56  ;;  %v5914_v56 = vld [vmem:[#allocation2 + $0x10] sm:$0xff]  }
 0xb9d   :  { %v3257_v59 = vpop.permute.xlu1 %3256 }
 0xb9e   :  { %5076 = vmatprep.subr.bf16.mxu1 %v3257_v59 }
 0xb9f   :  { %5077 = vmatpush3.bf16.msra.mxu1 %v3257_v59  ;;  %v5916_v59 = vld [vmem:[#allocation2 + $0x20] sm:$0xff]  }
 0xba5   :  { %v3259_v23 = vpop.permute.xlu0 %3258 }
 0xba6   :  { %5078 = vmatprep.subr.bf16.mxu1 %v3259_v23 }
 0xba7   :  { %5079 = vmatpush3.bf16.msra.mxu1 %v3259_v23  ;;  %v5917_v23 = vld [vmem:[#allocation2 + $0x28] sm:$0xff]  }
 0xbad   :  { %v3261_v44 = vpop.permute.xlu1 %3260 }
 0xbae   :  { %5080 = vmatprep.subr.bf16.mxu1 %v3261_v44 }
 0xbaf   :  { %5081 = vmatpush3.bf16.msra.mxu1 %v3261_v44  ;;  %v5919_v44 = vld [vmem:[#allocation2 + $0x38] sm:$0xff]  }
 0xbb2   :  { %5083 = vmatmul.mubr.bf16.vlgmr.msra.gmra.mrb[112].mxu1 %v7543_v4 }
 0xbb3   :  { %5086 = vmatprep.mubr.bf16.mxu1 %v7546_v25 }
 0xbb6   :  { %v5484_v24 = vpop.permute.xlu0 %5483 }
 0xbb7   :  { %v5486_v38 = vunpack.i.h.bf16 %v5484_v24  ;;  %v5485_v15 = vunpack.i.l.bf16 %v5484_v24 }
 0xbb9   :  { %v3109_v50 = vsel %vm588_vm1, %v5485_v15, %v7484_v37  ;;  %v3110_v5 = vsel %vm588_vm1, %v5486_v38, %v7487_v53 }
 0xbba   :  { %v5494_v46 = vpop.permute.xlu0 %5493  ;;  %5087 = vmatmul.mubr.bf16.gmra.mrb[116].mxu1 %v7555_v43  ;;  %v3125_v0 = vpack.c.bf16 %v3110_v5, %v3109_v50 }
 0xbbb   :  { %5090 = vmatprep.mubr.bf16.mxu1 %v7558_v48  ;;  %v5496_v30 = vunpack.i.h.bf16 %v5494_v46  ;;  %v5495_v51 = vunpack.i.l.bf16 %v5494_v46 }
 0xbbc   :  { %5034 = vmatprep.subr.bf16.mxu0 %v3125_v0 }
 0xbbd   :  { %5035 = vmatpush3.bf16.msra.mxu0 %v3125_v0  ;;  %v3113_v62 = vsel %vm588_vm1, %v5495_v51, %v7496_v45  ;;  %v3114_v20 = vsel %vm588_vm1, %v5496_v30, %v7499_v41 }
 0xbbe   :  { %v5489_v2 = vpop.permute.xlu1 %5488  ;;  %v5504_v31 = vpop.permute.xlu0 %5503 }
 0xbbf   :  { %v5491_v37 = vunpack.i.h.bf16 %v5489_v2  ;;  %v5490_v40 = vunpack.i.l.bf16 %v5489_v2  ;;  %v5506_v45 = vunpack.i.h.bf16 %v5504_v31  ;;  %v5505_v16 = vunpack.i.l.bf16 %v5504_v31 }
 0xbc1   :  { %v3111_v53 = vsel %vm588_vm1, %v5490_v40, %v7490_v33  ;;  %v3112_v55 = vsel %vm588_vm1, %v5491_v37, %v7493_v27  ;;  %v3127_v27 = vpack.c.bf16 %v3114_v20, %v3113_v62  ;;  %v3117_v10 = vsel %vm588_vm1, %v5505_v16, %v7508_v34 }
 0xbc2   :  { %5091 = vmatmul.mubr.bf16.gmra.mrb[120].mxu1 %v7573_v61  ;;  %v5499_v18 = vpop.permute.xlu1 %5498  ;;  %v3126_v58 = vpack.c.bf16 %v3112_v55, %v3111_v53  ;;  %v3118_v26 = vsel %vm588_vm1, %v5506_v45, %v7511_v22  ;;  %v5514_v42 = vpop.permute.xlu0 %5513 }
 0xbc3   :  { %v5501_v33 = vunpack.i.h.bf16 %v5499_v18  ;;  %v5500_v9 = vunpack.i.l.bf16 %v5499_v18  ;;  %5094 = vmatprep.mubr.bf16.mxu1 %v7576_v47  ;;  %v5516_v21 = vunpack.i.h.bf16 %v5514_v42  ;;  %v5515_v11 = vunpack.i.l.bf16 %v5514_v42 }
 0xbc4   :  { %5036 = vmatprep.subr.bf16.mxu0 %v3126_v58 }
 0xbc5   :  { %5037 = vmatpush3.bf16.msra.mxu0 %v3126_v58  ;;  %v3115_v41 = vsel %vm588_vm1, %v5500_v9, %v7502_v52  ;;  %v3116_v49 = vsel %vm588_vm1, %v5501_v33, %v7505_v14  ;;  %v7591_v52 = vld [vmem:[#allocation6 + $0x38] sm:$0xff]   ;;  %v3129_v14 = vpack.c.bf16 %v3118_v26, %v3117_v10  ;;  %v3122_v17 = vsel %vm588_vm1, %v5516_v21, %v7523_v54 }
 0xbc6   :  { %v5509_v28 = vpop.permute.xlu1 %5508  ;;  %5038 = vmatprep.subr.bf16.mxu0 %v3127_v27  ;;  %v3128_v7 = vpack.c.bf16 %v3116_v49, %v3115_v41  ;;  %v5915_v54 = vld [vmem:[#allocation2 + $0x18] sm:$0xff]  }
 0xbc7   :  { %v5511_v3 = vunpack.i.h.bf16 %v5509_v28  ;;  %v5510_v6 = vunpack.i.l.bf16 %v5509_v28 }
 0xbc9   :  { %5039 = vmatpush3.bf16.msra.mxu0 %v3127_v27  ;;  %v3119_v34 = vsel %vm588_vm1, %v5510_v6, %v7514_v39  ;;  %v3120_v22 = vsel %vm588_vm1, %v5511_v3, %v7517_v13 }
 0xbca   :  { %5095 = vmatmul.mubr.bf16.gmra.mrb[124].mxu1 %v7591_v52  ;;  %5040 = vmatprep.subr.bf16.mxu0 %v3128_v7  ;;  %v5519_v32 = vpop.permute.xlu1 %5518  ;;  %v3130_v60 = vpack.c.bf16 %v3120_v22, %v3119_v34 }
 0xbcb   :  { %5146 = vmatprep.mubr.bf16.mxu1 %v7532_v19  ;;  %v5521_v1 = vunpack.i.h.bf16 %v5519_v32  ;;  %v5520_v36 = vunpack.i.l.bf16 %v5519_v32  ;;  %v3121_v19 = vsel %vm588_vm1, %v5515_v11, %v7520_v12  ;;  %v5913_v12 = vld [vmem:[#allocation2 + $0x8] sm:$0xff]  }
 0xbcc   :  { %v3131_v39 = vpack.c.bf16 %v3122_v17, %v3121_v19 }
 0xbcd   :  { %5041 = vmatpush3.bf16.msra.mxu0 %v3128_v7  ;;  %v3123_v13 = vsel %vm588_vm1, %v5520_v36, %v7526_v29  ;;  %v3124_v63 = vsel %vm588_vm1, %v5521_v1, %v7529_v35  ;;  %v5918_v29 = vld [vmem:[#allocation2 + $0x30] sm:$0xff]   ;;  %v7613_v35 = vld [vmem:[#allocation8] sm:$0xff]  }
 0xbce   :  { %5042 = vmatprep.subr.bf16.mxu0 %v3129_v14  ;;  %v3132_v8 = vpack.c.bf16 %v3124_v63, %v3123_v13 }
 0xbd1   :  { %5043 = vmatpush3.bf16.msra.mxu0 %v3129_v14 }
 0xbd2   :  { %5044 = vmatprep.subr.bf16.mxu0 %v3130_v60 }
 0xbd5   :  { %5045 = vmatpush3.bf16.msra.mxu0 %v3130_v60 }
 0xbd6   :  { %5046 = vmatprep.subr.bf16.mxu0 %v3131_v39 }
 0xbd9   :  { %5047 = vmatpush3.bf16.msra.mxu0 %v3131_v39 }
 0xbda   :  { %5048 = vmatprep.subr.bf16.mxu0 %v3132_v8 }
 0xbdd   :  { %5049 = vmatpush3.bf16.msra.mxu0 %v3132_v8 }
 0xbe0   :  { %5051 = vmatmul.mubr.bf16.vlgmr.msra.gmra.mrb[112].mxu0 %v5913_v12 }
 0xbe1   :  { %5054 = vmatprep.mubr.bf16.mxu0 %v5914_v56 }
 0xbe8   :  { %5055 = vmatmul.mubr.bf16.gmra.mrb[116].mxu0 %v5915_v54 }
 0xbe9   :  { %5058 = vmatprep.mubr.bf16.mxu0 %v5916_v59 }
 0xbf0   :  { %5059 = vmatmul.mubr.bf16.gmra.mrb[120].mxu0 %v5917_v23 }
 0xbf1   :  { %5062 = vmatprep.mubr.bf16.mxu0 %v5918_v29 }
 0xbf8   :  { %5063 = vmatmul.mubr.bf16.gmra.mrb[124].mxu0 %v5919_v44 }
 0xbf9   :  { %5114 = vmatprep.mubr.bf16.mxu0 %v7613_v35 }
 0xc85   :  { %v5084_v24 = vpop.f32.mrb[112].mxu1 }
 0xc86   :  { %v3304_v38 = vpop.f32.mrb[113].mxu1  ;;  %3387 = vrot.lane.b32.xlu0 %v5084_v24, %s6075_s7 }
 0xc87   :  { %v5085_v15 = vpop.f32.mrb[114].mxu1 }
 0xc88   :  { %3389 = vrot.lane.b32.xlu1 %v5085_v15, %s6075_s7  ;;  %v3307_v50 = vpop.f32.mrb[115].mxu1 }
 0xc8a   :  { %3383 = vrot.lane.b32.xlu0 %v3304_v38, %s6075_s7 }
 0xc8c   :  { %3385 = vrot.lane.b32.xlu1 %v3307_v50, %s6075_s7 }
 0xc8d   :  { %v5088_v5 = vpop.f32.mrb[116].mxu1 }
 0xc8e   :  { %v3320_v46 = vpop.f32.mrb[117].mxu1  ;;  %3395 = vrot.lane.b32.xlu0 %v5088_v5, %s6075_s7 }
 0xc8f   :  { %v5089_v0 = vpop.f32.mrb[118].mxu1 }
 0xc90   :  { %3397 = vrot.lane.b32.xlu1 %v5089_v0, %s6075_s7  ;;  %v3323_v30 = vpop.f32.mrb[119].mxu1 }
 0xc92   :  { %3391 = vrot.lane.b32.xlu0 %v3320_v46, %s6075_s7 }
 0xc94   :  { %3393 = vrot.lane.b32.xlu1 %v3323_v30, %s6075_s7 }
 0xc95   :  { %v5092_v51 = vpop.f32.mrb[120].mxu1 }
 0xc96   :  { %v3336_v2 = vpop.f32.mrb[121].mxu1  ;;  %3403 = vrot.lane.b32.xlu0 %v5092_v51, %s6075_s7 }
 0xc97   :  { %v5093_v37 = vpop.f32.mrb[122].mxu1 }
 0xc98   :  { %3405 = vrot.lane.b32.xlu1 %v5093_v37, %s6075_s7  ;;  %v3339_v40 = vpop.f32.mrb[123].mxu1 }
 0xc9a   :  { %3399 = vrot.lane.b32.xlu0 %v3336_v2, %s6075_s7 }
 0xc9c   :  { %3401 = vrot.lane.b32.xlu1 %v3339_v40, %s6075_s7 }
 0xc9d   :  { %v5096_v53 = vpop.f32.mrb[124].mxu1 }
 0xc9e   :  { %v3352_v55 = vpop.f32.mrb[125].mxu1 }
 0xc9f   :  { %v5097_v62 = vpop.f32.mrb[126].mxu1  ;;  %3407 = vrot.lane.b32.xlu0 %v3352_v55, %s6075_s7 }
 0xca0   :  { %v3355_v20 = vpop.f32.mrb[127].mxu1 }
 0xca1   :  { %3409 = vrot.lane.b32.xlu1 %v3355_v20, %s6075_s7 }
 0xca3   :  { %3411 = vrot.lane.b32.xlu0 %v5096_v53, %s6075_s7 }
 0xca5   :  { %3413 = vrot.lane.b32.xlu1 %v5097_v62, %s6075_s7 }
 0xcb3   :  { %v7632_v31 = vpop.f32.mrb[112].mxu0 }
 0xcb4   :  { %v7634_v18 = vpop.f32.mrb[113].mxu0 }
 0xcb5   :  { %v7636_v58 = vpop.f32.mrb[114].mxu0 }
 0xcb6   :  { %v7638_v33 = vpop.f32.mrb[115].mxu0 }
 0xcbb   :  { %v7640_v9 = vpop.f32.mrb[116].mxu0 }
 0xcbc   :  { %v7642_v27 = vpop.f32.mrb[117].mxu0 }
 0xcbd   :  { %v7644_v45 = vpop.f32.mrb[118].mxu0 }
 0xcbe   :  { %v7646_v16 = vpop.f32.mrb[119].mxu0 }
 0xcc3   :  { %v7648_v41 = vpop.f32.mrb[120].mxu0 }
 0xcc4   :  { %8343 = vst [vmem:[#allocation24_spill] sm:$0xff] %v7648_v41  ;;  %v7650_v49 = vpop.f32.mrb[121].mxu0 }
 0xcc5   :  { %v7652_v28 = vpop.f32.mrb[122].mxu0 }
 0xcc6   :  { %v7654_v7 = vpop.f32.mrb[123].mxu0 }
 0xccb   :  { %v7656_v3 = vpop.f32.mrb[124].mxu0 }
 0xccc   :  { %8344 = vst [vmem:[#allocation25_spill] sm:$0xff] %v7656_v3  ;;  %v7658_v6 = vpop.f32.mrb[125].mxu0 }
 0xccd   :  { %8345 = vst [vmem:[#allocation21_spill] sm:$0xff] %v7658_v6  ;;  %v7660_v10 = vpop.f32.mrb[126].mxu0 }
 0xcce   :  { %8346 = vst [vmem:[#allocation23_spill] sm:$0xff] %v7660_v10  ;;  %v7662_v26 = vpop.f32.mrb[127].mxu0 }
 0xccf   :  { %8347 = vst [vmem:[#allocation20_spill] sm:$0xff] %v7662_v26 }
 0xcf8   :  { %v3388_v42 = vpop.permute.xlu0 %3387 }
 0xcf9   :  { %v3433_v22 = vadd.f32 %v7632_v31, %v3388_v42 }
 0xcfa   :  { %v3390_v14 = vpop.permute.xlu1 %3389 }
 0xcfb   :  { %v3434_v60 = vadd.f32 %v7636_v58, %v3390_v14  ;;  %v3465_v19 = vmul.f32 0.2, %v3433_v22  ;;  %vm3449_vm0 = vcmp.gt.f32.partialorder %v3433_v22, 0.0 }
 0xcfc   :  { %v3384_v21 = vpop.permute.xlu0 %3383 }
 0xcfd   :  { %v3431_v36 = vadd.f32 %v3384_v21, %v7634_v18  ;;  %v3466_v63 = vmul.f32 0.2, %v3434_v60  ;;  %vm3450_vm1 = vcmp.gt.f32.partialorder %v3434_v60, 0.0  ;;  %v7671_v59 = vsel %vm3449_vm0, %v3433_v22, %v3465_v19 }
 0xcfe   :  { %v3386_v11 = vpop.permute.xlu1 %3385  ;;  %v7679_v50 = vsel %vm3495_vm6, %v7671_v59, -inf }
 0xcff   :  { %v3463_v8 = vmul.f32 0.2, %v3431_v36  ;;  %v3432_v56 = vadd.f32 %v3386_v11, %v7638_v33  ;;  %vm3447_vm8 = vcmp.gt.f32.partialorder %v3431_v36, 0.0  ;;  %v7674_v38 = vsel %vm3450_vm1, %v3434_v60, %v3466_v63 }
 0xd00   :  { %v3396_v34 = vpop.permute.xlu0 %3395  ;;  %v7688_v37 = vsel %vm3495_vm6, %v7674_v38, -inf  ;;  %vm3923_vm1 = vcmp.lt.s32.totalorder %v6477_v57, 8 }
 0xd01   :  { %v3437_v17 = vadd.f32 %v7640_v9, %v3396_v34  ;;  %v7681_v5 = vsel %vm3447_vm8, %v3431_v36, %v3463_v8  ;;  %v3464_v46 = vmul.f32 0.2, %v3432_v56  ;;  %vm3448_vm11 = vcmp.gt.f32.partialorder %v3432_v56, 0.0 }
 0xd02   :  { %v3398_v32 = vpop.permute.xlu1 %3397  ;;  %v3496_v20 = vsel %vm3495_vm6, %v7681_v5, -inf }
 0xd03   :  { %v3438_v13 = vadd.f32 %v7644_v45, %v3398_v32  ;;  %v3469_v23 = vmul.f32 0.2, %v3437_v17  ;;  %vm3453_vm9 = vcmp.gt.f32.partialorder %v3437_v17, 0.0  ;;  %v7696_v21 = vsel %vm3448_vm11, %v3432_v56, %v3464_v46 }
 0xd04   :  { %v3392_v1 = vpop.permute.xlu0 %3391 }
 0xd05   :  { %v3435_v44 = vadd.f32 %v3392_v1, %v7642_v27  ;;  %v3470_v24 = vmul.f32 0.2, %v3438_v13  ;;  %vm3454_vm10 = vcmp.gt.f32.partialorder %v3438_v13, 0.0  ;;  %v7683_v51 = vsel %vm3453_vm9, %v3437_v17, %v3469_v23 }
 0xd06   :  { %v3394_v39 = vpop.permute.xlu1 %3393  ;;  %v3504_v11 = vsel %vm3495_vm6, %v7683_v51, -inf }
 0xd07   :  { %v3436_v54 = vadd.f32 %v3394_v39, %v7646_v16  ;;  %v3467_v40 = vmul.f32 0.2, %v3435_v44  ;;  %v7690_v53 = vsel %vm3454_vm10, %v3438_v13, %v3470_v24  ;;  %vm3451_vm13 = vcmp.gt.f32.partialorder %v3435_v44, 0.0 }
 0xd08   :  { %v3404_v12 = vpop.permute.xlu0 %3403  ;;  %v3506_v22 = vsel %vm3495_vm6, %v7690_v53, -inf  ;;  %v3497_v39 = vsel %vm3495_vm6, %v7696_v21, -inf  ;;  %v3505_v23 = vmax.f32 %v7679_v50, %v3504_v11 }
 0xd09   :  { %v3441_v15 = vadd.f32 %v7648_v41, %v3404_v12  ;;  %v3468_v30 = vmul.f32 0.2, %v3436_v54  ;;  %vm3452_vm12 = vcmp.gt.f32.partialorder %v3436_v54, 0.0  ;;  %v7704_v36 = vsel %vm3451_vm13, %v3435_v44, %v3467_v40 }
 0xd0a   :  { %v3406_v29 = vpop.permute.xlu1 %3405  ;;  %v3507_v44 = vmax.f32 %v7688_v37, %v3506_v22 }
 0xd0b   :  { %v3442_v2 = vadd.f32 %v7652_v28, %v3406_v29  ;;  %v3473_v42 = vmul.f32 0.2, %v3441_v15  ;;  %v7700_v34 = vsel %vm3452_vm12, %v3436_v54, %v3468_v30  ;;  %vm3457_vm14 = vcmp.gt.f32.partialorder %v3441_v15, 0.0 }
 0xd0c   :  { %v3400_v0 = vpop.permute.xlu0 %3399  ;;  %v3502_v13 = vsel %vm3495_vm6, %v7700_v34, -inf  ;;  %v3500_v29 = vsel %vm3495_vm6, %v7704_v36, -inf }
 0xd0d   :  { %v3439_v62 = vadd.f32 %v3400_v0, %v7650_v49  ;;  %v3474_v32 = vmul.f32 0.2, %v3442_v2  ;;  %vm3458_vm2 = vcmp.gt.f32.partialorder %v3442_v2, 0.0  ;;  %v7711_v63 = vsel %vm3457_vm14, %v3441_v15, %v3473_v42 }
 0xd0e   :  { %v3402_v55 = vpop.permute.xlu1 %3401  ;;  %v3503_v40 = vmax.f32 %v3497_v39, %v3502_v13  ;;  %v3501_v11 = vmax.f32 %v3496_v20, %v3500_v29 }
 0xd0f   :  { %v3440_v14 = vadd.f32 %v3402_v55, %v7654_v7  ;;  %v3471_v19 = vmul.f32 0.2, %v3439_v62  ;;  %vm3455_vm4 = vcmp.gt.f32.partialorder %v3439_v62, 0.0  ;;  %v7720_v24 = vsel %vm3458_vm2, %v3442_v2, %v3474_v32 }
 0xd10   :  { %v3512_v55 = vsel %vm3495_vm6, %v7711_v63, -inf  ;;  %v3514_v32 = vsel %vm3495_vm6, %v7720_v24, -inf }
 0xd11   :  { %v3408_v60 = vpop.permute.xlu0 %3407  ;;  %vm3456_vm15 = vcmp.gt.f32.partialorder %v3440_v14, 0.0  ;;  %v3472_v1 = vmul.f32 0.2, %v3440_v14  ;;  %v7722_v15 = vsel %vm3455_vm4, %v3439_v62, %v3471_v19  ;;  %v3513_v13 = vmax.f32 %v3505_v23, %v3512_v55 }
 0xd12   :  { %v3443_v17 = vadd.f32 %v3408_v60, %v7658_v6  ;;  %v3508_v22 = vsel %vm3495_vm6, %v7722_v15, -inf }
 0xd13   :  { %v3410_v8 = vpop.permute.xlu1 %3409  ;;  %v7713_v12 = vsel %vm3456_vm15, %v3440_v14, %v3472_v1 }
 0xd14   :  { %vm3459_vm5 = vcmp.gt.f32.partialorder %v3443_v17, 0.0  ;;  %v3475_v56 = vmul.f32 0.2, %v3443_v17  ;;  %v3444_v54 = vadd.f32 %v3410_v8, %v7662_v26  ;;  %v3510_v50 = vsel %vm3495_vm6, %v7713_v12, -inf }
 0xd15   :  { %v3412_v46 = vpop.permute.xlu0 %3411 }
 0xd16   :  { %v3445_v0 = vadd.f32 %v7656_v3, %v3412_v46  ;;  %vm3460_vm7 = vcmp.gt.f32.partialorder %v3444_v54, 0.0  ;;  %v3476_v30 = vmul.f32 0.2, %v3444_v54  ;;  %v7729_v42 = vsel %vm3459_vm5, %v3443_v17, %v3475_v56 }
 0xd17   :  { %v3414_v14 = vpop.permute.xlu1 %3413  ;;  %v3511_v17 = vmax.f32 %v3503_v40, %v3510_v50  ;;  %v3516_v8 = vsel %vm3495_vm6, %v7729_v42, -inf  ;;  %v3509_v56 = vmax.f32 %v3501_v11, %v3508_v22 }
 0xd18   :  { %vm3461_vm3 = vcmp.gt.f32.partialorder %v3445_v0, 0.0  ;;  %v3477_v2 = vmul.f32 0.2, %v3445_v0  ;;  %v3446_v37 = vadd.f32 %v7660_v10, %v3414_v14  ;;  %v7732_v62 = vsel %vm3460_vm7, %v3444_v54, %v3476_v30 }
 0xd19   :  { %v3518_v60 = vsel %vm3495_vm6, %v7732_v62, -inf  ;;  %v3515_v54 = vmax.f32 %v3507_v44, %v3514_v32  ;;  %v3517_v30 = vmax.f32 %v3509_v56, %v3516_v8 }
 0xd1a   :  { %v3493_v1 = vsel %vm3461_vm3, %v3445_v0, %v3477_v2  ;;  %vm3462_vm0 = vcmp.gt.f32.partialorder %v3446_v37, 0.0  ;;  %v3478_v19 = vmul.f32 0.2, %v3446_v37  ;;  %v3519_v29 = vmax.f32 %v3511_v17, %v3518_v60 }
 0xd1b   :  { %v3520_v39 = vsel %vm3495_vm6, %v3493_v1, -inf }
 0xd1c   :  { %v3494_v20 = vsel %vm3462_vm0, %v3446_v37, %v3478_v19  ;;  %v3521_v14 = vmax.f32 %v3513_v13, %v3520_v39  ;;  %v3524_v10 = vmax.f32 %v3517_v30, %v3519_v29 }
 0xd1d   :  { %v3522_v46 = vsel %vm3495_vm6, %v3494_v20, -inf }
 0xd1e   :  { %v3523_v3 = vmax.f32 %v3515_v54, %v3522_v46 }
 0xd20   :  { %v3525_v0 = vmax.f32 %v3521_v14, %v3523_v3 }
 0xd22   :  { %v3526_v2 = vmax.f32 %v3524_v10, %v3525_v0 }
 0xd24   :  { %3527 = vmax.xlane.f32.xlu0 %v3526_v2 }
 0xdb1   :  { %v3528_v40 = vpop.xlane.xlu0 %3527 }
 0xdb2   :  { %v3529_v50 = vrot.slane %v3528_v40, 4 }
 0xdb4   :  { %v3530_v6 = vmax.f32 %v3528_v40, %v3529_v50 }
 0xdb6   :  { %v3531_v23 = vrot.slane %v3530_v6, 2 }
 0xdb8   :  { %v3532_v55 = vmax.f32 %v3530_v6, %v3531_v23 }
 0xdba   :  { %v3533_v26 = vrot.slane %v3532_v55, 1 }
 0xdbc   :  { %v3534_v41 = vmax.f32 %v3532_v55, %v3533_v26 }
 0xdbe   :  { %5348 = vpush %v3534_v41 }
 0xdef   :  { %s5349_s1 = spop %5348 }
 0xdf0   :  { %v3536_v44 = vstv %s5349_s1 }
 0xdf1   :  { %v3551_v37 = vsub.f32 %v3493_v1, %v3536_v44  ;;  %v3552_v11 = vsub.f32 %v3494_v20, %v3536_v44  ;;  %v3537_v22 = vsub.f32 %v7681_v5, %v3536_v44  ;;  %v3538_v32 = vsub.f32 %v7696_v21, %v3536_v44 }
 0xdf2   :  { %v3539_v3 = vsub.f32 %v7671_v59, %v3536_v44  ;;  %v3540_v10 = vsub.f32 %v7674_v38, %v3536_v44  ;;  %v3541_v41 = vsub.f32 %v7704_v36, %v3536_v44  ;;  %v3542_v1 = vsub.f32 %v7700_v34, %v3536_v44 }
 0xdf3   :  { %v3581_v60 = vmul.f32 1.442695, %v3551_v37  ;;  %v3583_v19 = vmul.f32 1.442695, %v3552_v11  ;;  %v3553_v17 = vmul.f32 1.442695, %v3537_v22  ;;  %v3543_v59 = vsub.f32 %v7683_v51, %v3536_v44 }
 0xdf4   :  { %v3555_v39 = vmul.f32 1.442695, %v3538_v32  ;;  %v3557_v6 = vmul.f32 1.442695, %v3539_v3  ;;  %v3559_v26 = vmul.f32 1.442695, %v3540_v10  ;;  %v3544_v21 = vsub.f32 %v7690_v53, %v3536_v44 }
 0xdf5   :  { %5744 = vpow2.f32 %v3581_v60  ;;  %v3561_v5 = vmul.f32 1.442695, %v3541_v41  ;;  %v3563_v38 = vmul.f32 1.442695, %v3542_v1  ;;  %v3565_v13 = vmul.f32 1.442695, %v3543_v59 }
 0xdf6   :  { %5746 = vpow2.f32 %v3583_v19  ;;  %v3545_v8 = vsub.f32 %v7722_v15, %v3536_v44  ;;  %v3567_v36 = vmul.f32 1.442695, %v3544_v21  ;;  %v3546_v20 = vsub.f32 %v7713_v12, %v3536_v44 }
 0xdf7   :  { %5748 = vpow2.f32 %v3553_v17  ;;  %v3547_v53 = vsub.f32 %v7711_v63, %v3536_v44  ;;  %v3548_v30 = vsub.f32 %v7720_v24, %v3536_v44  ;;  %v3549_v63 = vsub.f32 %v7729_v42, %v3536_v44 }
 0xdf8   :  { %5750 = vpow2.f32 %v3555_v39  ;;  %v3569_v29 = vmul.f32 1.442695, %v3545_v8  ;;  %v3571_v15 = vmul.f32 1.442695, %v3546_v20  ;;  %v3550_v50 = vsub.f32 %v7732_v62, %v3536_v44  ;;  %v7817_v20 = vld [vmem:[#allocation8 + $0x10] sm:$0xff]  }
 0xdf9   :  { %5752 = vpow2.f32 %v3557_v6  ;;  %v3573_v2 = vmul.f32 1.442695, %v3547_v53  ;;  %v3575_v40 = vmul.f32 1.442695, %v3548_v30  ;;  %v3577_v37 = vmul.f32 1.442695, %v3549_v63 }
 0xdfa   :  { %5754 = vpow2.f32 %v3559_v26  ;;  %v3579_v11 = vmul.f32 1.442695, %v3550_v50  ;;  %v7823_v53 = vld [vmem:[#allocation8 + $0x28] sm:$0xff]   ;;  %v7829_v30 = vld [vmem:[#allocation8 + $0x38] sm:$0xff]  }
 0xdfb   :  { %5756 = vpow2.f32 %v3561_v5 }
 0xdfc   :  { %5758 = vpow2.f32 %v3563_v38 }
 0xdfd   :  { %5760 = vpow2.f32 %v3565_v13 }
 0xdfe   :  { %5762 = vpow2.f32 %v3567_v36  ;;  %v7814_v36 = vld [vmem:[#allocation8 + $0x8] sm:$0xff]  }
 0xdff   :  { %v7754_v56 = vpop.eup %5744  ;;  %5764 = vpow2.f32 %v3569_v29  ;;  %v5924_v29 = vld [vmem:[#allocation8 + $0x20] sm:$0xff]  }
 0xe00   :  { %v7756_v34 = vpop.eup %5746  ;;  %5766 = vpow2.f32 %v3571_v15  ;;  %v7826_v15 = vld [vmem:[#allocation8 + $0x30] sm:$0xff]  }
 0xe01   :  { %v7758_v54 = vpop.eup %5748  ;;  %v3592_v51 = vpack.c.bf16 %v7756_v34, %v7754_v56  ;;  %5768 = vpow2.f32 %v3573_v2 }
 0xe02   :  { %v7763_v46 = vpop.eup %5750  ;;  %5770 = vpow2.f32 %v3575_v40 }
 0xe03   :  { %v7766_v12 = vpop.eup %5752  ;;  %3615 = vrot.lane.b32.xlu0 %v3592_v51, %s6073_s15  ;;  %v3585_v14 = vpack.c.bf16 %v7763_v46, %v7758_v54  ;;  %5772 = vpow2.f32 %v3577_v37  ;;  %v7820_v51 = vld [vmem:[#allocation8 + $0x18] sm:$0xff]  }
 0xe04   :  { %v7771_v0 = vpop.eup %5754  ;;  %5774 = vpow2.f32 %v3579_v11 }
 0xe05   :  { %3601 = vrot.lane.b32.xlu1 %v3585_v14, %s6073_s15  ;;  %v7776_v24 = vpop.eup %5756  ;;  %v3586_v23 = vpack.c.bf16 %v7771_v0, %v7766_v12 }
 0xe06   :  { %v7780_v55 = vpop.eup %5758 }
 0xe07   :  { %v7783_v22 = vpop.eup %5760  ;;  %v3587_v42 = vpack.c.bf16 %v7780_v55, %v7776_v24 }
 0xe08   :  { %v7787_v32 = vpop.eup %5762 }
 0xe09   :  { %3603 = vrot.lane.b32.xlu1 %v3586_v23, %s6073_s15  ;;  %v7790_v62 = vpop.eup %5764  ;;  %v3588_v44 = vpack.c.bf16 %v7787_v32, %v7783_v22 }
 0xe0a   :  { %v7794_v3 = vpop.eup %5766 }
 0xe0b   :  { %v7797_v10 = vpop.eup %5768  ;;  %v3589_v60 = vpack.c.bf16 %v7794_v3, %v7790_v62 }
 0xe0c   :  { %v7801_v19 = vpop.eup %5770 }
 0xe0d   :  { %3605 = vrot.lane.b32.xlu1 %v3587_v42, %s6073_s15  ;;  %v7804_v17 = vpop.eup %5772  ;;  %v3590_v39 = vpack.c.bf16 %v7801_v19, %v7797_v10 }
 0xe0e   :  { %v7808_v6 = vpop.eup %5774 }
 0xe0f   :  { %v3591_v41 = vpack.c.bf16 %v7808_v6, %v7804_v17 }
 0xe11   :  { %3607 = vrot.lane.b32.xlu1 %v3588_v44, %s6073_s15 }
 0xe15   :  { %3609 = vrot.lane.b32.xlu1 %v3589_v60, %s6073_s15 }
 0xe19   :  { %3611 = vrot.lane.b32.xlu1 %v3590_v39, %s6073_s15 }
 0xe1d   :  { %3613 = vrot.lane.b32.xlu1 %v3591_v41, %s6073_s15  ;;  %s6077_s15 = smov [#allocation12]  }
 0xe1e   :  { %s4466_s24 = sshll.u32 %s6077_s15, 4  ;;  %s4467_s24 = int_to_ptr.vmem [resolvable:$true] %s4466_s24 }
 0xe1f   :  { %s6028_s25 = scalar_lea.vmem %s4467_s24, 2048  ;;  %p6033_p10 = scmp.lt.s32.totalorder %s4467_s24, %s4467_s24 }
 0xe20   :  { %p6029_p9 = scmp.ne.s32.totalorder %s4467_s24, %s6028_s25  ;;  %p6034_p11 = scmp.lt.s32.totalorder %s6028_s25, %s6028_s25 }
 0xe22   :  { %p6035_p12 = por %p6034_p11, %p6033_p10 }
 0xe24   :  { %p6036_p13 = pnand %p6035_p12, %p6029_p9 }
 0xe75   :  { %v3616_v8 = vpop.permute.xlu0 %3615 }
 0xe77   :  { %v3602_v26 = vpop.permute.xlu1 %3601 }
 0xe78   :  { %5098 = vmatprep.subr.bf16.mxu0 %v3602_v26 }
 0xe79   :  { %5099 = vmatpush3.bf16.msra.mxu0 %v3602_v26 }
 0xe7b   :  { %v3604_v1 = vpop.permute.xlu1 %3603 }
 0xe7c   :  { %5100 = vmatprep.subr.bf16.mxu0 %v3604_v1 }
 0xe7d   :  { %5101 = vmatpush3.bf16.msra.mxu0 %v3604_v1 }
 0xe7f   :  { %v3606_v5 = vpop.permute.xlu1 %3605 }
 0xe80   :  { %5102 = vmatprep.subr.bf16.mxu0 %v3606_v5 }
 0xe81   :  { %5103 = vmatpush3.bf16.msra.mxu0 %v3606_v5 }
 0xe83   :  { %v3608_v59 = vpop.permute.xlu1 %3607 }
 0xe84   :  { %5104 = vmatprep.subr.bf16.mxu0 %v3608_v59 }
 0xe85   :  { %5105 = vmatpush3.bf16.msra.mxu0 %v3608_v59 }
 0xe87   :  { %v3610_v38 = vpop.permute.xlu1 %3609 }
 0xe88   :  { %5106 = vmatprep.subr.bf16.mxu0 %v3610_v38 }
 0xe89   :  { %5107 = vmatpush3.bf16.msra.mxu0 %v3610_v38 }
 0xe8b   :  { %v3612_v21 = vpop.permute.xlu1 %3611 }
 0xe8c   :  { %5108 = vmatprep.subr.bf16.mxu0 %v3612_v21 }
 0xe8d   :  { %5109 = vmatpush3.bf16.msra.mxu0 %v3612_v21 }
 0xe8f   :  { %v3614_v13 = vpop.permute.xlu1 %3613 }
 0xe90   :  { %5110 = vmatprep.subr.bf16.mxu0 %v3614_v13 }
 0xe91   :  { %5111 = vmatpush3.bf16.msra.mxu0 %v3614_v13 }
 0xe92   :  { %5112 = vmatprep.subr.bf16.mxu0 %v3616_v8 }
 0xe95   :  { %5113 = vmatpush3.bf16.msra.mxu0 %v3616_v8 }
 0xe98   :  { %5115 = vmatmul.mubr.bf16.vlgmr.msra.gmra.mrb[128].mxu0 %v7814_v36 }
 0xe99   :  { %5118 = vmatprep.mubr.bf16.mxu0 %v7817_v20 }
 0xea0   :  { %5119 = vmatmul.mubr.bf16.gmra.mrb[132].mxu0 %v7820_v51 }
 0xea1   :  { %5122 = vmatprep.mubr.bf16.mxu0 %v5924_v29 }
 0xea8   :  { %5123 = vmatmul.mubr.bf16.gmra.mrb[136].mxu0 %v7823_v53 }
 0xea9   :  { %5126 = vmatprep.mubr.bf16.mxu0 %v7826_v15 }
 0xeb0   :  { %5127 = vmatmul.mubr.bf16.gmra.mrb[140].mxu0 %v7829_v30 }
 0xeb1   :  { %5178 = vmatprep.mubr.bf16.mxu0 %v7613_v35 }
 0xf6b   :  { %v5116_v14 = vpop.f32.mrb[128].mxu0 }
 0xf6c   :  { %v3659_v2 = vpop.f32.mrb[129].mxu0 }
 0xf6d   :  { %v5117_v63 = vpop.f32.mrb[130].mxu0 }
 0xf6e   :  { %v3723_v40 = vpack.c.bf16 %v5117_v63, %v5116_v14  ;;  %v3662_v50 = vpop.f32.mrb[131].mxu0 }
 0xf6f   :  { %v3722_v23 = vpack.c.bf16 %v3662_v50, %v3659_v2 }
 0xf71   :  { %5130 = vmatprep.subr.bf16.mxu1 %v3722_v23 }
 0xf72   :  { %5131 = vmatpush3.bf16.msra.mxu1 %v3722_v23 }
 0xf73   :  { %v5120_v37 = vpop.f32.mrb[132].mxu0  ;;  %5132 = vmatprep.subr.bf16.mxu1 %v3723_v40 }
 0xf74   :  { %v3675_v11 = vpop.f32.mrb[133].mxu0 }
 0xf75   :  { %v5121_v42 = vpop.f32.mrb[134].mxu0 }
 0xf76   :  { %v3725_v44 = vpack.c.bf16 %v5121_v42, %v5120_v37  ;;  %v3678_v60 = vpop.f32.mrb[135].mxu0  ;;  %5133 = vmatpush3.bf16.msra.mxu1 %v3723_v40 }
 0xf77   :  { %v3724_v39 = vpack.c.bf16 %v3678_v60, %v3675_v11 }
 0xf79   :  { %5134 = vmatprep.subr.bf16.mxu1 %v3724_v39 }
 0xf7a   :  { %5135 = vmatpush3.bf16.msra.mxu1 %v3724_v39 }
 0xf7b   :  { %v5124_v41 = vpop.f32.mrb[136].mxu0  ;;  %5136 = vmatprep.subr.bf16.mxu1 %v3725_v44 }
 0xf7c   :  { %v3691_v35 = vpop.f32.mrb[137].mxu0 }
 0xf7d   :  { %v5125_v26 = vpop.f32.mrb[138].mxu0 }
 0xf7e   :  { %v3727_v1 = vpack.c.bf16 %v5125_v26, %v5124_v41  ;;  %v3694_v5 = vpop.f32.mrb[139].mxu0  ;;  %5137 = vmatpush3.bf16.msra.mxu1 %v3725_v44 }
 0xf7f   :  { %v3726_v59 = vpack.c.bf16 %v3694_v5, %v3691_v35 }
 0xf81   :  { %5138 = vmatprep.subr.bf16.mxu1 %v3726_v59 }
 0xf82   :  { %5139 = vmatpush3.bf16.msra.mxu1 %v3726_v59 }
 0xf83   :  { %v5128_v38 = vpop.f32.mrb[140].mxu0  ;;  %5140 = vmatprep.subr.bf16.mxu1 %v3727_v1 }
 0xf84   :  { %v3707_v21 = vpop.f32.mrb[141].mxu0 }
 0xf85   :  { %v5129_v13 = vpop.f32.mrb[142].mxu0 }
 0xf86   :  { %v3729_v8 = vpack.c.bf16 %v5129_v13, %v5128_v38  ;;  %v3710_v14 = vpop.f32.mrb[143].mxu0  ;;  %5141 = vmatpush3.bf16.msra.mxu1 %v3727_v1 }
 0xf87   :  { %v3728_v2 = vpack.c.bf16 %v3710_v14, %v3707_v21 }
 0xf89   :  { %5142 = vmatprep.subr.bf16.mxu1 %v3728_v2 }
 0xf8a   :  { %5143 = vmatpush3.bf16.msra.mxu1 %v3728_v2 }
 0xf8b   :  { %5144 = vmatprep.subr.bf16.mxu1 %v3729_v8 }
 0xf8e   :  { %5145 = vmatpush3.bf16.msra.mxu1 %v3729_v8 }
 0xf91   :  { %5147 = vmatmul.mubr.bf16.vlgmr.msra.gmra.mrb[128].mxu1 %v7543_v4 }
 0xf92   :  { %5150 = vmatprep.mubr.bf16.mxu1 %v7546_v25  ;;  %v6076_v25 = vmov 127  }
 0xf93   :  { %5522 = vset.pattern.permute.xlu0 %v6076_v25  ;;  %5523 = vset.pattern.permute.xlu1 %v6076_v25 }
 0xf99   :  { %5151 = vmatmul.mubr.bf16.gmra.mrb[132].mxu1 %v7555_v43 }
 0xf9a   :  { %5154 = vmatprep.mubr.bf16.mxu1 %v7558_v48 }
 0xfa1   :  { %5155 = vmatmul.mubr.bf16.gmra.mrb[136].mxu1 %v7573_v61 }
 0xfa2   :  { %5158 = vmatprep.mubr.bf16.mxu1 %v7576_v47 }
 0xfa9   :  { %5159 = vmatmul.mubr.bf16.gmra.mrb[140].mxu1 %v7591_v52 }
 0xfaa   :  { %5186 = vmatprep.mubr.bf16.mxu1 %v5924_v29 }
0x1064   :  { %v5148_v63 = vpop.f32.mrb[128].mxu1 }
0x1065   :  { %v3773_v40 = vadd.f32 1e-30, %v5148_v63  ;;  %v3764_v50 = vpop.f32.mrb[129].mxu1 }
0x1066   :  { %v5149_v23 = vpop.f32.mrb[130].mxu1  ;;  %v3765_v37 = vadd.f32 1e-30, %v3764_v50 }
0x1067   :  { %5776 = vrcp.f32 %v3773_v40  ;;  %v3767_v4 = vpop.f32.mrb[131].mxu1  ;;  %v3776_v11 = vadd.f32 1e-30, %v5149_v23 }
0x1068   :  { %5778 = vrcp.f32 %v3765_v37  ;;  %v3768_v42 = vadd.f32 1e-30, %v3767_v4 }
0x1069   :  { %5780 = vrcp.f32 %v3776_v11 }
0x106c   :  { %v5152_v43 = vpop.f32.mrb[132].mxu1 }
0x106d   :  { %v3789_v48 = vadd.f32 1e-30, %v5152_v43  ;;  %v3780_v61 = vpop.f32.mrb[133].mxu1 }
0x106e   :  { %v5153_v47 = vpop.f32.mrb[134].mxu1  ;;  %v3781_v44 = vadd.f32 1e-30, %v3780_v61 }
0x106f   :  { %5782 = vrcp.f32 %v3789_v48  ;;  %v3783_v52 = vpop.f32.mrb[135].mxu1  ;;  %v3792_v13 = vadd.f32 1e-30, %v5153_v47 }
0x1070   :  { %5784 = vrcp.f32 %v3768_v42  ;;  %v3784_v5 = vadd.f32 1e-30, %v3783_v52 }
0x1071   :  { %v5777_v29 = vpop.eup %5776  ;;  %5786 = vrcp.f32 %v3781_v44 }
0x1072   :  { %3863 = vrot.lane.b32.xlu1 %v5777_v29, %s6075_s7  ;;  %v5779_v39 = vpop.eup %5778 }
0x1073   :  { %v5781_v38 = vpop.eup %5780 }
0x1074   :  { %v5156_v60 = vpop.f32.mrb[136].mxu1 }
0x1075   :  { %v3796_v41 = vpop.f32.mrb[137].mxu1  ;;  %v3805_v35 = vadd.f32 1e-30, %v5156_v60 }
0x1076   :  { %v3797_v26 = vadd.f32 1e-30, %v3796_v41  ;;  %3859 = vrot.lane.b32.xlu1 %v5779_v39, %s6075_s7  ;;  %v5157_v1 = vpop.f32.mrb[138].mxu1 }
0x1077   :  { %v3799_v59 = vpop.f32.mrb[139].mxu1  ;;  %v3808_v25 = vadd.f32 1e-30, %v5157_v1 }
0x1078   :  { %5788 = vrcp.f32 %v3797_v26  ;;  %v3800_v37 = vadd.f32 1e-30, %v3799_v59 }
0x1079   :  { %v5783_v21 = vpop.eup %5782  ;;  %5790 = vrcp.f32 %v3805_v35 }
0x107a   :  { %3871 = vrot.lane.b32.xlu0 %v5783_v21, %s6075_s7  ;;  %3865 = vrot.lane.b32.xlu1 %v5781_v38, %s6075_s7  ;;  %5792 = vrcp.f32 %v3784_v5  ;;  %v5785_v14 = vpop.eup %5784 }
0x107b   :  { %v5787_v23 = vpop.eup %5786  ;;  %5794 = vrcp.f32 %v3792_v13 }
0x107c   :  { %v5160_v8 = vpop.f32.mrb[140].mxu1 }
0x107d   :  { %v3812_v2 = vpop.f32.mrb[141].mxu1  ;;  %v3821_v63 = vadd.f32 1e-30, %v5160_v8 }
0x107e   :  { %v3813_v40 = vadd.f32 1e-30, %v3812_v2  ;;  %3861 = vrot.lane.b32.xlu1 %v5785_v14, %s6075_s7  ;;  %v5161_v50 = vpop.f32.mrb[142].mxu1 }
0x107f   :  { %v3815_v4 = vpop.f32.mrb[143].mxu1  ;;  %v3824_v52 = vadd.f32 1e-30, %v5161_v50 }
0x1080   :  { %5796 = vrcp.f32 %v3813_v40  ;;  %v3816_v61 = vadd.f32 1e-30, %v3815_v4 }
0x1081   :  { %5798 = vrcp.f32 %v3821_v63 }
0x1082   :  { %v5789_v11 = vpop.eup %5788  ;;  %3867 = vrot.lane.b32.xlu1 %v5787_v23, %s6075_s7  ;;  %5800 = vrcp.f32 %v3800_v37 }
0x1083   :  { %3875 = vrot.lane.b32.xlu0 %v5789_v11, %s6075_s7  ;;  %v5791_v43 = vpop.eup %5790  ;;  %5802 = vrcp.f32 %v3808_v25 }
0x1084   :  { %v5793_v48 = vpop.eup %5792  ;;  %5804 = vrcp.f32 %v3816_v61 }
0x1085   :  { %v5795_v47 = vpop.eup %5794  ;;  %5806 = vrcp.f32 %v3824_v52 }
0x1086   :  { %3869 = vrot.lane.b32.xlu1 %v5793_v48, %s6075_s7 }
0x1087   :  { %3879 = vrot.lane.b32.xlu0 %v5791_v43, %s6075_s7 }
0x108a   :  { %v5797_v42 = vpop.eup %5796  ;;  %3873 = vrot.lane.b32.xlu1 %v5795_v47, %s6075_s7 }
0x108b   :  { %3883 = vrot.lane.b32.xlu0 %v5797_v42, %s6075_s7  ;;  %v5799_v29 = vpop.eup %5798 }
0x108c   :  { %v5801_v44 = vpop.eup %5800 }
0x108d   :  { %v5803_v60 = vpop.eup %5802 }
0x108e   :  { %3877 = vrot.lane.b32.xlu1 %v5801_v44, %s6075_s7  ;;  %v5805_v39 = vpop.eup %5804 }
0x108f   :  { %3887 = vrot.lane.b32.xlu0 %v5799_v29, %s6075_s7  ;;  %v5807_v41 = vpop.eup %5806  ;;  %v3926_v29 = vsel %vm3923_vm1, %v7632_v31, 0.0 }
0x1092   :  { %3881 = vrot.lane.b32.xlu1 %v5803_v60, %s6075_s7 }
0x1096   :  { %3885 = vrot.lane.b32.xlu1 %v5805_v39, %s6075_s7  ;;  %v3929_v39 = vsel %vm3923_vm1, %v7646_v16, 0.0  ;;  %v3930_v16 = vsel %vm3923_vm1, %v7640_v9, 0.0 }
0x109a   :  { %3889 = vrot.lane.b32.xlu1 %v5807_v41, %s6075_s7 }
0x10e4   :  { %v3864_v35 = vpop.permute.xlu1 %3863 }
0x10e5   :  { %v3909_v14 = vmul.f32 %v7766_v12, %v3864_v35 }
0x10e8   :  { %v3860_v26 = vpop.permute.xlu1 %3859 }
0x10e9   :  { %v3907_v1 = vmul.f32 %v7758_v54, %v3860_v26 }
0x10eb   :  { %3942 = vperm.xlu0 %5522, %v3907_v1  }
0x10ec   :  { %v3866_v5 = vpop.permute.xlu1 %3865  ;;  %v3872_v13 = vpop.permute.xlu0 %3871 }
0x10ed   :  { %v3910_v59 = vmul.f32 %v7771_v0, %v3866_v5  ;;  %v3913_v0 = vmul.f32 %v7783_v22, %v3872_v13  ;;  %v3931_v5 = vsel %vm3923_vm1, %v7644_v45, 0.0  ;;  %v3932_v45 = vsel %vm3923_vm1, %v7650_v49, 0.0 }
0x10ef   :  { %3957 = vperm.xlu0 %5522, %v3910_v59  }
0x10f0   :  { %v3862_v38 = vpop.permute.xlu1 %3861 }
0x10f1   :  { %v3908_v21 = vmul.f32 %v7763_v46, %v3862_v38 }
0x10f3   :  { %3947 = vperm.xlu1 %5523, %v3908_v21  }
0x10f4   :  { %v3868_v8 = vpop.permute.xlu1 %3867 }
0x10f5   :  { %v3876_v2 = vpop.permute.xlu0 %3875  ;;  %v3911_v40 = vmul.f32 %v7776_v24, %v3868_v8  ;;  %v3933_v8 = vsel %vm3923_vm1, %v7654_v7, 0.0 }
0x10f6   :  { %v3915_v12 = vmul.f32 %v7790_v62, %v3876_v2 }
0x10f7   :  { %3952 = vperm.xlu1 %5523, %v3909_v14  }
0x10f8   :  { %v3870_v63 = vpop.permute.xlu1 %3869 }
0x10f9   :  { %v3912_v54 = vmul.f32 %v7780_v55, %v3870_v63  ;;  %v3880_v46 = vpop.permute.xlu0 %3879 }
0x10fa   :  { %v3917_v55 = vmul.f32 %v7797_v10, %v3880_v46 }
0x10fb   :  { %3962 = vperm.xlu1 %5523, %v3911_v40   ;;  %3967 = vperm.xlu0 %5522, %v3912_v54   ;;  %v3935_v54 = vsel %vm3923_vm1, %v7652_v28, 0.0 }
0x10fc   :  { %v3874_v50 = vpop.permute.xlu1 %3873 }
0x10fd   :  { %v3914_v23 = vmul.f32 %v7787_v32, %v3874_v50  ;;  %v3884_v24 = vpop.permute.xlu0 %3883 }
0x10fe   :  { %v3919_v32 = vmul.f32 %v7804_v17, %v3884_v24  ;;  %v3925_v17 = vsel %vm3923_vm1, %v7638_v33, 0.0 }
0x10ff   :  { %3972 = vperm.xlu1 %5523, %v3913_v0   ;;  %3977 = vperm.xlu0 %5522, %v3914_v23   ;;  %v8348_v0 = vld [vmem:[#allocation24_spill] sm:$0xff] }
0x1100   :  { %v3878_v37 = vpop.permute.xlu1 %3877  ;;  %v3934_v7 = vsel %vm3923_vm1, %v8348_v0, 0.0 }
0x1101   :  { %v3916_v4 = vmul.f32 %v7794_v3, %v3878_v37  ;;  %v3888_v48 = vpop.permute.xlu0 %3887 }
0x1102   :  { %v3921_v3 = vmul.f32 %v7754_v56, %v3888_v48 }
0x1103   :  { %3982 = vperm.xlu1 %5523, %v3915_v12   ;;  %3987 = vperm.xlu0 %5522, %v3916_v4   ;;  %v8349_v12 = vld [vmem:[#allocation20_spill] sm:$0xff] }
0x1104   :  { %v3882_v11 = vpop.permute.xlu1 %3881  ;;  %v3937_v4 = vsel %vm3923_vm1, %v8349_v12, 0.0 }
0x1105   :  { %v3918_v25 = vmul.f32 %v7801_v19, %v3882_v11  ;;  %v3924_v19 = vsel %vm3923_vm1, %v7634_v18, 0.0  ;;  %v8350_v11 = vld [vmem:[#allocation21_spill] sm:$0xff] }
0x1106   :  { %v3936_v28 = vsel %vm3923_vm1, %v8350_v11, 0.0 }
0x1107   :  { %3992 = vperm.xlu1 %5523, %v3917_v55   ;;  %3997 = vperm.xlu0 %5522, %v3918_v25  }
0x1108   :  { %v3886_v22 = vpop.permute.xlu1 %3885 }
0x1109   :  { %v3920_v43 = vmul.f32 %v7808_v6, %v3886_v22 }
0x110b   :  { %4002 = vperm.xlu1 %5523, %v3919_v32   ;;  %4007 = vperm.xlu0 %5522, %v3920_v43   ;;  %v8351_v43 = vld [vmem:[#allocation23_spill] sm:$0xff] }
0x110c   :  { %v3890_v62 = vpop.permute.xlu1 %3889  ;;  %v3939_v48 = vsel %vm3923_vm1, %v8351_v43, 0.0 }
0x110d   :  { %v3922_v61 = vmul.f32 %v7756_v34, %v3890_v62  ;;  %v3927_v34 = vsel %vm3923_vm1, %v7636_v58, 0.0  ;;  %v3928_v58 = vsel %vm3923_vm1, %v7642_v27, 0.0 }
0x110f   :  { %4012 = vperm.xlu1 %5523, %v3921_v3   ;;  %4017 = vperm.xlu0 %5522, %v3922_v61   ;;  %v8352_v3 = vld [vmem:[#allocation25_spill] sm:$0xff] }
0x1110   :  { %v3938_v61 = vsel %vm3923_vm1, %v8352_v3, 0.0 }
0x116a   :  { %v3943_v10 = vpop.permute.xlu0 %3942 }
0x116b   :  { %v4020_v47 = vmul.f32 %v3943_v10, %v3924_v19 }
0x116e   :  { %v3958_v52 = vpop.permute.xlu0 %3957 }
0x116f   :  { %v4023_v60 = vmul.f32 %v3958_v52, %v3927_v34 }
0x1172   :  { %v3948_v6 = vpop.permute.xlu1 %3947 }
0x1173   :  { %v4021_v42 = vmul.f32 %v3948_v6, %v3925_v17 }
0x1175   :  { %v4036_v56 = vpack.c.bf16 %v4021_v42, %v4020_v47 }
0x1176   :  { %v3953_v44 = vpop.permute.xlu1 %3952 }
0x1177   :  { %v4022_v18 = vmul.f32 %v3953_v44, %v3926_v29  ;;  %5162 = vmatprep.subr.bf16.mxu0 %v4036_v56  ;;  %5322 = vmatprep.subr.bf16.mxu1 %v4036_v56 }
0x1178   :  { %5163 = vmatpush3.bf16.msra.mxu0 %v4036_v56  ;;  %5330 = vmatpush3.bf16.msra.mxu1 %v4036_v56 }
0x1179   :  { %v4037_v33 = vpack.c.bf16 %v4023_v60, %v4022_v18 }
0x117a   :  { %v3968_v41 = vpop.permute.xlu0 %3967  ;;  %v3963_v35 = vpop.permute.xlu1 %3962 }
0x117b   :  { %v4025_v26 = vmul.f32 %v3968_v41, %v3929_v39  ;;  %v4024_v31 = vmul.f32 %v3963_v35, %v3928_v58  ;;  %5164 = vmatprep.subr.bf16.mxu0 %v4037_v33  ;;  %5323 = vmatprep.subr.bf16.mxu1 %v4037_v33 }
0x117c   :  { %5165 = vmatpush3.bf16.msra.mxu0 %v4037_v33  ;;  %5331 = vmatpush3.bf16.msra.mxu1 %v4037_v33 }
0x117d   :  { %v4038_v1 = vpack.c.bf16 %v4025_v26, %v4024_v31 }
0x117e   :  { %v3978_v59 = vpop.permute.xlu0 %3977  ;;  %v3973_v38 = vpop.permute.xlu1 %3972 }
0x117f   :  { %v4027_v21 = vmul.f32 %v3978_v59, %v3931_v5  ;;  %v4026_v27 = vmul.f32 %v3973_v38, %v3930_v16  ;;  %5166 = vmatprep.subr.bf16.mxu0 %v4038_v1  ;;  %5324 = vmatprep.subr.bf16.mxu1 %v4038_v1 }
0x1180   :  { %5167 = vmatpush3.bf16.msra.mxu0 %v4038_v1  ;;  %5332 = vmatpush3.bf16.msra.mxu1 %v4038_v1 }
0x1181   :  { %v4039_v13 = vpack.c.bf16 %v4027_v21, %v4026_v27 }
0x1182   :  { %v3988_v14 = vpop.permute.xlu0 %3987  ;;  %v3983_v2 = vpop.permute.xlu1 %3982 }
0x1183   :  { %v4029_v63 = vmul.f32 %v3988_v14, %v3933_v8  ;;  %v4028_v9 = vmul.f32 %v3983_v2, %v3932_v45  ;;  %5168 = vmatprep.subr.bf16.mxu0 %v4039_v13  ;;  %5325 = vmatprep.subr.bf16.mxu1 %v4039_v13 }
0x1184   :  { %5169 = vmatpush3.bf16.msra.mxu0 %v4039_v13  ;;  %5333 = vmatpush3.bf16.msra.mxu1 %v4039_v13 }
0x1185   :  { %v4040_v40 = vpack.c.bf16 %v4029_v63, %v4028_v9 }
0x1186   :  { %v3998_v50 = vpop.permute.xlu0 %3997  ;;  %v3993_v23 = vpop.permute.xlu1 %3992 }
0x1187   :  { %v4031_v46 = vmul.f32 %v3998_v50, %v3935_v54  ;;  %v4030_v49 = vmul.f32 %v3993_v23, %v3934_v7  ;;  %5170 = vmatprep.subr.bf16.mxu0 %v4040_v40  ;;  %5326 = vmatprep.subr.bf16.mxu1 %v4040_v40 }
0x1188   :  { %5171 = vmatpush3.bf16.msra.mxu0 %v4040_v40  ;;  %5334 = vmatpush3.bf16.msra.mxu1 %v4040_v40 }
0x1189   :  { %v4041_v37 = vpack.c.bf16 %v4031_v46, %v4030_v49 }
0x118a   :  { %v4008_v24 = vpop.permute.xlu0 %4007  ;;  %v4003_v55 = vpop.permute.xlu1 %4002 }
0x118b   :  { %v4033_v25 = vmul.f32 %v4008_v24, %v3937_v4  ;;  %v4032_v22 = vmul.f32 %v4003_v55, %v3936_v28  ;;  %5172 = vmatprep.subr.bf16.mxu0 %v4041_v37  ;;  %5327 = vmatprep.subr.bf16.mxu1 %v4041_v37 }
0x118c   :  { %5173 = vmatpush3.bf16.msra.mxu0 %v4041_v37  ;;  %5335 = vmatpush3.bf16.msra.mxu1 %v4041_v37 }
0x118d   :  { %v4042_v32 = vpack.c.bf16 %v4033_v25, %v4032_v22 }
0x118e   :  { %v4018_v62 = vpop.permute.xlu0 %4017  ;;  %v4013_v10 = vpop.permute.xlu1 %4012 }
0x118f   :  { %v4035_v19 = vmul.f32 %v4018_v62, %v3939_v48  ;;  %v4034_v17 = vmul.f32 %v4013_v10, %v3938_v61  ;;  %5174 = vmatprep.subr.bf16.mxu0 %v4042_v32  ;;  %5328 = vmatprep.subr.bf16.mxu1 %v4042_v32 }
0x1190   :  { %5175 = vmatpush3.bf16.msra.mxu0 %v4042_v32  ;;  %5336 = vmatpush3.bf16.msra.mxu1 %v4042_v32 }
0x1191   :  { %v4043_v6 = vpack.c.bf16 %v4035_v19, %v4034_v17 }
0x1193   :  { %5176 = vmatprep.subr.bf16.mxu0 %v4043_v6  ;;  %5329 = vmatprep.subr.bf16.mxu1 %v4043_v6 }
0x1194   :  { %5177 = vmatpush3.bf16.msra.mxu0 %v4043_v6  ;;  %5337 = vmatpush3.bf16.msra.mxu1 %v4043_v6 }
0x1197   :  { %5179 = vmatmul.mubr.bf16.vlgmr.msra.gmra.mrb[144].mxu0 %v7814_v36  ;;  %5187 = vmatmul.mubr.bf16.vlgmr.msra.gmra.mrb[144].mxu1 %v7823_v53 }
0x1198   :  { %5182 = vmatprep.mubr.bf16.mxu0 %v7817_v20  ;;  %5190 = vmatprep.mubr.bf16.mxu1 %v7826_v15 }
0x119f   :  { %5183 = vmatmul.mubr.bf16.gmra.mrb[148].mxu0 %v7820_v51  ;;  %5191 = vmatmul.mubr.bf16.gmra.mrb[148].mxu1 %v7829_v30 }
0x126a   :  { %v5180_v47 = vpop.f32.mrb[144].mxu0  ;;  %v5188_v42 = vpop.f32.mrb[144].mxu1 }
0x126b   :  { %v4161_v52 = vmul.f32 1.442695, %v5180_v47  ;;  %v4078_v56 = vpop.f32.mrb[145].mxu0  ;;  %v7927_v34 = vpop.f32.mrb[145].mxu1  ;;  %v4177_v44 = vmul.f32 1.442695, %v5188_v42 }
0x126c   :  { %v4157_v29 = vmul.f32 1.442695, %v4078_v56  ;;  %v5181_v60 = vpop.f32.mrb[146].mxu0  ;;  %v7929_v53 = vpop.f32.mrb[146].mxu1  ;;  %v4173_v51 = vmul.f32 1.442695, %v7927_v34 }
0x126d   :  { %5808 = vpow2.f32 %v4161_v52  ;;  %v4163_v36 = vmul.f32 1.442695, %v5181_v60  ;;  %v7931_v20 = vpop.f32.mrb[147].mxu0  ;;  %v4179_v15 = vmul.f32 1.442695, %v7929_v53  ;;  %v7935_v30 = vpop.f32.mrb[147].mxu1 }
0x126e   :  { %5810 = vpow2.f32 %v4157_v29  ;;  %v4159_v18 = vmul.f32 1.442695, %v7931_v20  ;;  %v4175_v33 = vmul.f32 1.442695, %v7935_v30  ;;  %vm4143_vm6 = vcmp.gt.f32.partialorder %v5180_v47, 0.0 }
0x126f   :  { %5812 = vpow2.f32 %v4177_v44  ;;  %vm4141_vm8 = vcmp.gt.f32.partialorder %v4078_v56, 0.0  ;;  %vm4151_vm9 = vcmp.gt.f32.partialorder %v5188_v42, 0.0  ;;  %vm4144_vm10 = vcmp.gt.f32.partialorder %v5181_v60, 0.0 }
0x1270   :  { %5814 = vpow2.f32 %v4163_v36  ;;  %vm4149_vm11 = vcmp.gt.f32.partialorder %v7927_v34, 0.0  ;;  %vm4152_vm12 = vcmp.gt.f32.partialorder %v7929_v53, 0.0  ;;  %vm4142_vm13 = vcmp.gt.f32.partialorder %v7931_v20, 0.0 }
0x1271   :  { %5816 = vpow2.f32 %v4173_v51  ;;  %vm4150_vm14 = vcmp.gt.f32.partialorder %v7935_v30, 0.0 }
0x1272   :  { %5818 = vpow2.f32 %v4179_v15  ;;  %v7939_v39 = vpop.f32.mrb[148].mxu0  ;;  %v7941_v41 = vpop.f32.mrb[148].mxu1 }
0x1273   :  { %5820 = vpow2.f32 %v4159_v18  ;;  %v4169_v58 = vmul.f32 1.442695, %v7939_v39  ;;  %v7944_v35 = vpop.f32.mrb[149].mxu0  ;;  %v7946_v26 = vpop.f32.mrb[149].mxu1  ;;  %v4185_v55 = vmul.f32 1.442695, %v7941_v41 }
0x1274   :  { %5822 = vpow2.f32 %v4175_v33  ;;  %v7948_v31 = vpop.f32.mrb[150].mxu0  ;;  %v7953_v59 = vpop.f32.mrb[150].mxu1  ;;  %v4165_v16 = vmul.f32 1.442695, %v7944_v35  ;;  %v4181_v40 = vmul.f32 1.442695, %v7946_v26 }
0x1275   :  { %v4171_v1 = vmul.f32 1.442695, %v7948_v31  ;;  %v7951_v5 = vpop.f32.mrb[151].mxu0  ;;  %v7956_v38 = vpop.f32.mrb[151].mxu1  ;;  %5824 = vpow2.f32 %v4169_v58  ;;  %v4187_v22 = vmul.f32 1.442695, %v7953_v59 }
0x1276   :  { %v4167_v27 = vmul.f32 1.442695, %v7951_v5  ;;  %v4183_v12 = vmul.f32 1.442695, %v7956_v38  ;;  %vm4147_vm15 = vcmp.gt.f32.partialorder %v7939_v39, 0.0  ;;  %vm4148_vm2 = vcmp.gt.f32.partialorder %v7948_v31, 0.0 }
0x1277   :  { %v5809_v21 = vpop.eup %5808  ;;  %5826 = vpow2.f32 %v4171_v1  ;;  %vm4145_vm4 = vcmp.gt.f32.partialorder %v7944_v35, 0.0  ;;  %vm4146_vm5 = vcmp.gt.f32.partialorder %v7951_v5, 0.0  ;;  %vm4153_vm7 = vcmp.gt.f32.partialorder %v7946_v26, 0.0 }
0x1278   :  { %v5811_v13 = vpop.eup %5810  ;;  %v4548_v8 = vadd.f32 -1.0, %v5809_v21  ;;  %5828 = vpow2.f32 %v4165_v16  ;;  %vm4154_vm3 = vcmp.gt.f32.partialorder %v7956_v38, 0.0  ;;  %vm4155_vm0 = vcmp.gt.f32.partialorder %v7941_v41, 0.0 }
0x1279   :  { %v5813_v14 = vpop.eup %5812  ;;  %v4546_v45 = vadd.f32 -1.0, %v5811_v13  ;;  %5830 = vpow2.f32 %v4167_v27 }
0x127a   :  { %v5815_v2 = vpop.eup %5814  ;;  %v7959_v63 = vsel %vm4143_vm6, %v5180_v47, %v4548_v8  ;;  %v4556_v9 = vadd.f32 -1.0, %v5813_v14  ;;  %5832 = vpow2.f32 %v4181_v40  ;;  %vm4156_vm6 = vcmp.gt.f32.partialorder %v7953_v59, 0.0 }
0x127b   :  { %v5817_v54 = vpop.eup %5816  ;;  %v7962_v50 = vsel %vm4141_vm8, %v4078_v56, %v4546_v45  ;;  %v4549_v0 = vadd.f32 -1.0, %v5815_v2  ;;  %v4223_v7 = vsel %vm3923_vm1, %v7959_v63, -1e+30  ;;  %5834 = vpow2.f32 %v4183_v12 }
0x127c   :  { %v5819_v23 = vpop.eup %5818  ;;  %v7967_v46 = vsel %vm4151_vm9, %v5188_v42, %v4556_v9  ;;  %v4554_v49 = vadd.f32 -1.0, %v5817_v54  ;;  %4241 = vmax.xlane.f32.xlu0 %v4223_v7  ;;  %v4221_v37 = vsel %vm3923_vm1, %v7962_v50, -1e+30  ;;  %5836 = vpow2.f32 %v4185_v55 }
0x127d   :  { %v5821_v4 = vpop.eup %5820  ;;  %v7974_v24 = vsel %vm4144_vm10, %v5181_v60, %v4549_v0  ;;  %v4557_v11 = vadd.f32 -1.0, %v5819_v23  ;;  %4237 = vmax.xlane.f32.xlu1 %v4221_v37  ;;  %v4231_v25 = vsel %vm3923_vm1, %v7967_v46, -1e+30  ;;  %5838 = vpow2.f32 %v4187_v22 }
0x127e   :  { %v5823_v28 = vpop.eup %5822  ;;  %v7984_v32 = vsel %vm4149_vm11, %v7927_v34, %v4554_v49  ;;  %v4547_v43 = vadd.f32 -1.0, %v5821_v4  ;;  %v4224_v48 = vsel %vm3923_vm1, %v7974_v24, -1e+30 }
0x127f   :  { %v5825_v62 = vpop.eup %5824  ;;  %v7990_v3 = vsel %vm4152_vm12, %v7929_v53, %v4557_v11  ;;  %v4555_v61 = vadd.f32 -1.0, %v5823_v28  ;;  %v4229_v19 = vsel %vm3923_vm1, %v7984_v32, -1e+30 }
0x1280   :  { %4257 = vmax.xlane.f32.xlu0 %v4231_v25  ;;  %v7998_v6 = vsel %vm4142_vm13, %v7931_v20, %v4547_v43  ;;  %v4552_v47 = vadd.f32 -1.0, %v5825_v62  ;;  %v4232_v42 = vsel %vm3923_vm1, %v7990_v3, -1e+30 }
0x1281   :  { %4243 = vmax.xlane.f32.xlu1 %v4224_v48  ;;  %v5827_v10 = vpop.eup %5826  ;;  %v8004_v56 = vsel %vm4150_vm14, %v7935_v30, %v4555_v61  ;;  %v4222_v29 = vsel %vm3923_vm1, %v7998_v6, -1e+30 }
0x1282   :  { %v5829_v17 = vpop.eup %5828  ;;  %v4553_v34 = vadd.f32 -1.0, %v5827_v10  ;;  %v8011_v44 = vsel %vm4147_vm15, %v7939_v39, %v4552_v47  ;;  %v4230_v36 = vsel %vm3923_vm1, %v8004_v56, -1e+30 }
0x1283   :  { %v5831_v52 = vpop.eup %5830  ;;  %v4550_v60 = vadd.f32 -1.0, %v5829_v17  ;;  %v4227_v30 = vsel %vm3923_vm1, %v8011_v44, -1e+30 }
0x1284   :  { %4253 = vmax.xlane.f32.xlu0 %v4229_v19  ;;  %v5833_v53 = vpop.eup %5832  ;;  %v8018_v20 = vsel %vm4148_vm2, %v7948_v31, %v4553_v34  ;;  %v4551_v51 = vadd.f32 -1.0, %v5831_v52 }
0x1285   :  { %4259 = vmax.xlane.f32.xlu1 %v4232_v42  ;;  %v5835_v15 = vpop.eup %5834  ;;  %v8025_v18 = vsel %vm4145_vm4, %v7944_v35, %v4550_v60  ;;  %v4558_v33 = vadd.f32 -1.0, %v5833_v53  ;;  %v4228_v39 = vsel %vm3923_vm1, %v8018_v20, -1e+30 }
0x1286   :  { %v5837_v58 = vpop.eup %5836  ;;  %v8032_v31 = vsel %vm4146_vm5, %v7951_v5, %v4551_v51  ;;  %v4559_v1 = vadd.f32 -1.0, %v5835_v15  ;;  %v4225_v35 = vsel %vm3923_vm1, %v8025_v18, -1e+30 }
0x1287   :  { %v5839_v16 = vpop.eup %5838  ;;  %v4560_v21 = vadd.f32 -1.0, %v5837_v58  ;;  %v8040_v27 = vsel %vm4153_vm7, %v7946_v26, %v4558_v33  ;;  %v4226_v5 = vsel %vm3923_vm1, %v8032_v31, -1e+30 }
0x1288   :  { %4239 = vmax.xlane.f32.xlu0 %v4222_v29  ;;  %v4561_v13 = vadd.f32 -1.0, %v5839_v16  ;;  %v8047_v8 = vsel %vm4154_vm3, %v7956_v38, %v4559_v1  ;;  %v4233_v14 = vsel %vm3923_vm1, %v8040_v27, -1e+30 }
0x1289   :  { %4255 = vmax.xlane.f32.xlu1 %v4230_v36  ;;  %v8054_v26 = vsel %vm4155_vm0, %v7941_v41, %v4560_v21  ;;  %v4234_v45 = vsel %vm3923_vm1, %v8047_v8, -1e+30 }
0x128a   :  { %v8060_v2 = vsel %vm4156_vm6, %v7953_v59, %v4561_v13  ;;  %v4235_v38 = vsel %vm3923_vm1, %v8054_v26, -1e+30 }
0x128b   :  { %v4236_v9 = vsel %vm3923_vm1, %v8060_v2, -1e+30 }
0x128c   :  { %4249 = vmax.xlane.f32.xlu0 %v4227_v30 }
0x128d   :  { %4251 = vmax.xlane.f32.xlu1 %v4228_v39 }
0x1290   :  { %4245 = vmax.xlane.f32.xlu0 %v4225_v35 }
0x1291   :  { %4247 = vmax.xlane.f32.xlu1 %v4226_v5 }
0x1294   :  { %4261 = vmax.xlane.f32.xlu0 %v4233_v14 }
0x1295   :  { %4263 = vmax.xlane.f32.xlu1 %v4234_v45 }
0x1298   :  { %4265 = vmax.xlane.f32.xlu0 %v4235_v38 }
0x1299   :  { %4267 = vmax.xlane.f32.xlu1 %v4236_v9 }
0x1309   :  { %v8068_v41 = vpop.xlane.xlu0 %4241 }
0x130a   :  { %v4271_v40 = vsub.f32 %v7959_v63, %v8068_v41  ;;  %v8072_v54 = vpop.xlane.xlu1 %4237 }
0x130b   :  { %v4269_v0 = vsub.f32 %v7962_v50, %v8072_v54 }
0x130c   :  { %v4289_v59 = vmul.f32 1.442695, %v4271_v40 }
0x130d   :  { %v8076_v7 = vpop.xlane.xlu0 %4257  ;;  %v4285_v12 = vmul.f32 1.442695, %v4269_v0 }
0x130e   :  { %5840 = vpow2.f32 %v4289_v59  ;;  %v4279_v23 = vsub.f32 %v7967_v46, %v8076_v7  ;;  %v8080_v49 = vpop.xlane.xlu1 %4243 }
0x130f   :  { %v4272_v37 = vsub.f32 %v7974_v24, %v8080_v49 }
0x1310   :  { %v4305_v4 = vmul.f32 1.442695, %v4279_v23 }
0x1311   :  { %v4291_v11 = vmul.f32 1.442695, %v4272_v37  ;;  %v8084_v28 = vpop.xlane.xlu0 %4253 }
0x1312   :  { %5842 = vpow2.f32 %v4305_v4  ;;  %v4277_v55 = vsub.f32 %v7984_v32, %v8084_v28  ;;  %v8088_v25 = vpop.xlane.xlu1 %4259 }
0x1313   :  { %5844 = vpow2.f32 %v4291_v11  ;;  %v4280_v22 = vsub.f32 %v7990_v3, %v8088_v25 }
0x1314   :  { %5846 = vpow2.f32 %v4285_v12  ;;  %v4301_v43 = vmul.f32 1.442695, %v4277_v55 }
0x1315   :  { %v4307_v48 = vmul.f32 1.442695, %v4280_v22  ;;  %v8092_v62 = vpop.xlane.xlu0 %4239 }
0x1316   :  { %v4270_v61 = vsub.f32 %v7998_v6, %v8092_v62  ;;  %v8096_v10 = vpop.xlane.xlu1 %4255 }
0x1317   :  { %5848 = vpow2.f32 %v4307_v48  ;;  %v4278_v19 = vsub.f32 %v8004_v56, %v8096_v10 }
0x1318   :  { %v5841_v17 = vpop.eup %5840  ;;  %5850 = vpow2.f32 %v4301_v43  ;;  %v4287_v47 = vmul.f32 1.442695, %v4270_v61 }
0x1319   :  { %v4303_v42 = vmul.f32 1.442695, %v4278_v19  ;;  %v8100_v52 = vpop.xlane.xlu0 %4249  ;;  %v4319_v34 = vsel %vm3923_vm1, %v5841_v17, 0.0 }
0x131a   :  { %5852 = vpow2.f32 %v4287_v47  ;;  %v4275_v29 = vsub.f32 %v8011_v44, %v8100_v52  ;;  %4337 = vadd.xlane.f32.xlu0 %v4319_v34  ;;  %v8106_v60 = vpop.xlane.xlu1 %4251 }
0x131b   :  { %v4276_v36 = vsub.f32 %v8018_v20, %v8106_v60  ;;  %5854 = vpow2.f32 %v4303_v42 }
0x131c   :  { %v5843_v53 = vpop.eup %5842  ;;  %v4297_v51 = vmul.f32 1.442695, %v4275_v29 }
0x131d   :  { %v5845_v15 = vpop.eup %5844  ;;  %v4299_v30 = vmul.f32 1.442695, %v4276_v36  ;;  %v8110_v33 = vpop.xlane.xlu0 %4245  ;;  %v4327_v39 = vsel %vm3923_vm1, %v5843_v53, 0.0 }
0x131e   :  { %v5847_v58 = vpop.eup %5846  ;;  %5856 = vpow2.f32 %v4297_v51  ;;  %v4273_v1 = vsub.f32 %v8025_v18, %v8110_v33  ;;  %4353 = vadd.xlane.f32.xlu0 %v4327_v39  ;;  %v8116_v16 = vpop.xlane.xlu1 %4247  ;;  %v4320_v35 = vsel %vm3923_vm1, %v5845_v15, 0.0 }
0x131f   :  { %v4274_v21 = vsub.f32 %v8032_v31, %v8116_v16  ;;  %4339 = vadd.xlane.f32.xlu1 %v4320_v35  ;;  %5858 = vpow2.f32 %v4299_v30  ;;  %v4317_v38 = vsel %vm3923_vm1, %v5847_v58, 0.0 }
0x1320   :  { %v4293_v5 = vmul.f32 1.442695, %v4273_v1 }
0x1321   :  { %v5849_v13 = vpop.eup %5848  ;;  %v4295_v14 = vmul.f32 1.442695, %v4274_v21  ;;  %v8122_v45 = vpop.xlane.xlu0 %4261 }
0x1322   :  { %v5851_v9 = vpop.eup %5850  ;;  %5860 = vpow2.f32 %v4293_v5  ;;  %v4281_v40 = vsub.f32 %v8040_v27, %v8122_v45  ;;  %4333 = vadd.xlane.f32.xlu0 %v4317_v38  ;;  %v8128_v59 = vpop.xlane.xlu1 %4263  ;;  %v4328_v0 = vsel %vm3923_vm1, %v5849_v13, 0.0 }
0x1323   :  { %v4282_v23 = vsub.f32 %v8047_v8, %v8128_v59  ;;  %4355 = vadd.xlane.f32.xlu1 %v4328_v0  ;;  %5862 = vpow2.f32 %v4295_v14  ;;  %v4325_v55 = vsel %vm3923_vm1, %v5851_v9, 0.0 }
0x1324   :  { %v5853_v37 = vpop.eup %5852  ;;  %v4309_v12 = vmul.f32 1.442695, %v4281_v40 }
0x1325   :  { %v4311_v4 = vmul.f32 1.442695, %v4282_v23  ;;  %v8134_v11 = vpop.xlane.xlu0 %4265  ;;  %v4318_v22 = vsel %vm3923_vm1, %v5853_v37, 0.0  ;;  %v5855_v61 = vpop.eup %5854 }
0x1326   :  { %5864 = vpow2.f32 %v4309_v12  ;;  %v4283_v43 = vsub.f32 %v8054_v26, %v8134_v11  ;;  %4349 = vadd.xlane.f32.xlu0 %v4325_v55  ;;  %v8142_v48 = vpop.xlane.xlu1 %4267  ;;  %v4326_v29 = vsel %vm3923_vm1, %v5855_v61, 0.0 }
0x1327   :  { %v4284_v19 = vsub.f32 %v8060_v2, %v8142_v48  ;;  %4335 = vadd.xlane.f32.xlu1 %v4318_v22  ;;  %5866 = vpow2.f32 %v4311_v4 }
0x1328   :  { %v5857_v17 = vpop.eup %5856  ;;  %v4313_v47 = vmul.f32 1.442695, %v4283_v43 }
0x1329   :  { %v4315_v42 = vmul.f32 1.442695, %v4284_v19  ;;  %v4323_v34 = vsel %vm3923_vm1, %v5857_v17, 0.0  ;;  %v5859_v36 = vpop.eup %5858 }
0x132a   :  { %5868 = vpow2.f32 %v4313_v47  ;;  %4345 = vadd.xlane.f32.xlu0 %v4323_v34  ;;  %v4324_v15 = vsel %vm3923_vm1, %v5859_v36, 0.0 }
0x132b   :  { %4351 = vadd.xlane.f32.xlu1 %v4326_v29  ;;  %5870 = vpow2.f32 %v4315_v42 }
0x132c   :  { %v5861_v53 = vpop.eup %5860 }
0x132d   :  { %v4321_v51 = vsel %vm3923_vm1, %v5861_v53, 0.0  ;;  %v5863_v30 = vpop.eup %5862 }
0x132e   :  { %4341 = vadd.xlane.f32.xlu0 %v4321_v51  ;;  %v4322_v1 = vsel %vm3923_vm1, %v5863_v30, 0.0 }
0x132f   :  { %4347 = vadd.xlane.f32.xlu1 %v4324_v15 }
0x1330   :  { %v5865_v39 = vpop.eup %5864 }
0x1331   :  { %v4329_v58 = vsel %vm3923_vm1, %v5865_v39, 0.0  ;;  %v5867_v35 = vpop.eup %5866 }
0x1332   :  { %4357 = vadd.xlane.f32.xlu0 %v4329_v58  ;;  %v4330_v13 = vsel %vm3923_vm1, %v5867_v35, 0.0 }
0x1333   :  { %4343 = vadd.xlane.f32.xlu1 %v4322_v1 }
0x1334   :  { %v5869_v21 = vpop.eup %5868 }
0x1335   :  { %v4331_v5 = vsel %vm3923_vm1, %v5869_v21, 0.0  ;;  %v5871_v14 = vpop.eup %5870 }
0x1336   :  { %4361 = vadd.xlane.f32.xlu0 %v4331_v5  ;;  %v4332_v38 = vsel %vm3923_vm1, %v5871_v14, 0.0 }
0x1337   :  { %4359 = vadd.xlane.f32.xlu1 %v4330_v13 }
0x133b   :  { %4363 = vadd.xlane.f32.xlu1 %v4332_v38 }
0x13a7   :  { %v4338_v9 = vpop.xlane.xlu0 %4337 }
0x13a8   :  { %5872 = vlog2.f32 %v4338_v9 }
0x13ab   :  { %v4354_v40 = vpop.xlane.xlu0 %4353 }
0x13ac   :  { %5874 = vlog2.f32 %v4354_v40  ;;  %v4340_v0 = vpop.xlane.xlu1 %4339 }
0x13ad   :  { %5876 = vlog2.f32 %v4340_v0 }
0x13af   :  { %v4334_v23 = vpop.xlane.xlu0 %4333 }
0x13b0   :  { %5878 = vlog2.f32 %v4334_v23  ;;  %v4356_v37 = vpop.xlane.xlu1 %4355 }
0x13b1   :  { %5880 = vlog2.f32 %v4356_v37 }
0x13b2   :  { %v5873_v12 = vpop.eup %5872 }
0x13b3   :  { %v4370_v4 = vmul.f32 0.6931472, %v5873_v12  ;;  %v4350_v55 = vpop.xlane.xlu0 %4349 }
0x13b4   :  { %5882 = vlog2.f32 %v4350_v55  ;;  %v4336_v22 = vpop.xlane.xlu1 %4335 }
0x13b5   :  { %v4399_v43 = vadd.f32 %v4370_v4, %v8068_v41  ;;  %5884 = vlog2.f32 %v4336_v22 }
0x13b6   :  { %v5875_v61 = vpop.eup %5874 }
0x13b7   :  { %v5877_v19 = vpop.eup %5876  ;;  %v4415_v17 = vsub.f32 %v7959_v63, %v4399_v43  ;;  %v4386_v47 = vmul.f32 0.6931472, %v5875_v61  ;;  %v4346_v42 = vpop.xlane.xlu0 %4345 }
0x13b8   :  { %v4372_v34 = vmul.f32 0.6931472, %v5877_v19  ;;  %5886 = vlog2.f32 %v4346_v42  ;;  %v4352_v29 = vpop.xlane.xlu1 %4351 }
0x13b9   :  { %v4431_v36 = vsel %vm3923_vm1, %v4415_v17, 0.0  ;;  %v4407_v53 = vadd.f32 %v4386_v47, %v8076_v7  ;;  %5888 = vlog2.f32 %v4352_v29 }
0x13ba   :  { %v5879_v51 = vpop.eup %5878  ;;  %4447 = vst [vmem:[#allocation12 + $0x10] sm:$0xff] %v4431_v36  ;;  %v4400_v41 = vadd.f32 %v4372_v34, %v8080_v49 }
0x13bb   :  { %v5881_v15 = vpop.eup %5880  ;;  %v4423_v30 = vsub.f32 %v7967_v46, %v4407_v53  ;;  %v4366_v39 = vmul.f32 0.6931472, %v5879_v51  ;;  %v4342_v63 = vpop.xlane.xlu0 %4341 }
0x13bc   :  { %v4416_v58 = vsub.f32 %v7974_v24, %v4400_v41  ;;  %v4388_v1 = vmul.f32 0.6931472, %v5881_v15  ;;  %5890 = vlog2.f32 %v4342_v63  ;;  %v4348_v35 = vpop.xlane.xlu1 %4347 }
0x13bd   :  { %v4439_v21 = vsel %vm3923_vm1, %v4423_v30, 0.0  ;;  %v4397_v7 = vadd.f32 %v4366_v39, %v8072_v54  ;;  %5892 = vlog2.f32 %v4348_v35 }
0x13be   :  { %v5883_v5 = vpop.eup %5882  ;;  %4455 = vst [vmem:[#allocation12 + $0x50] sm:$0xff] %v4439_v21  ;;  %v4432_v49 = vsel %vm3923_vm1, %v4416_v58, 0.0  ;;  %v4408_v46 = vadd.f32 %v4388_v1, %v8088_v25 }
0x13bf   :  { %v5885_v13 = vpop.eup %5884  ;;  %4448 = vst [vmem:[#allocation12 + $0x18] sm:$0xff] %v4432_v49  ;;  %v4413_v24 = vsub.f32 %v7962_v50, %v4397_v7  ;;  %v4382_v14 = vmul.f32 0.6931472, %v5883_v5  ;;  %v4358_v38 = vpop.xlane.xlu0 %4357 }
0x13c0   :  { %v4424_v9 = vsub.f32 %v7990_v3, %v4408_v46  ;;  %v4368_v40 = vmul.f32 0.6931472, %v5885_v13  ;;  %5894 = vlog2.f32 %v4358_v38  ;;  %v4344_v0 = vpop.xlane.xlu1 %4343 }
0x13c1   :  { %v4429_v54 = vsel %vm3923_vm1, %v4413_v24, 0.0  ;;  %v4405_v23 = vadd.f32 %v4382_v14, %v8084_v28  ;;  %5896 = vlog2.f32 %v4344_v0 }
0x13c2   :  { %v5887_v37 = vpop.eup %5886  ;;  %4445 = vst [vmem:[#allocation12] sm:$0xff] %v4429_v54  ;;  %v4440_v25 = vsel %vm3923_vm1, %v4424_v9, 0.0  ;;  %v4398_v50 = vadd.f32 %v4368_v40, %v8092_v62 }
0x13c3   :  { %v5889_v12 = vpop.eup %5888  ;;  %4456 = vst [vmem:[#allocation12 + $0x58] sm:$0xff] %v4440_v25  ;;  %v4421_v3 = vsub.f32 %v7984_v32, %v4405_v23  ;;  %v4378_v4 = vmul.f32 0.6931472, %v5887_v37  ;;  %v4362_v55 = vpop.xlane.xlu0 %4361 }
0x13c4   :  { %v4414_v22 = vsub.f32 %v7998_v6, %v4398_v50  ;;  %v4384_v43 = vmul.f32 0.6931472, %v5889_v12  ;;  %5898 = vlog2.f32 %v4362_v55  ;;  %v4360_v61 = vpop.xlane.xlu1 %4359 }
0x13c5   :  { %v4437_v28 = vsel %vm3923_vm1, %v4421_v3, 0.0  ;;  %v4403_v19 = vadd.f32 %v4378_v4, %v8100_v52  ;;  %5900 = vlog2.f32 %v4360_v61 }
0x13c6   :  { %v5891_v17 = vpop.eup %5890  ;;  %4453 = vst [vmem:[#allocation12 + $0x40] sm:$0xff] %v4437_v28  ;;  %v4430_v62 = vsel %vm3923_vm1, %v4414_v22, 0.0  ;;  %v4406_v32 = vadd.f32 %v4384_v43, %v8096_v10 }
0x13c7   :  { %v5893_v47 = vpop.eup %5892  ;;  %4446 = vst [vmem:[#allocation12 + $0x8] sm:$0xff] %v4430_v62  ;;  %v4419_v6 = vsub.f32 %v8011_v44, %v4403_v19  ;;  %v4374_v42 = vmul.f32 0.6931472, %v5891_v17 }
0x13c8   :  { %v4422_v34 = vsub.f32 %v8004_v56, %v4406_v32  ;;  %v4380_v29 = vmul.f32 0.6931472, %v5893_v47  ;;  %v4364_v36 = vpop.xlane.xlu1 %4363 }
0x13c9   :  { %v4435_v52 = vsel %vm3923_vm1, %v4419_v6, 0.0  ;;  %v4401_v53 = vadd.f32 %v4374_v42, %v8110_v33  ;;  %5902 = vlog2.f32 %v4364_v36 }
0x13ca   :  { %v5895_v51 = vpop.eup %5894  ;;  %4451 = vst [vmem:[#allocation12 + $0x30] sm:$0xff] %v4435_v52  ;;  %v4438_v10 = vsel %vm3923_vm1, %v4422_v34, 0.0  ;;  %v4404_v41 = vadd.f32 %v4380_v29, %v8106_v60 }
0x13cb   :  { %v5897_v15 = vpop.eup %5896  ;;  %4454 = vst [vmem:[#allocation12 + $0x48] sm:$0xff] %v4438_v10  ;;  %v4417_v44 = vsub.f32 %v8025_v18, %v4401_v53  ;;  %v4390_v56 = vmul.f32 0.6931472, %v5895_v51 }
0x13cc   :  { %v4420_v30 = vsub.f32 %v8018_v20, %v4404_v41  ;;  %v4376_v39 = vmul.f32 0.6931472, %v5897_v15 }
0x13cd   :  { %v4433_v63 = vsel %vm3923_vm1, %v4417_v44, 0.0  ;;  %v4409_v33 = vadd.f32 %v4390_v56, %v8122_v45 }
0x13ce   :  { %v5899_v58 = vpop.eup %5898  ;;  %4449 = vst [vmem:[#allocation12 + $0x20] sm:$0xff] %v4433_v63  ;;  %v4436_v1 = vsel %vm3923_vm1, %v4420_v30, 0.0  ;;  %v4402_v60 = vadd.f32 %v4376_v39, %v8116_v16 }
0x13cf   :  { %v5901_v35 = vpop.eup %5900  ;;  %4452 = vst [vmem:[#allocation12 + $0x38] sm:$0xff] %v4436_v1  ;;  %v4425_v18 = vsub.f32 %v8040_v27, %v4409_v33  ;;  %v4394_v21 = vmul.f32 0.6931472, %v5899_v58 }
0x13d0   :  { %v4418_v20 = vsub.f32 %v8032_v31, %v4402_v60  ;;  %v4392_v7 = vmul.f32 0.6931472, %v5901_v35 }
0x13d1   :  { %v4441_v5 = vsel %vm3923_vm1, %v4425_v18, 0.0  ;;  %v4411_v45 = vadd.f32 %v4394_v21, %v8134_v11 }
0x13d2   :  { %4457 = vst [vmem:[#allocation12 + $0x60] sm:$0xff] %v4441_v5  ;;  %v4434_v49 = vsel %vm3923_vm1, %v4418_v20, 0.0  ;;  %v4410_v46 = vadd.f32 %v4392_v7, %v8128_v59 }
0x13d3   :  { %v5903_v16 = vpop.eup %5902  ;;  %4450 = vst [vmem:[#allocation12 + $0x28] sm:$0xff] %v4434_v49  ;;  %v4427_v13 = vsub.f32 %v8054_v26, %v4411_v45 }
0x13d4   :  { %v4426_v27 = vsub.f32 %v8047_v8, %v4410_v46  ;;  %v4396_v24 = vmul.f32 0.6931472, %v5903_v16 }
0x13d5   :  { %v4443_v31 = vsel %vm3923_vm1, %v4427_v13, 0.0 }
0x13d6   :  { %4459 = vst [vmem:[#allocation12 + $0x70] sm:$0xff] %v4443_v31  ;;  %v4442_v11 = vsel %vm3923_vm1, %v4426_v27, 0.0  ;;  %v4412_v14 = vadd.f32 %v4396_v24, %v8142_v48 }
0x13d7   :  { %4458 = vst [vmem:[#allocation12 + $0x68] sm:$0xff] %v4442_v11 }
0x13d8   :  { %v4428_v59 = vsub.f32 %v8060_v2, %v4412_v14 }
0x13da   :  { %v4444_v26 = vsel %vm3923_vm1, %v4428_v59, 0.0 }
0x13db   :  { %4460 = vst [vmem:[#allocation12 + $0x78] sm:$0xff] %v4444_v26 }
0x13dc   :  { %6039 = shalt.err (!%p6036_p13)
}
0x13dd   :  { %s6040_s12 = scalar_lea.hbm %s8252_s9, 2048 }
0x13de   :  { %p6041_p0 = scmp.ne.s32.totalorder %s8252_s9, %s6040_s12  ;;  %p6044_p1 = scmp.lt.u32.totalorder %s6040_s12, %s8252_s9 }
0x13e0   :  { %p6046_p2 = pnand %p6044_p1, %p6041_p0 }
0x13e2   :  { %6049 = shalt.err (!%p6046_p2)
}
0x13e3   :  { %4472 = dma.vmem_to_hbm [thread:$0]  %s4467_s24, 2048, %s8252_s9, [#allocation4], %s6066_s5, %s6066_s5, %s6067_s21  }
0x13e4   :  { %6058 = dma.done.wait [#allocation4], 2048  }
0x13e5   :  { %6059 = vsyncadd [#allocation4], 4294965248 }
0x13e6   :  { %4476 = vsyncpa [#allocation3], 1 }
0x13e7   :  { %4477 = vsyncpa [#allocation7], 1 }
0x13e8   :  { %4478 = vsyncpa [#allocation10], 1 }
0x13e9   :  { %4479 = vsyncpa [#allocation4], 1 }
0x13ea   :  { %4480 = vsyncpa [#allocation5], 1 }

</bundles_post_ra>
